<compile_context>
chip_gen: v5e
topology: v5e:2x2
jax: 0.10.0
libtpu: 0.0.40
codegen_flags: <defaults>
</compile_context>

<pallas_src>
import math

import jax
import jax.numpy as jnp
from jax.experimental import pallas as pl
from jax.experimental.pallas import tpu as pltpu  # noqa: F401  (TPU backend)

# ----------------------------- config (small) -------------------------------
B = 2            # batch
S = 8            # sequence length
H = 32           # hidden_dim
NH = 4           # num_heads
HD = H // NH     # head_dim
L = 2            # num_layers
V = 64           # vocab_size
T = 3            # number of personality traits
TRAIT_IDX = 1    # scalar trait index (WillModule broadcasts one trait row)
BS = B * S
SCALE = HD ** -0.5
EPS = 1e-5

# column offsets in the (H, 13H) "K = H" weight slab
C_QKV0, C_QKV1 = 0, 5 * H           # fused [q | k | v | q@R | k@R]
C_RW1_0, C_RW1_1 = 5 * H, 7 * H     # reasoning up-proj
C_WILL0, C_WILL1 = 7 * H, 8 * H     # will decision (hidden half)
C_MW1_0, C_MW1_1 = 8 * H, 12 * H    # MLP up-proj (will-LN gamma folded in)
C_WO_0, C_WO_1 = 12 * H, 13 * H     # attention o-projection

# row indices in the (10, 5H) per-layer vector slab
VROW_BQKV, VROW_MB1, VROW_RB1, VROW_RB2, VROW_DEC, VROW_MB2 = 0, 1, 2, 3, 4, 5
VROW_LN2W, VROW_LN2B, VROW_RLNW, VROW_RLNB = 6, 7, 8, 9
NVEC = 10
VW = 5 * H       # widest vector row (fused qkv bias)

# ------------------------------ shared math ---------------------------------
def _norm(x):
    """LayerNorm normalize only (affine handled via folds / vector slab)."""
    mu = jnp.mean(x, axis=-1, keepdims=True)
    var = jnp.mean(jnp.square(x - mu), axis=-1, keepdims=True)
    return (x - mu) * jax.lax.rsqrt(var + EPS)


def _layernorm(x, w, b):  # reference only
    return _norm(x) * w + b


def _gelu(x):
    # exact (erf) GELU, matching torch.nn.GELU() default
    return 0.5 * x * (1.0 + jax.lax.erf(x * (1.0 / math.sqrt(2.0))))


def _rotate_half(x):  # reference only
    d = x.shape[-1]
    return jnp.concatenate([-x[..., d // 2:], x[..., : d // 2]], axis=-1)


# ------------------------------ Pallas kernel --------------------------------
def model_kernel(x_ref, rope_ref, wh_ref, wk2_ref, vec_ref, embt_ref, hb_ref, out_ref):
    h = x_ref[...]                    # (BS, H) hidden state
    cos2 = rope_ref[0]                # (BS, 2H) cos, tiled for [q | k]
    sin2 = rope_ref[1]                # (BS, 2H) sin, tiled for [q | k]

    for l in range(L):                # fully unrolled, weights already in VMEM
        wh = wh_ref[l]                # (H, 13H)  all K=H matmul weights
        wk2 = wk2_ref[l]              # (6H, H)   [rw2 ; mw2]
        vec = vec_ref[l]              # (NVEC, 5H) biases / LN vectors (zero padded)

        # ---------------- attention (fused QKV + RoPE) ----------------
        xa = _norm(h)                 # LN1 affine folded into wqkv / bqkv
        qkv = jnp.dot(xa, wh[:, C_QKV0:C_QKV1],
                      preferred_element_type=jnp.float32) + vec[VROW_BQKV:VROW_BQKV + 1, :C_QKV1]
        # RoPE on q and k in one shot; scale already folded into the q columns.
        qk = qkv[:, :2 * H] * cos2 + qkv[:, 3 * H:5 * H] * sin2
        q3 = qk[:, :H].reshape(B, S, H)
        k3 = qk[:, H:2 * H].reshape(B, S, H)
        v3 = qkv[:, 2 * H:3 * H].reshape(B, S, H)

        ctx = []
        for hi in range(NH):
            sl = slice(hi * HD, (hi + 1) * HD)
            sc = jnp.einsum('bsd,btd->bst', q3[:, :, sl], k3[:, :, sl],
                            preferred_element_type=jnp.float32)
            sc = sc - jnp.max(sc, axis=-1, keepdims=True)
            p = jnp.exp(sc)
            p = p * pl.reciprocal(jnp.sum(p, axis=-1, keepdims=True), approx=True)
            ctx.append(jnp.einsum('bst,btd->bsd', p, v3[:, :, sl],
                                  preferred_element_type=jnp.float32).reshape(BS, HD))
        ctx_full = jnp.concatenate(ctx, axis=-1)                     # (BS, H)
        h = h + jnp.dot(ctx_full, wh[:, C_WO_0:C_WO_1],
                        preferred_element_type=jnp.float32)          # residual 1

        res = h
        x2 = _norm(h) * vec[VROW_LN2W:VROW_LN2W + 1, :H] + vec[VROW_LN2B:VROW_LN2B + 1, :H]

        # ---------------- reasoning layer ----------------
        r = _gelu(jnp.dot(x2, wh[:, C_RW1_0:C_RW1_1],
                          preferred_element_type=jnp.float32) + vec[VROW_RB1:VROW_RB1 + 1, :2 * H])
        r = jnp.dot(r, wk2[:2 * H, :],
                    preferred_element_type=jnp.float32) + vec[VROW_RB2:VROW_RB2 + 1, :H]
        x2 = _norm(x2 + r) * vec[VROW_RLNW:VROW_RLNW + 1, :H] + vec[VROW_RLNB:VROW_RLNB + 1, :H]

        # ---------------- will module (concat-free) ----------------
        dec = jnp.dot(x2, wh[:, C_WILL0:C_WILL1],
                      preferred_element_type=jnp.float32) + vec[VROW_DEC:VROW_DEC + 1, :H]
        x2 = _norm(x2 + dec)          # will-LN affine folded into mw1 / mb1

        # ---------------- feed-forward MLP ----------------
        m = _gelu(jnp.dot(x2, wh[:, C_MW1_0:C_MW1_1],
                          preferred_element_type=jnp.float32) + vec[VROW_MB1:VROW_MB1 + 1, :4 * H])
        m = jnp.dot(m, wk2[2 * H:6 * H, :],
                    preferred_element_type=jnp.float32) + vec[VROW_MB2:VROW_MB2 + 1, :H]
        h = res + m                   # residual 2

    # ---------------- final LN + tied LM head (affine folded into embt/hb) ----
    hf = _norm(h)
    out_ref[...] = jnp.dot(hf, embt_ref[...],
                           preferred_element_type=jnp.float32) + hb_ref[...]


# ------------------------------ host-side prep --------------------------------
def _rot_cols(w):
    """Apply rotate_half to the output (last) axis of w per head: exact w @ R."""
    w4 = w.reshape(w.shape[:-1] + (NH, HD))
    return jnp.concatenate([-w4[..., HD // 2:], w4[..., :HD // 2]], axis=-1).reshape(w.shape)


def prepare_operands(P, cos, sin):
    with jax.default_matmul_precision("highest"):   # exact host-side folds
        # LN1 affine + attention scale + RoPE rotation folded into one (H, 5H) weight
        g1 = jnp.swapaxes(P['ln1w'], 1, 2)                                 # (L, H, 1)
        wq_s = P['wq'] * SCALE
        wqkv_cat = jnp.concatenate(
            [wq_s, P['wk'], P['wv'], _rot_cols(wq_s), _rot_cols(P['wk'])], axis=-1)  # (L,H,5H)
        wqkv_eff = g1 * wqkv_cat
        bqkv = jnp.einsum('lah,lhk->lak', P['ln1b'], wqkv_cat)             # (L, 1, 5H)

        # will-LN affine folded into the MLP up-projection
        gw = jnp.swapaxes(P['wlnw'], 1, 2)                                 # (L, H, 1)
        mw1_eff = gw * P['mw1']
        mb1_eff = jnp.einsum('lah,lhk->lak', P['wlnb'], P['mw1']) + P['mb1']

        # will module: split weight, pre-reduce the layer-constant personality half
        willwx = P['willw'][:, :H, :]                                      # (L, H, H)
        dec_const = jnp.einsum('lah,lho->lao', P['pers'],
                               P['willw'][:, H:, :]) + P['willb']          # (L, 1, H)

        # one slab of all K=H weights, one slab of the K>H weights
        w_h = jnp.concatenate([wqkv_eff, P['rw1'], willwx, mw1_eff, P['wo']],
                              axis=-1)                                     # (L, H, 13H)
        w_k2 = jnp.concatenate([P['rw2'], P['mw2']], axis=1)               # (L, 6H, H)

        # one slab of all biases / LN vectors (zero padded to width 5H)
        def row(v):
            return jnp.pad(v, ((0, 0), (0, 0), (0, VW - v.shape[-1])))
        vecs = jnp.concatenate(
            [row(bqkv), row(mb1_eff), row(P['rb1']), row(P['rb2']), row(dec_const),
             row(P['mb2']), row(P['ln2w']), row(P['ln2b']), row(P['rlnw']), row(P['rlnb'])],
            axis=1)                                                        # (L, 10, 5H)

        # final-LN affine folded into the tied head
        embt = P['flnw'].T * P['emb'].T                                    # (H, V)
        headb = jnp.einsum('ah,hv->av', P['flnb'], P['emb'].T)             # (1, V)

        # RoPE tables, per-row (b*S+s), tiled across heads and across [q | k]
        cos_row = jnp.tile(jnp.tile(cos, (1, NH)), (B, 1))                 # (BS, H)
        sin_row = jnp.tile(jnp.tile(sin, (1, NH)), (B, 1))
        rope = jnp.stack([jnp.tile(cos_row, (1, 2)),
                          jnp.tile(sin_row, (1, 2))], axis=0)              # (2, BS, 2H)
    return w_h, w_k2, vecs, embt, headb, rope


# ------------------------------ wrapper --------------------------------------
def turbotalk_forward(input_ids, P, cos, sin):
    # plain-JAX glue: embedding gather + layer-invariant weight folding
    x_emb = P['emb'][input_ids].reshape(BS, H)                             # (BS, H)
    w_h, w_k2, vecs, embt, headb, rope = prepare_operands(P, cos, sin)

    logits = pl.pallas_call(
        model_kernel,
        out_shape=jax.ShapeDtypeStruct((BS, V), jnp.float32),
    )(x_emb, rope, w_h, w_k2, vecs, embt, headb)

    return logits.reshape(B, S, V)


# --------------------------- pure-JAX reference ------------------------------
def reference_forward(input_ids, P, cos, sin):
    with jax.default_matmul_precision("highest"):
        h = P['emb'][input_ids]
        for l in range(L):
            hl = _layernorm(h, P['ln1w'][l], P['ln1b'][l])
            h2 = hl.reshape(B * S, H)
            q = (h2 @ P['wq'][l]).reshape(B, S, H)
            k = (h2 @ P['wk'][l]).reshape(B, S, H)
            v = (h2 @ P['wv'][l]).reshape(B, S, H)
            ctx = []
            for hi in range(NH):
                sl = slice(hi * HD, (hi + 1) * HD)
                qh, kh, vh = q[..., sl], k[..., sl], v[..., sl]
                qh = qh * cos + _rotate_half(qh) * sin
                kh = kh * cos + _rotate_half(kh) * sin
                s_ = jnp.einsum('bsd,btd->bst', qh, kh) * SCALE
                p = jax.nn.softmax(s_, axis=-1)
                ctx.append(jnp.einsum('bst,btd->bsd', p, vh))
            attn = (jnp.concatenate(ctx, -1).reshape(B * S, H) @ P['wo'][l]).reshape(B, S, H)
            h = h + attn
            res = h
            x2 = _layernorm(h, P['ln2w'][l], P['ln2b'][l])
            r = _gelu(x2.reshape(B * S, H) @ P['rw1'][l] + P['rb1'][l]) @ P['rw2'][l] + P['rb2'][l]
            x2 = _layernorm(x2 + r.reshape(B, S, H), P['rlnw'][l], P['rlnb'][l])
            pers = jnp.broadcast_to(P['pers'][l].reshape(1, 1, H), (B, S, H))
            comb = jnp.concatenate([x2, pers], -1).reshape(B * S, 2 * H)
            dec = comb @ P['willw'][l] + P['willb'][l]
            x2 = _layernorm(x2 + dec.reshape(B, S, H), P['wlnw'][l], P['wlnb'][l])
            m = _gelu(x2.reshape(B * S, H) @ P['mw1'][l] + P['mb1'][l]) @ P['mw2'][l] + P['mb2'][l]
            h = res + m.reshape(B, S, H)
        hf = _layernorm(h, P['flnw'], P['flnb'])
        out = jnp.einsum('bsh,vh->bsv', hf, P['emb'])
    return out


# ------------------------------- params --------------------------------------
def make_params():
    keys = iter(jax.random.split(jax.random.PRNGKey(0), 64))

    def nrm(shape):
        return 0.02 * jax.random.normal(next(keys), shape, dtype=jnp.float32)

    ones = lambda *s: jnp.ones(s, jnp.float32)
    zeros = lambda *s: jnp.zeros(s, jnp.float32)

    will_emb = nrm((L, T, H))
    P = dict(
        emb=nrm((V, H)),
        ln1w=ones(L, 1, H), ln1b=zeros(L, 1, H),
        wq=nrm((L, H, H)), wk=nrm((L, H, H)), wv=nrm((L, H, H)), wo=nrm((L, H, H)),
        ln2w=ones(L, 1, H), ln2b=zeros(L, 1, H),
        rw1=nrm((L, H, 2 * H)), rb1=zeros(L, 1, 2 * H),
        rw2=nrm((L, 2 * H, H)), rb2=zeros(L, 1, H),
        rlnw=ones(L, 1, H), rlnb=zeros(L, 1, H),
        pers=will_emb[:, TRAIT_IDX, :][:, None, :],              # (L, 1, H) trait row per layer
        willw=nrm((L, 2 * H, H)), willb=zeros(L, 1, H),
        wlnw=ones(L, 1, H), wlnb=zeros(L, 1, H),
        mw1=nrm((L, H, 4 * H)), mb1=zeros(L, 1, 4 * H),
        mw2=nrm((L, 4 * H, H)), mb2=zeros(L, 1, H),
        flnw=ones(1, H), flnb=zeros(1, H),
    )
    return P


def make_rope():
    inv_freq = 1.0 / (10000.0 ** (jnp.arange(0, HD, 2, dtype=jnp.float32) / HD))
    t = jnp.arange(S, dtype=jnp.float32)
    freqs = t[:, None] * inv_freq[None, :]                       # (S, HD/2)
    emb = jnp.concatenate([freqs, freqs], axis=-1)               # (S, HD)
    return jnp.cos(emb), jnp.sin(emb)


# -------------------------------- main ----------------------------------------
if __name__ == "__main__":
    P = make_params()
    cos, sin = make_rope()
    input_ids = jax.random.randint(jax.random.PRNGKey(1), (B, S), 0, V)

    logits = turbotalk_forward(input_ids, P, cos, sin)
    jax.block_until_ready(logits)
    assert logits.shape == (B, S, V), logits.shape

    ref = reference_forward(input_ids, P, cos, sin)
    max_err = float(jnp.max(jnp.abs(logits - ref)))
    assert max_err < 5e-3, f"mismatch vs reference: {max_err}"

    print("KERNEL_OK")
</pallas_src>

<mosaic_0001>
module attributes {stable_mosaic.version = 11 : i64} {
  func.func @model_kernel(%arg0: memref<16x32xf32, #tpu.memory_space<vmem>>, %arg1: memref<2x16x64xf32, #tpu.memory_space<vmem>>, %arg2: memref<2x32x416xf32, #tpu.memory_space<vmem>>, %arg3: memref<2x192x32xf32, #tpu.memory_space<vmem>>, %arg4: memref<2x10x160xf32, #tpu.memory_space<vmem>>, %arg5: memref<32x64xf32, #tpu.memory_space<vmem>>, %arg6: memref<1x64xf32, #tpu.memory_space<vmem>>, %arg7: memref<16x64xf32, #tpu.memory_space<vmem>>) attributes {dimension_semantics = [], scalar_prefetch = 0 : i64, scratch_operands = 0 : i64, tpu.core_type = #tpu.core_type<tc>} {
    %c0 = arith.constant 0 : index
    %c0_0 = arith.constant 0 : index
    %0 = vector.load %arg0[%c0, %c0_0] : memref<16x32xf32, #tpu.memory_space<vmem>>, vector<16x32xf32>
    %c0_1 = arith.constant 0 : index
    %c0_2 = arith.constant 0 : index
    %c0_3 = arith.constant 0 : index
    %1 = vector.load %arg1[%c0_1, %c0_2, %c0_3] : memref<2x16x64xf32, #tpu.memory_space<vmem>>, vector<1x16x64xf32>
    %2 = vector.shape_cast %1 : vector<1x16x64xf32> to vector<16x64xf32>
    %c1 = arith.constant 1 : index
    %c0_4 = arith.constant 0 : index
    %c0_5 = arith.constant 0 : index
    %3 = vector.load %arg1[%c1, %c0_4, %c0_5] : memref<2x16x64xf32, #tpu.memory_space<vmem>>, vector<1x16x64xf32>
    %4 = vector.shape_cast %3 : vector<1x16x64xf32> to vector<16x64xf32>
    %c0_6 = arith.constant 0 : index
    %c0_7 = arith.constant 0 : index
    %c0_8 = arith.constant 0 : index
    %5 = vector.load %arg2[%c0_6, %c0_7, %c0_8] : memref<2x32x416xf32, #tpu.memory_space<vmem>>, vector<1x32x416xf32>
    %6 = vector.shape_cast %5 : vector<1x32x416xf32> to vector<32x416xf32>
    %c0_9 = arith.constant 0 : index
    %c0_10 = arith.constant 0 : index
    %c0_11 = arith.constant 0 : index
    %7 = vector.load %arg3[%c0_9, %c0_10, %c0_11] : memref<2x192x32xf32, #tpu.memory_space<vmem>>, vector<1x192x32xf32>
    %8 = vector.shape_cast %7 : vector<1x192x32xf32> to vector<192x32xf32>
    %c0_12 = arith.constant 0 : index
    %c0_13 = arith.constant 0 : index
    %c0_14 = arith.constant 0 : index
    %9 = vector.load %arg4[%c0_12, %c0_13, %c0_14] : memref<2x10x160xf32, #tpu.memory_space<vmem>>, vector<1x10x160xf32>
    %10 = vector.shape_cast %9 : vector<1x10x160xf32> to vector<10x160xf32>
    %cst = arith.constant dense<0.000000e+00> : vector<16xf32>
    %11 = vector.multi_reduction <add>, %0, %cst [1] : vector<16x32xf32> to vector<16xf32>
    %12 = vector.shape_cast %11 : vector<16xf32> to vector<16x1xf32>
    %cst_15 = arith.constant 3.200000e+01 : f32
    %13 = vector.broadcast %cst_15 : f32 to vector<16x1xf32>
    %14 = arith.divf %12, %13 : vector<16x1xf32>
    %15 = vector.broadcast %14 : vector<16x1xf32> to vector<16x32xf32>
    %16 = arith.subf %0, %15 : vector<16x32xf32>
    %17 = arith.mulf %16, %16 : vector<16x32xf32>
    %cst_16 = arith.constant dense<0.000000e+00> : vector<16xf32>
    %18 = vector.multi_reduction <add>, %17, %cst_16 [1] : vector<16x32xf32> to vector<16xf32>
    %19 = vector.shape_cast %18 : vector<16xf32> to vector<16x1xf32>
    %cst_17 = arith.constant 3.200000e+01 : f32
    %20 = vector.broadcast %cst_17 : f32 to vector<16x1xf32>
    %21 = arith.divf %19, %20 : vector<16x1xf32>
    %22 = vector.broadcast %14 : vector<16x1xf32> to vector<16x32xf32>
    %23 = arith.subf %0, %22 : vector<16x32xf32>
    %cst_18 = arith.constant 9.99999974E-6 : f32
    %24 = vector.broadcast %cst_18 : f32 to vector<16x1xf32>
    %25 = arith.addf %21, %24 : vector<16x1xf32>
    %26 = math.rsqrt %25 : vector<16x1xf32>
    %27 = vector.broadcast %26 : vector<16x1xf32> to vector<16x32xf32>
    %28 = arith.mulf %23, %27 : vector<16x32xf32>
    %29 = vector.extract_strided_slice %6 {offsets = [0, 0], sizes = [32, 160], strides = [1, 1]} : vector<32x416xf32> to vector<32x160xf32>
    %cst_19 = arith.constant dense<0.000000e+00> : vector<16x160xf32>
    %30 = tpu.matmul %28, %29, %cst_19 {dimension_numbers = #tpu.dot_dimension_numbers<[1], [0], [0], [1], [0, 0, 1, 1], [], []>} : vector<16x32xf32>, vector<32x160xf32>, vector<16x160xf32> -> vector<16x160xf32>
    %31 = vector.extract_strided_slice %10 {offsets = [0, 0], sizes = [1, 160], strides = [1, 1]} : vector<10x160xf32> to vector<1x160xf32>
    %32 = vector.broadcast %31 : vector<1x160xf32> to vector<16x160xf32>
    %33 = arith.addf %30, %32 : vector<16x160xf32>
    %34 = vector.extract_strided_slice %33 {offsets = [0, 0], sizes = [16, 64], strides = [1, 1]} : vector<16x160xf32> to vector<16x64xf32>
    %35 = arith.mulf %34, %2 : vector<16x64xf32>
    %36 = vector.extract_strided_slice %33 {offsets = [0, 96], sizes = [16, 64], strides = [1, 1]} : vector<16x160xf32> to vector<16x64xf32>
    %37 = arith.mulf %36, %4 : vector<16x64xf32>
    %38 = arith.addf %35, %37 : vector<16x64xf32>
    %39 = vector.extract_strided_slice %38 {offsets = [0, 0], sizes = [16, 32], strides = [1, 1]} : vector<16x64xf32> to vector<16x32xf32>
    %40 = vector.shape_cast %39 : vector<16x32xf32> to vector<2x8x32xf32>
    %41 = vector.extract_strided_slice %38 {offsets = [0, 32], sizes = [16, 32], strides = [1, 1]} : vector<16x64xf32> to vector<16x32xf32>
    %42 = vector.shape_cast %41 : vector<16x32xf32> to vector<2x8x32xf32>
    %43 = vector.extract_strided_slice %33 {offsets = [0, 64], sizes = [16, 32], strides = [1, 1]} : vector<16x160xf32> to vector<16x32xf32>
    %44 = vector.shape_cast %43 : vector<16x32xf32> to vector<2x8x32xf32>
    %45 = vector.extract_strided_slice %40 {offsets = [0, 0, 0], sizes = [2, 8, 8], strides = [1, 1, 1]} : vector<2x8x32xf32> to vector<2x8x8xf32>
    %46 = vector.extract_strided_slice %42 {offsets = [0, 0, 0], sizes = [2, 8, 8], strides = [1, 1, 1]} : vector<2x8x32xf32> to vector<2x8x8xf32>
    "tpu.trace_start"() <{level = 10 : i32, message = "bsd,btd->bst"}> : () -> ()
    %cst_20 = arith.constant dense<0.000000e+00> : vector<2x8x8xf32>
    %47 = tpu.matmul %45, %46, %cst_20 {dimension_numbers = #tpu.dot_dimension_numbers<[2], [2], [1], [1], [0, 0, 0, 1, 1, 1], [0], [0]>} : vector<2x8x8xf32>, vector<2x8x8xf32>, vector<2x8x8xf32> -> vector<2x8x8xf32>
    "tpu.trace_stop"() : () -> ()
    %cst_21 = arith.constant dense<0xFF800000> : vector<2x8xf32>
    %48 = vector.multi_reduction <maximumf>, %47, %cst_21 [2] : vector<2x8x8xf32> to vector<2x8xf32>
    %49 = vector.shape_cast %48 : vector<2x8xf32> to vector<2x8x1xf32>
    %50 = vector.broadcast %49 : vector<2x8x1xf32> to vector<2x8x8xf32>
    %51 = arith.subf %47, %50 : vector<2x8x8xf32>
    %52 = math.exp %51 : vector<2x8x8xf32>
    %cst_22 = arith.constant dense<0.000000e+00> : vector<2x8xf32>
    %53 = vector.multi_reduction <add>, %52, %cst_22 [2] : vector<2x8x8xf32> to vector<2x8xf32>
    %54 = vector.shape_cast %53 : vector<2x8xf32> to vector<2x8x1xf32>
    %55 = tpu.reciprocal %54 {approx = true} : vector<2x8x1xf32> -> vector<2x8x1xf32>
    %56 = vector.broadcast %55 : vector<2x8x1xf32> to vector<2x8x8xf32>
    %57 = arith.mulf %52, %56 : vector<2x8x8xf32>
    %58 = vector.extract_strided_slice %44 {offsets = [0, 0, 0], sizes = [2, 8, 8], strides = [1, 1, 1]} : vector<2x8x32xf32> to vector<2x8x8xf32>
    "tpu.trace_start"() <{level = 10 : i32, message = "bst,btd->bsd"}> : () -> ()
    %cst_23 = arith.constant dense<0.000000e+00> : vector<2x8x8xf32>
    %59 = tpu.matmul %57, %58, %cst_23 {dimension_numbers = #tpu.dot_dimension_numbers<[2], [1], [1], [2], [0, 0, 0, 1, 1, 2], [0], [0]>} : vector<2x8x8xf32>, vector<2x8x8xf32>, vector<2x8x8xf32> -> vector<2x8x8xf32>
    "tpu.trace_stop"() : () -> ()
    %60 = vector.shape_cast %59 : vector<2x8x8xf32> to vector<16x8xf32>
    %61 = vector.extract_strided_slice %40 {offsets = [0, 0, 8], sizes = [2, 8, 8], strides = [1, 1, 1]} : vector<2x8x32xf32> to vector<2x8x8xf32>
    %62 = vector.extract_strided_slice %42 {offsets = [0, 0, 8], sizes = [2, 8, 8], strides = [1, 1, 1]} : vector<2x8x32xf32> to vector<2x8x8xf32>
    "tpu.trace_start"() <{level = 10 : i32, message = "bsd,btd->bst"}> : () -> ()
    %cst_24 = arith.constant dense<0.000000e+00> : vector<2x8x8xf32>
    %63 = tpu.matmul %61, %62, %cst_24 {dimension_numbers = #tpu.dot_dimension_numbers<[2], [2], [1], [1], [0, 0, 0, 1, 1, 1], [0], [0]>} : vector<2x8x8xf32>, vector<2x8x8xf32>, vector<2x8x8xf32> -> vector<2x8x8xf32>
    "tpu.trace_stop"() : () -> ()
    %cst_25 = arith.constant dense<0xFF800000> : vector<2x8xf32>
    %64 = vector.multi_reduction <maximumf>, %63, %cst_25 [2] : vector<2x8x8xf32> to vector<2x8xf32>
    %65 = vector.shape_cast %64 : vector<2x8xf32> to vector<2x8x1xf32>
    %66 = vector.broadcast %65 : vector<2x8x1xf32> to vector<2x8x8xf32>
    %67 = arith.subf %63, %66 : vector<2x8x8xf32>
    %68 = math.exp %67 : vector<2x8x8xf32>
    %cst_26 = arith.constant dense<0.000000e+00> : vector<2x8xf32>
    %69 = vector.multi_reduction <add>, %68, %cst_26 [2] : vector<2x8x8xf32> to vector<2x8xf32>
    %70 = vector.shape_cast %69 : vector<2x8xf32> to vector<2x8x1xf32>
    %71 = tpu.reciprocal %70 {approx = true} : vector<2x8x1xf32> -> vector<2x8x1xf32>
    %72 = vector.broadcast %71 : vector<2x8x1xf32> to vector<2x8x8xf32>
    %73 = arith.mulf %68, %72 : vector<2x8x8xf32>
    %74 = vector.extract_strided_slice %44 {offsets = [0, 0, 8], sizes = [2, 8, 8], strides = [1, 1, 1]} : vector<2x8x32xf32> to vector<2x8x8xf32>
    "tpu.trace_start"() <{level = 10 : i32, message = "bst,btd->bsd"}> : () -> ()
    %cst_27 = arith.constant dense<0.000000e+00> : vector<2x8x8xf32>
    %75 = tpu.matmul %73, %74, %cst_27 {dimension_numbers = #tpu.dot_dimension_numbers<[2], [1], [1], [2], [0, 0, 0, 1, 1, 2], [0], [0]>} : vector<2x8x8xf32>, vector<2x8x8xf32>, vector<2x8x8xf32> -> vector<2x8x8xf32>
    "tpu.trace_stop"() : () -> ()
    %76 = vector.shape_cast %75 : vector<2x8x8xf32> to vector<16x8xf32>
    %77 = vector.extract_strided_slice %40 {offsets = [0, 0, 16], sizes = [2, 8, 8], strides = [1, 1, 1]} : vector<2x8x32xf32> to vector<2x8x8xf32>
    %78 = vector.extract_strided_slice %42 {offsets = [0, 0, 16], sizes = [2, 8, 8], strides = [1, 1, 1]} : vector<2x8x32xf32> to vector<2x8x8xf32>
    "tpu.trace_start"() <{level = 10 : i32, message = "bsd,btd->bst"}> : () -> ()
    %cst_28 = arith.constant dense<0.000000e+00> : vector<2x8x8xf32>
    %79 = tpu.matmul %77, %78, %cst_28 {dimension_numbers = #tpu.dot_dimension_numbers<[2], [2], [1], [1], [0, 0, 0, 1, 1, 1], [0], [0]>} : vector<2x8x8xf32>, vector<2x8x8xf32>, vector<2x8x8xf32> -> vector<2x8x8xf32>
    "tpu.trace_stop"() : () -> ()
    %cst_29 = arith.constant dense<0xFF800000> : vector<2x8xf32>
    %80 = vector.multi_reduction <maximumf>, %79, %cst_29 [2] : vector<2x8x8xf32> to vector<2x8xf32>
    %81 = vector.shape_cast %80 : vector<2x8xf32> to vector<2x8x1xf32>
    %82 = vector.broadcast %81 : vector<2x8x1xf32> to vector<2x8x8xf32>
    %83 = arith.subf %79, %82 : vector<2x8x8xf32>
    %84 = math.exp %83 : vector<2x8x8xf32>
    %cst_30 = arith.constant dense<0.000000e+00> : vector<2x8xf32>
    %85 = vector.multi_reduction <add>, %84, %cst_30 [2] : vector<2x8x8xf32> to vector<2x8xf32>
    %86 = vector.shape_cast %85 : vector<2x8xf32> to vector<2x8x1xf32>
    %87 = tpu.reciprocal %86 {approx = true} : vector<2x8x1xf32> -> vector<2x8x1xf32>
    %88 = vector.broadcast %87 : vector<2x8x1xf32> to vector<2x8x8xf32>
    %89 = arith.mulf %84, %88 : vector<2x8x8xf32>
    %90 = vector.extract_strided_slice %44 {offsets = [0, 0, 16], sizes = [2, 8, 8], strides = [1, 1, 1]} : vector<2x8x32xf32> to vector<2x8x8xf32>
    "tpu.trace_start"() <{level = 10 : i32, message = "bst,btd->bsd"}> : () -> ()
    %cst_31 = arith.constant dense<0.000000e+00> : vector<2x8x8xf32>
    %91 = tpu.matmul %89, %90, %cst_31 {dimension_numbers = #tpu.dot_dimension_numbers<[2], [1], [1], [2], [0, 0, 0, 1, 1, 2], [0], [0]>} : vector<2x8x8xf32>, vector<2x8x8xf32>, vector<2x8x8xf32> -> vector<2x8x8xf32>
    "tpu.trace_stop"() : () -> ()
    %92 = vector.shape_cast %91 : vector<2x8x8xf32> to vector<16x8xf32>
    %93 = vector.extract_strided_slice %40 {offsets = [0, 0, 24], sizes = [2, 8, 8], strides = [1, 1, 1]} : vector<2x8x32xf32> to vector<2x8x8xf32>
    %94 = vector.extract_strided_slice %42 {offsets = [0, 0, 24], sizes = [2, 8, 8], strides = [1, 1, 1]} : vector<2x8x32xf32> to vector<2x8x8xf32>
    "tpu.trace_start"() <{level = 10 : i32, message = "bsd,btd->bst"}> : () -> ()
    %cst_32 = arith.constant dense<0.000000e+00> : vector<2x8x8xf32>
    %95 = tpu.matmul %93, %94, %cst_32 {dimension_numbers = #tpu.dot_dimension_numbers<[2], [2], [1], [1], [0, 0, 0, 1, 1, 1], [0], [0]>} : vector<2x8x8xf32>, vector<2x8x8xf32>, vector<2x8x8xf32> -> vector<2x8x8xf32>
    "tpu.trace_stop"() : () -> ()
    %cst_33 = arith.constant dense<0xFF800000> : vector<2x8xf32>
    %96 = vector.multi_reduction <maximumf>, %95, %cst_33 [2] : vector<2x8x8xf32> to vector<2x8xf32>
    %97 = vector.shape_cast %96 : vector<2x8xf32> to vector<2x8x1xf32>
    %98 = vector.broadcast %97 : vector<2x8x1xf32> to vector<2x8x8xf32>
    %99 = arith.subf %95, %98 : vector<2x8x8xf32>
    %100 = math.exp %99 : vector<2x8x8xf32>
    %cst_34 = arith.constant dense<0.000000e+00> : vector<2x8xf32>
    %101 = vector.multi_reduction <add>, %100, %cst_34 [2] : vector<2x8x8xf32> to vector<2x8xf32>
    %102 = vector.shape_cast %101 : vector<2x8xf32> to vector<2x8x1xf32>
    %103 = tpu.reciprocal %102 {approx = true} : vector<2x8x1xf32> -> vector<2x8x1xf32>
    %104 = vector.broadcast %103 : vector<2x8x1xf32> to vector<2x8x8xf32>
    %105 = arith.mulf %100, %104 : vector<2x8x8xf32>
    %106 = vector.extract_strided_slice %44 {offsets = [0, 0, 24], sizes = [2, 8, 8], strides = [1, 1, 1]} : vector<2x8x32xf32> to vector<2x8x8xf32>
    "tpu.trace_start"() <{level = 10 : i32, message = "bst,btd->bsd"}> : () -> ()
    %cst_35 = arith.constant dense<0.000000e+00> : vector<2x8x8xf32>
    %107 = tpu.matmul %105, %106, %cst_35 {dimension_numbers = #tpu.dot_dimension_numbers<[2], [1], [1], [2], [0, 0, 0, 1, 1, 2], [0], [0]>} : vector<2x8x8xf32>, vector<2x8x8xf32>, vector<2x8x8xf32> -> vector<2x8x8xf32>
    "tpu.trace_stop"() : () -> ()
    %108 = vector.shape_cast %107 : vector<2x8x8xf32> to vector<16x8xf32>
    %109 = tpu.concatenate %60, %76, %92, %108 in 1 : vector<16x8xf32>, vector<16x8xf32>, vector<16x8xf32>, vector<16x8xf32> -> vector<16x32xf32>
    %110 = vector.extract_strided_slice %6 {offsets = [0, 384], sizes = [32, 32], strides = [1, 1]} : vector<32x416xf32> to vector<32x32xf32>
    %cst_36 = arith.constant dense<0.000000e+00> : vector<16x32xf32>
    %111 = tpu.matmul %109, %110, %cst_36 {dimension_numbers = #tpu.dot_dimension_numbers<[1], [0], [0], [1], [0, 0, 1, 1], [], []>} : vector<16x32xf32>, vector<32x32xf32>, vector<16x32xf32> -> vector<16x32xf32>
    %112 = arith.addf %0, %111 : vector<16x32xf32>
    %cst_37 = arith.constant dense<0.000000e+00> : vector<16xf32>
    %113 = vector.multi_reduction <add>, %112, %cst_37 [1] : vector<16x32xf32> to vector<16xf32>
    %114 = vector.shape_cast %113 : vector<16xf32> to vector<16x1xf32>
    %cst_38 = arith.constant 3.200000e+01 : f32
    %115 = vector.broadcast %cst_38 : f32 to vector<16x1xf32>
    %116 = arith.divf %114, %115 : vector<16x1xf32>
    %117 = vector.broadcast %116 : vector<16x1xf32> to vector<16x32xf32>
    %118 = arith.subf %112, %117 : vector<16x32xf32>
    %119 = arith.mulf %118, %118 : vector<16x32xf32>
    %cst_39 = arith.constant dense<0.000000e+00> : vector<16xf32>
    %120 = vector.multi_reduction <add>, %119, %cst_39 [1] : vector<16x32xf32> to vector<16xf32>
    %121 = vector.shape_cast %120 : vector<16xf32> to vector<16x1xf32>
    %cst_40 = arith.constant 3.200000e+01 : f32
    %122 = vector.broadcast %cst_40 : f32 to vector<16x1xf32>
    %123 = arith.divf %121, %122 : vector<16x1xf32>
    %124 = vector.broadcast %116 : vector<16x1xf32> to vector<16x32xf32>
    %125 = arith.subf %112, %124 : vector<16x32xf32>
    %cst_41 = arith.constant 9.99999974E-6 : f32
    %126 = vector.broadcast %cst_41 : f32 to vector<16x1xf32>
    %127 = arith.addf %123, %126 : vector<16x1xf32>
    %128 = math.rsqrt %127 : vector<16x1xf32>
    %129 = vector.broadcast %128 : vector<16x1xf32> to vector<16x32xf32>
    %130 = arith.mulf %125, %129 : vector<16x32xf32>
    %131 = vector.extract_strided_slice %10 {offsets = [6, 0], sizes = [1, 32], strides = [1, 1]} : vector<10x160xf32> to vector<1x32xf32>
    %132 = vector.broadcast %131 : vector<1x32xf32> to vector<16x32xf32>
    %133 = arith.mulf %130, %132 : vector<16x32xf32>
    %134 = vector.extract_strided_slice %10 {offsets = [7, 0], sizes = [1, 32], strides = [1, 1]} : vector<10x160xf32> to vector<1x32xf32>
    %135 = vector.broadcast %134 : vector<1x32xf32> to vector<16x32xf32>
    %136 = arith.addf %133, %135 : vector<16x32xf32>
    %137 = vector.extract_strided_slice %6 {offsets = [0, 160], sizes = [32, 64], strides = [1, 1]} : vector<32x416xf32> to vector<32x64xf32>
    %cst_42 = arith.constant dense<0.000000e+00> : vector<16x64xf32>
    %138 = tpu.matmul %136, %137, %cst_42 {dimension_numbers = #tpu.dot_dimension_numbers<[1], [0], [0], [1], [0, 0, 1, 1], [], []>} : vector<16x32xf32>, vector<32x64xf32>, vector<16x64xf32> -> vector<16x64xf32>
    %139 = vector.extract_strided_slice %10 {offsets = [2, 0], sizes = [1, 64], strides = [1, 1]} : vector<10x160xf32> to vector<1x64xf32>
    %140 = vector.broadcast %139 : vector<1x64xf32> to vector<16x64xf32>
    %141 = arith.addf %138, %140 : vector<16x64xf32>
    %cst_43 = arith.constant 5.000000e-01 : f32
    %142 = vector.broadcast %cst_43 : f32 to vector<16x64xf32>
    %143 = arith.mulf %142, %141 : vector<16x64xf32>
    %cst_44 = arith.constant 0.707106769 : f32
    %144 = vector.broadcast %cst_44 : f32 to vector<16x64xf32>
    %145 = arith.mulf %141, %144 : vector<16x64xf32>
    %146 = math.erf %145 : vector<16x64xf32>
    %cst_45 = arith.constant 1.000000e+00 : f32
    %147 = vector.broadcast %cst_45 : f32 to vector<16x64xf32>
    %148 = arith.addf %147, %146 : vector<16x64xf32>
    %149 = arith.mulf %143, %148 : vector<16x64xf32>
    %150 = vector.extract_strided_slice %8 {offsets = [0, 0], sizes = [64, 32], strides = [1, 1]} : vector<192x32xf32> to vector<64x32xf32>
    %cst_46 = arith.constant dense<0.000000e+00> : vector<16x32xf32>
    %151 = tpu.matmul %149, %150, %cst_46 {dimension_numbers = #tpu.dot_dimension_numbers<[1], [0], [0], [1], [0, 0, 1, 1], [], []>} : vector<16x64xf32>, vector<64x32xf32>, vector<16x32xf32> -> vector<16x32xf32>
    %152 = vector.extract_strided_slice %10 {offsets = [3, 0], sizes = [1, 32], strides = [1, 1]} : vector<10x160xf32> to vector<1x32xf32>
    %153 = vector.broadcast %152 : vector<1x32xf32> to vector<16x32xf32>
    %154 = arith.addf %151, %153 : vector<16x32xf32>
    %155 = arith.addf %136, %154 : vector<16x32xf32>
    %cst_47 = arith.constant dense<0.000000e+00> : vector<16xf32>
    %156 = vector.multi_reduction <add>, %155, %cst_47 [1] : vector<16x32xf32> to vector<16xf32>
    %157 = vector.shape_cast %156 : vector<16xf32> to vector<16x1xf32>
    %cst_48 = arith.constant 3.200000e+01 : f32
    %158 = vector.broadcast %cst_48 : f32 to vector<16x1xf32>
    %159 = arith.divf %157, %158 : vector<16x1xf32>
    %160 = vector.broadcast %159 : vector<16x1xf32> to vector<16x32xf32>
    %161 = arith.subf %155, %160 : vector<16x32xf32>
    %162 = arith.mulf %161, %161 : vector<16x32xf32>
    %cst_49 = arith.constant dense<0.000000e+00> : vector<16xf32>
    %163 = vector.multi_reduction <add>, %162, %cst_49 [1] : vector<16x32xf32> to vector<16xf32>
    %164 = vector.shape_cast %163 : vector<16xf32> to vector<16x1xf32>
    %cst_50 = arith.constant 3.200000e+01 : f32
    %165 = vector.broadcast %cst_50 : f32 to vector<16x1xf32>
    %166 = arith.divf %164, %165 : vector<16x1xf32>
    %167 = vector.broadcast %159 : vector<16x1xf32> to vector<16x32xf32>
    %168 = arith.subf %155, %167 : vector<16x32xf32>
    %cst_51 = arith.constant 9.99999974E-6 : f32
    %169 = vector.broadcast %cst_51 : f32 to vector<16x1xf32>
    %170 = arith.addf %166, %169 : vector<16x1xf32>
    %171 = math.rsqrt %170 : vector<16x1xf32>
    %172 = vector.broadcast %171 : vector<16x1xf32> to vector<16x32xf32>
    %173 = arith.mulf %168, %172 : vector<16x32xf32>
    %174 = vector.extract_strided_slice %10 {offsets = [8, 0], sizes = [1, 32], strides = [1, 1]} : vector<10x160xf32> to vector<1x32xf32>
    %175 = vector.broadcast %174 : vector<1x32xf32> to vector<16x32xf32>
    %176 = arith.mulf %173, %175 : vector<16x32xf32>
    %177 = vector.extract_strided_slice %10 {offsets = [9, 0], sizes = [1, 32], strides = [1, 1]} : vector<10x160xf32> to vector<1x32xf32>
    %178 = vector.broadcast %177 : vector<1x32xf32> to vector<16x32xf32>
    %179 = arith.addf %176, %178 : vector<16x32xf32>
    %180 = vector.extract_strided_slice %6 {offsets = [0, 224], sizes = [32, 32], strides = [1, 1]} : vector<32x416xf32> to vector<32x32xf32>
    %cst_52 = arith.constant dense<0.000000e+00> : vector<16x32xf32>
    %181 = tpu.matmul %179, %180, %cst_52 {dimension_numbers = #tpu.dot_dimension_numbers<[1], [0], [0], [1], [0, 0, 1, 1], [], []>} : vector<16x32xf32>, vector<32x32xf32>, vector<16x32xf32> -> vector<16x32xf32>
    %182 = vector.extract_strided_slice %10 {offsets = [4, 0], sizes = [1, 32], strides = [1, 1]} : vector<10x160xf32> to vector<1x32xf32>
    %183 = vector.broadcast %182 : vector<1x32xf32> to vector<16x32xf32>
    %184 = arith.addf %181, %183 : vector<16x32xf32>
    %185 = arith.addf %179, %184 : vector<16x32xf32>
    %cst_53 = arith.constant dense<0.000000e+00> : vector<16xf32>
    %186 = vector.multi_reduction <add>, %185, %cst_53 [1] : vector<16x32xf32> to vector<16xf32>
    %187 = vector.shape_cast %186 : vector<16xf32> to vector<16x1xf32>
    %cst_54 = arith.constant 3.200000e+01 : f32
    %188 = vector.broadcast %cst_54 : f32 to vector<16x1xf32>
    %189 = arith.divf %187, %188 : vector<16x1xf32>
    %190 = vector.broadcast %189 : vector<16x1xf32> to vector<16x32xf32>
    %191 = arith.subf %185, %190 : vector<16x32xf32>
    %192 = arith.mulf %191, %191 : vector<16x32xf32>
    %cst_55 = arith.constant dense<0.000000e+00> : vector<16xf32>
    %193 = vector.multi_reduction <add>, %192, %cst_55 [1] : vector<16x32xf32> to vector<16xf32>
    %194 = vector.shape_cast %193 : vector<16xf32> to vector<16x1xf32>
    %cst_56 = arith.constant 3.200000e+01 : f32
    %195 = vector.broadcast %cst_56 : f32 to vector<16x1xf32>
    %196 = arith.divf %194, %195 : vector<16x1xf32>
    %197 = vector.broadcast %189 : vector<16x1xf32> to vector<16x32xf32>
    %198 = arith.subf %185, %197 : vector<16x32xf32>
    %cst_57 = arith.constant 9.99999974E-6 : f32
    %199 = vector.broadcast %cst_57 : f32 to vector<16x1xf32>
    %200 = arith.addf %196, %199 : vector<16x1xf32>
    %201 = math.rsqrt %200 : vector<16x1xf32>
    %202 = vector.broadcast %201 : vector<16x1xf32> to vector<16x32xf32>
    %203 = arith.mulf %198, %202 : vector<16x32xf32>
    %204 = vector.extract_strided_slice %6 {offsets = [0, 256], sizes = [32, 128], strides = [1, 1]} : vector<32x416xf32> to vector<32x128xf32>
    %cst_58 = arith.constant dense<0.000000e+00> : vector<16x128xf32>
    %205 = tpu.matmul %203, %204, %cst_58 {dimension_numbers = #tpu.dot_dimension_numbers<[1], [0], [0], [1], [0, 0, 1, 1], [], []>} : vector<16x32xf32>, vector<32x128xf32>, vector<16x128xf32> -> vector<16x128xf32>
    %206 = vector.extract_strided_slice %10 {offsets = [1, 0], sizes = [1, 128], strides = [1, 1]} : vector<10x160xf32> to vector<1x128xf32>
    %207 = vector.broadcast %206 : vector<1x128xf32> to vector<16x128xf32>
    %208 = arith.addf %205, %207 : vector<16x128xf32>
    %cst_59 = arith.constant 5.000000e-01 : f32
    %209 = vector.broadcast %cst_59 : f32 to vector<16x128xf32>
    %210 = arith.mulf %209, %208 : vector<16x128xf32>
    %cst_60 = arith.constant 0.707106769 : f32
    %211 = vector.broadcast %cst_60 : f32 to vector<16x128xf32>
    %212 = arith.mulf %208, %211 : vector<16x128xf32>
    %213 = math.erf %212 : vector<16x128xf32>
    %cst_61 = arith.constant 1.000000e+00 : f32
    %214 = vector.broadcast %cst_61 : f32 to vector<16x128xf32>
    %215 = arith.addf %214, %213 : vector<16x128xf32>
    %216 = arith.mulf %210, %215 : vector<16x128xf32>
    %217 = vector.extract_strided_slice %8 {offsets = [64, 0], sizes = [128, 32], strides = [1, 1]} : vector<192x32xf32> to vector<128x32xf32>
    %cst_62 = arith.constant dense<0.000000e+00> : vector<16x32xf32>
    %218 = tpu.matmul %216, %217, %cst_62 {dimension_numbers = #tpu.dot_dimension_numbers<[1], [0], [0], [1], [0, 0, 1, 1], [], []>} : vector<16x128xf32>, vector<128x32xf32>, vector<16x32xf32> -> vector<16x32xf32>
    %219 = vector.extract_strided_slice %10 {offsets = [5, 0], sizes = [1, 32], strides = [1, 1]} : vector<10x160xf32> to vector<1x32xf32>
    %220 = vector.broadcast %219 : vector<1x32xf32> to vector<16x32xf32>
    %221 = arith.addf %218, %220 : vector<16x32xf32>
    %222 = arith.addf %112, %221 : vector<16x32xf32>
    %c1_63 = arith.constant 1 : index
    %c0_64 = arith.constant 0 : index
    %c0_65 = arith.constant 0 : index
    %223 = vector.load %arg2[%c1_63, %c0_64, %c0_65] : memref<2x32x416xf32, #tpu.memory_space<vmem>>, vector<1x32x416xf32>
    %224 = vector.shape_cast %223 : vector<1x32x416xf32> to vector<32x416xf32>
    %c1_66 = arith.constant 1 : index
    %c0_67 = arith.constant 0 : index
    %c0_68 = arith.constant 0 : index
    %225 = vector.load %arg3[%c1_66, %c0_67, %c0_68] : memref<2x192x32xf32, #tpu.memory_space<vmem>>, vector<1x192x32xf32>
    %226 = vector.shape_cast %225 : vector<1x192x32xf32> to vector<192x32xf32>
    %c1_69 = arith.constant 1 : index
    %c0_70 = arith.constant 0 : index
    %c0_71 = arith.constant 0 : index
    %227 = vector.load %arg4[%c1_69, %c0_70, %c0_71] : memref<2x10x160xf32, #tpu.memory_space<vmem>>, vector<1x10x160xf32>
    %228 = vector.shape_cast %227 : vector<1x10x160xf32> to vector<10x160xf32>
    %cst_72 = arith.constant dense<0.000000e+00> : vector<16xf32>
    %229 = vector.multi_reduction <add>, %222, %cst_72 [1] : vector<16x32xf32> to vector<16xf32>
    %230 = vector.shape_cast %229 : vector<16xf32> to vector<16x1xf32>
    %cst_73 = arith.constant 3.200000e+01 : f32
    %231 = vector.broadcast %cst_73 : f32 to vector<16x1xf32>
    %232 = arith.divf %230, %231 : vector<16x1xf32>
    %233 = vector.broadcast %232 : vector<16x1xf32> to vector<16x32xf32>
    %234 = arith.subf %222, %233 : vector<16x32xf32>
    %235 = arith.mulf %234, %234 : vector<16x32xf32>
    %cst_74 = arith.constant dense<0.000000e+00> : vector<16xf32>
    %236 = vector.multi_reduction <add>, %235, %cst_74 [1] : vector<16x32xf32> to vector<16xf32>
    %237 = vector.shape_cast %236 : vector<16xf32> to vector<16x1xf32>
    %cst_75 = arith.constant 3.200000e+01 : f32
    %238 = vector.broadcast %cst_75 : f32 to vector<16x1xf32>
    %239 = arith.divf %237, %238 : vector<16x1xf32>
    %240 = vector.broadcast %232 : vector<16x1xf32> to vector<16x32xf32>
    %241 = arith.subf %222, %240 : vector<16x32xf32>
    %cst_76 = arith.constant 9.99999974E-6 : f32
    %242 = vector.broadcast %cst_76 : f32 to vector<16x1xf32>
    %243 = arith.addf %239, %242 : vector<16x1xf32>
    %244 = math.rsqrt %243 : vector<16x1xf32>
    %245 = vector.broadcast %244 : vector<16x1xf32> to vector<16x32xf32>
    %246 = arith.mulf %241, %245 : vector<16x32xf32>
    %247 = vector.extract_strided_slice %224 {offsets = [0, 0], sizes = [32, 160], strides = [1, 1]} : vector<32x416xf32> to vector<32x160xf32>
    %cst_77 = arith.constant dense<0.000000e+00> : vector<16x160xf32>
    %248 = tpu.matmul %246, %247, %cst_77 {dimension_numbers = #tpu.dot_dimension_numbers<[1], [0], [0], [1], [0, 0, 1, 1], [], []>} : vector<16x32xf32>, vector<32x160xf32>, vector<16x160xf32> -> vector<16x160xf32>
    %249 = vector.extract_strided_slice %228 {offsets = [0, 0], sizes = [1, 160], strides = [1, 1]} : vector<10x160xf32> to vector<1x160xf32>
    %250 = vector.broadcast %249 : vector<1x160xf32> to vector<16x160xf32>
    %251 = arith.addf %248, %250 : vector<16x160xf32>
    %252 = vector.extract_strided_slice %251 {offsets = [0, 0], sizes = [16, 64], strides = [1, 1]} : vector<16x160xf32> to vector<16x64xf32>
    %253 = arith.mulf %252, %2 : vector<16x64xf32>
    %254 = vector.extract_strided_slice %251 {offsets = [0, 96], sizes = [16, 64], strides = [1, 1]} : vector<16x160xf32> to vector<16x64xf32>
    %255 = arith.mulf %254, %4 : vector<16x64xf32>
    %256 = arith.addf %253, %255 : vector<16x64xf32>
    %257 = vector.extract_strided_slice %256 {offsets = [0, 0], sizes = [16, 32], strides = [1, 1]} : vector<16x64xf32> to vector<16x32xf32>
    %258 = vector.shape_cast %257 : vector<16x32xf32> to vector<2x8x32xf32>
    %259 = vector.extract_strided_slice %256 {offsets = [0, 32], sizes = [16, 32], strides = [1, 1]} : vector<16x64xf32> to vector<16x32xf32>
    %260 = vector.shape_cast %259 : vector<16x32xf32> to vector<2x8x32xf32>
    %261 = vector.extract_strided_slice %251 {offsets = [0, 64], sizes = [16, 32], strides = [1, 1]} : vector<16x160xf32> to vector<16x32xf32>
    %262 = vector.shape_cast %261 : vector<16x32xf32> to vector<2x8x32xf32>
    %263 = vector.extract_strided_slice %258 {offsets = [0, 0, 0], sizes = [2, 8, 8], strides = [1, 1, 1]} : vector<2x8x32xf32> to vector<2x8x8xf32>
    %264 = vector.extract_strided_slice %260 {offsets = [0, 0, 0], sizes = [2, 8, 8], strides = [1, 1, 1]} : vector<2x8x32xf32> to vector<2x8x8xf32>
    "tpu.trace_start"() <{level = 10 : i32, message = "bsd,btd->bst"}> : () -> ()
    %cst_78 = arith.constant dense<0.000000e+00> : vector<2x8x8xf32>
    %265 = tpu.matmul %263, %264, %cst_78 {dimension_numbers = #tpu.dot_dimension_numbers<[2], [2], [1], [1], [0, 0, 0, 1, 1, 1], [0], [0]>} : vector<2x8x8xf32>, vector<2x8x8xf32>, vector<2x8x8xf32> -> vector<2x8x8xf32>
    "tpu.trace_stop"() : () -> ()
    %cst_79 = arith.constant dense<0xFF800000> : vector<2x8xf32>
    %266 = vector.multi_reduction <maximumf>, %265, %cst_79 [2] : vector<2x8x8xf32> to vector<2x8xf32>
    %267 = vector.shape_cast %266 : vector<2x8xf32> to vector<2x8x1xf32>
    %268 = vector.broadcast %267 : vector<2x8x1xf32> to vector<2x8x8xf32>
    %269 = arith.subf %265, %268 : vector<2x8x8xf32>
    %270 = math.exp %269 : vector<2x8x8xf32>
    %cst_80 = arith.constant dense<0.000000e+00> : vector<2x8xf32>
    %271 = vector.multi_reduction <add>, %270, %cst_80 [2] : vector<2x8x8xf32> to vector<2x8xf32>
    %272 = vector.shape_cast %271 : vector<2x8xf32> to vector<2x8x1xf32>
    %273 = tpu.reciprocal %272 {approx = true} : vector<2x8x1xf32> -> vector<2x8x1xf32>
    %274 = vector.broadcast %273 : vector<2x8x1xf32> to vector<2x8x8xf32>
    %275 = arith.mulf %270, %274 : vector<2x8x8xf32>
    %276 = vector.extract_strided_slice %262 {offsets = [0, 0, 0], sizes = [2, 8, 8], strides = [1, 1, 1]} : vector<2x8x32xf32> to vector<2x8x8xf32>
    "tpu.trace_start"() <{level = 10 : i32, message = "bst,btd->bsd"}> : () -> ()
    %cst_81 = arith.constant dense<0.000000e+00> : vector<2x8x8xf32>
    %277 = tpu.matmul %275, %276, %cst_81 {dimension_numbers = #tpu.dot_dimension_numbers<[2], [1], [1], [2], [0, 0, 0, 1, 1, 2], [0], [0]>} : vector<2x8x8xf32>, vector<2x8x8xf32>, vector<2x8x8xf32> -> vector<2x8x8xf32>
    "tpu.trace_stop"() : () -> ()
    %278 = vector.shape_cast %277 : vector<2x8x8xf32> to vector<16x8xf32>
    %279 = vector.extract_strided_slice %258 {offsets = [0, 0, 8], sizes = [2, 8, 8], strides = [1, 1, 1]} : vector<2x8x32xf32> to vector<2x8x8xf32>
    %280 = vector.extract_strided_slice %260 {offsets = [0, 0, 8], sizes = [2, 8, 8], strides = [1, 1, 1]} : vector<2x8x32xf32> to vector<2x8x8xf32>
    "tpu.trace_start"() <{level = 10 : i32, message = "bsd,btd->bst"}> : () -> ()
    %cst_82 = arith.constant dense<0.000000e+00> : vector<2x8x8xf32>
    %281 = tpu.matmul %279, %280, %cst_82 {dimension_numbers = #tpu.dot_dimension_numbers<[2], [2], [1], [1], [0, 0, 0, 1, 1, 1], [0], [0]>} : vector<2x8x8xf32>, vector<2x8x8xf32>, vector<2x8x8xf32> -> vector<2x8x8xf32>
    "tpu.trace_stop"() : () -> ()
    %cst_83 = arith.constant dense<0xFF800000> : vector<2x8xf32>
    %282 = vector.multi_reduction <maximumf>, %281, %cst_83 [2] : vector<2x8x8xf32> to vector<2x8xf32>
    %283 = vector.shape_cast %282 : vector<2x8xf32> to vector<2x8x1xf32>
    %284 = vector.broadcast %283 : vector<2x8x1xf32> to vector<2x8x8xf32>
    %285 = arith.subf %281, %284 : vector<2x8x8xf32>
    %286 = math.exp %285 : vector<2x8x8xf32>
    %cst_84 = arith.constant dense<0.000000e+00> : vector<2x8xf32>
    %287 = vector.multi_reduction <add>, %286, %cst_84 [2] : vector<2x8x8xf32> to vector<2x8xf32>
    %288 = vector.shape_cast %287 : vector<2x8xf32> to vector<2x8x1xf32>
    %289 = tpu.reciprocal %288 {approx = true} : vector<2x8x1xf32> -> vector<2x8x1xf32>
    %290 = vector.broadcast %289 : vector<2x8x1xf32> to vector<2x8x8xf32>
    %291 = arith.mulf %286, %290 : vector<2x8x8xf32>
    %292 = vector.extract_strided_slice %262 {offsets = [0, 0, 8], sizes = [2, 8, 8], strides = [1, 1, 1]} : vector<2x8x32xf32> to vector<2x8x8xf32>
    "tpu.trace_start"() <{level = 10 : i32, message = "bst,btd->bsd"}> : () -> ()
    %cst_85 = arith.constant dense<0.000000e+00> : vector<2x8x8xf32>
    %293 = tpu.matmul %291, %292, %cst_85 {dimension_numbers = #tpu.dot_dimension_numbers<[2], [1], [1], [2], [0, 0, 0, 1, 1, 2], [0], [0]>} : vector<2x8x8xf32>, vector<2x8x8xf32>, vector<2x8x8xf32> -> vector<2x8x8xf32>
    "tpu.trace_stop"() : () -> ()
    %294 = vector.shape_cast %293 : vector<2x8x8xf32> to vector<16x8xf32>
    %295 = vector.extract_strided_slice %258 {offsets = [0, 0, 16], sizes = [2, 8, 8], strides = [1, 1, 1]} : vector<2x8x32xf32> to vector<2x8x8xf32>
    %296 = vector.extract_strided_slice %260 {offsets = [0, 0, 16], sizes = [2, 8, 8], strides = [1, 1, 1]} : vector<2x8x32xf32> to vector<2x8x8xf32>
    "tpu.trace_start"() <{level = 10 : i32, message = "bsd,btd->bst"}> : () -> ()
    %cst_86 = arith.constant dense<0.000000e+00> : vector<2x8x8xf32>
    %297 = tpu.matmul %295, %296, %cst_86 {dimension_numbers = #tpu.dot_dimension_numbers<[2], [2], [1], [1], [0, 0, 0, 1, 1, 1], [0], [0]>} : vector<2x8x8xf32>, vector<2x8x8xf32>, vector<2x8x8xf32> -> vector<2x8x8xf32>
    "tpu.trace_stop"() : () -> ()
    %cst_87 = arith.constant dense<0xFF800000> : vector<2x8xf32>
    %298 = vector.multi_reduction <maximumf>, %297, %cst_87 [2] : vector<2x8x8xf32> to vector<2x8xf32>
    %299 = vector.shape_cast %298 : vector<2x8xf32> to vector<2x8x1xf32>
    %300 = vector.broadcast %299 : vector<2x8x1xf32> to vector<2x8x8xf32>
    %301 = arith.subf %297, %300 : vector<2x8x8xf32>
    %302 = math.exp %301 : vector<2x8x8xf32>
    %cst_88 = arith.constant dense<0.000000e+00> : vector<2x8xf32>
    %303 = vector.multi_reduction <add>, %302, %cst_88 [2] : vector<2x8x8xf32> to vector<2x8xf32>
    %304 = vector.shape_cast %303 : vector<2x8xf32> to vector<2x8x1xf32>
    %305 = tpu.reciprocal %304 {approx = true} : vector<2x8x1xf32> -> vector<2x8x1xf32>
    %306 = vector.broadcast %305 : vector<2x8x1xf32> to vector<2x8x8xf32>
    %307 = arith.mulf %302, %306 : vector<2x8x8xf32>
    %308 = vector.extract_strided_slice %262 {offsets = [0, 0, 16], sizes = [2, 8, 8], strides = [1, 1, 1]} : vector<2x8x32xf32> to vector<2x8x8xf32>
    "tpu.trace_start"() <{level = 10 : i32, message = "bst,btd->bsd"}> : () -> ()
    %cst_89 = arith.constant dense<0.000000e+00> : vector<2x8x8xf32>
    %309 = tpu.matmul %307, %308, %cst_89 {dimension_numbers = #tpu.dot_dimension_numbers<[2], [1], [1], [2], [0, 0, 0, 1, 1, 2], [0], [0]>} : vector<2x8x8xf32>, vector<2x8x8xf32>, vector<2x8x8xf32> -> vector<2x8x8xf32>
    "tpu.trace_stop"() : () -> ()
    %310 = vector.shape_cast %309 : vector<2x8x8xf32> to vector<16x8xf32>
    %311 = vector.extract_strided_slice %258 {offsets = [0, 0, 24], sizes = [2, 8, 8], strides = [1, 1, 1]} : vector<2x8x32xf32> to vector<2x8x8xf32>
    %312 = vector.extract_strided_slice %260 {offsets = [0, 0, 24], sizes = [2, 8, 8], strides = [1, 1, 1]} : vector<2x8x32xf32> to vector<2x8x8xf32>
    "tpu.trace_start"() <{level = 10 : i32, message = "bsd,btd->bst"}> : () -> ()
    %cst_90 = arith.constant dense<0.000000e+00> : vector<2x8x8xf32>
    %313 = tpu.matmul %311, %312, %cst_90 {dimension_numbers = #tpu.dot_dimension_numbers<[2], [2], [1], [1], [0, 0, 0, 1, 1, 1], [0], [0]>} : vector<2x8x8xf32>, vector<2x8x8xf32>, vector<2x8x8xf32> -> vector<2x8x8xf32>
    "tpu.trace_stop"() : () -> ()
    %cst_91 = arith.constant dense<0xFF800000> : vector<2x8xf32>
    %314 = vector.multi_reduction <maximumf>, %313, %cst_91 [2] : vector<2x8x8xf32> to vector<2x8xf32>
    %315 = vector.shape_cast %314 : vector<2x8xf32> to vector<2x8x1xf32>
    %316 = vector.broadcast %315 : vector<2x8x1xf32> to vector<2x8x8xf32>
    %317 = arith.subf %313, %316 : vector<2x8x8xf32>
    %318 = math.exp %317 : vector<2x8x8xf32>
    %cst_92 = arith.constant dense<0.000000e+00> : vector<2x8xf32>
    %319 = vector.multi_reduction <add>, %318, %cst_92 [2] : vector<2x8x8xf32> to vector<2x8xf32>
    %320 = vector.shape_cast %319 : vector<2x8xf32> to vector<2x8x1xf32>
    %321 = tpu.reciprocal %320 {approx = true} : vector<2x8x1xf32> -> vector<2x8x1xf32>
    %322 = vector.broadcast %321 : vector<2x8x1xf32> to vector<2x8x8xf32>
    %323 = arith.mulf %318, %322 : vector<2x8x8xf32>
    %324 = vector.extract_strided_slice %262 {offsets = [0, 0, 24], sizes = [2, 8, 8], strides = [1, 1, 1]} : vector<2x8x32xf32> to vector<2x8x8xf32>
    "tpu.trace_start"() <{level = 10 : i32, message = "bst,btd->bsd"}> : () -> ()
    %cst_93 = arith.constant dense<0.000000e+00> : vector<2x8x8xf32>
    %325 = tpu.matmul %323, %324, %cst_93 {dimension_numbers = #tpu.dot_dimension_numbers<[2], [1], [1], [2], [0, 0, 0, 1, 1, 2], [0], [0]>} : vector<2x8x8xf32>, vector<2x8x8xf32>, vector<2x8x8xf32> -> vector<2x8x8xf32>
    "tpu.trace_stop"() : () -> ()
    %326 = vector.shape_cast %325 : vector<2x8x8xf32> to vector<16x8xf32>
    %327 = tpu.concatenate %278, %294, %310, %326 in 1 : vector<16x8xf32>, vector<16x8xf32>, vector<16x8xf32>, vector<16x8xf32> -> vector<16x32xf32>
    %328 = vector.extract_strided_slice %224 {offsets = [0, 384], sizes = [32, 32], strides = [1, 1]} : vector<32x416xf32> to vector<32x32xf32>
    %cst_94 = arith.constant dense<0.000000e+00> : vector<16x32xf32>
    %329 = tpu.matmul %327, %328, %cst_94 {dimension_numbers = #tpu.dot_dimension_numbers<[1], [0], [0], [1], [0, 0, 1, 1], [], []>} : vector<16x32xf32>, vector<32x32xf32>, vector<16x32xf32> -> vector<16x32xf32>
    %330 = arith.addf %222, %329 : vector<16x32xf32>
    %cst_95 = arith.constant dense<0.000000e+00> : vector<16xf32>
    %331 = vector.multi_reduction <add>, %330, %cst_95 [1] : vector<16x32xf32> to vector<16xf32>
    %332 = vector.shape_cast %331 : vector<16xf32> to vector<16x1xf32>
    %cst_96 = arith.constant 3.200000e+01 : f32
    %333 = vector.broadcast %cst_96 : f32 to vector<16x1xf32>
    %334 = arith.divf %332, %333 : vector<16x1xf32>
    %335 = vector.broadcast %334 : vector<16x1xf32> to vector<16x32xf32>
    %336 = arith.subf %330, %335 : vector<16x32xf32>
    %337 = arith.mulf %336, %336 : vector<16x32xf32>
    %cst_97 = arith.constant dense<0.000000e+00> : vector<16xf32>
    %338 = vector.multi_reduction <add>, %337, %cst_97 [1] : vector<16x32xf32> to vector<16xf32>
    %339 = vector.shape_cast %338 : vector<16xf32> to vector<16x1xf32>
    %cst_98 = arith.constant 3.200000e+01 : f32
    %340 = vector.broadcast %cst_98 : f32 to vector<16x1xf32>
    %341 = arith.divf %339, %340 : vector<16x1xf32>
    %342 = vector.broadcast %334 : vector<16x1xf32> to vector<16x32xf32>
    %343 = arith.subf %330, %342 : vector<16x32xf32>
    %cst_99 = arith.constant 9.99999974E-6 : f32
    %344 = vector.broadcast %cst_99 : f32 to vector<16x1xf32>
    %345 = arith.addf %341, %344 : vector<16x1xf32>
    %346 = math.rsqrt %345 : vector<16x1xf32>
    %347 = vector.broadcast %346 : vector<16x1xf32> to vector<16x32xf32>
    %348 = arith.mulf %343, %347 : vector<16x32xf32>
    %349 = vector.extract_strided_slice %228 {offsets = [6, 0], sizes = [1, 32], strides = [1, 1]} : vector<10x160xf32> to vector<1x32xf32>
    %350 = vector.broadcast %349 : vector<1x32xf32> to vector<16x32xf32>
    %351 = arith.mulf %348, %350 : vector<16x32xf32>
    %352 = vector.extract_strided_slice %228 {offsets = [7, 0], sizes = [1, 32], strides = [1, 1]} : vector<10x160xf32> to vector<1x32xf32>
    %353 = vector.broadcast %352 : vector<1x32xf32> to vector<16x32xf32>
    %354 = arith.addf %351, %353 : vector<16x32xf32>
    %355 = vector.extract_strided_slice %224 {offsets = [0, 160], sizes = [32, 64], strides = [1, 1]} : vector<32x416xf32> to vector<32x64xf32>
    %cst_100 = arith.constant dense<0.000000e+00> : vector<16x64xf32>
    %356 = tpu.matmul %354, %355, %cst_100 {dimension_numbers = #tpu.dot_dimension_numbers<[1], [0], [0], [1], [0, 0, 1, 1], [], []>} : vector<16x32xf32>, vector<32x64xf32>, vector<16x64xf32> -> vector<16x64xf32>
    %357 = vector.extract_strided_slice %228 {offsets = [2, 0], sizes = [1, 64], strides = [1, 1]} : vector<10x160xf32> to vector<1x64xf32>
    %358 = vector.broadcast %357 : vector<1x64xf32> to vector<16x64xf32>
    %359 = arith.addf %356, %358 : vector<16x64xf32>
    %cst_101 = arith.constant 5.000000e-01 : f32
    %360 = vector.broadcast %cst_101 : f32 to vector<16x64xf32>
    %361 = arith.mulf %360, %359 : vector<16x64xf32>
    %cst_102 = arith.constant 0.707106769 : f32
    %362 = vector.broadcast %cst_102 : f32 to vector<16x64xf32>
    %363 = arith.mulf %359, %362 : vector<16x64xf32>
    %364 = math.erf %363 : vector<16x64xf32>
    %cst_103 = arith.constant 1.000000e+00 : f32
    %365 = vector.broadcast %cst_103 : f32 to vector<16x64xf32>
    %366 = arith.addf %365, %364 : vector<16x64xf32>
    %367 = arith.mulf %361, %366 : vector<16x64xf32>
    %368 = vector.extract_strided_slice %226 {offsets = [0, 0], sizes = [64, 32], strides = [1, 1]} : vector<192x32xf32> to vector<64x32xf32>
    %cst_104 = arith.constant dense<0.000000e+00> : vector<16x32xf32>
    %369 = tpu.matmul %367, %368, %cst_104 {dimension_numbers = #tpu.dot_dimension_numbers<[1], [0], [0], [1], [0, 0, 1, 1], [], []>} : vector<16x64xf32>, vector<64x32xf32>, vector<16x32xf32> -> vector<16x32xf32>
    %370 = vector.extract_strided_slice %228 {offsets = [3, 0], sizes = [1, 32], strides = [1, 1]} : vector<10x160xf32> to vector<1x32xf32>
    %371 = vector.broadcast %370 : vector<1x32xf32> to vector<16x32xf32>
    %372 = arith.addf %369, %371 : vector<16x32xf32>
    %373 = arith.addf %354, %372 : vector<16x32xf32>
    %cst_105 = arith.constant dense<0.000000e+00> : vector<16xf32>
    %374 = vector.multi_reduction <add>, %373, %cst_105 [1] : vector<16x32xf32> to vector<16xf32>
    %375 = vector.shape_cast %374 : vector<16xf32> to vector<16x1xf32>
    %cst_106 = arith.constant 3.200000e+01 : f32
    %376 = vector.broadcast %cst_106 : f32 to vector<16x1xf32>
    %377 = arith.divf %375, %376 : vector<16x1xf32>
    %378 = vector.broadcast %377 : vector<16x1xf32> to vector<16x32xf32>
    %379 = arith.subf %373, %378 : vector<16x32xf32>
    %380 = arith.mulf %379, %379 : vector<16x32xf32>
    %cst_107 = arith.constant dense<0.000000e+00> : vector<16xf32>
    %381 = vector.multi_reduction <add>, %380, %cst_107 [1] : vector<16x32xf32> to vector<16xf32>
    %382 = vector.shape_cast %381 : vector<16xf32> to vector<16x1xf32>
    %cst_108 = arith.constant 3.200000e+01 : f32
    %383 = vector.broadcast %cst_108 : f32 to vector<16x1xf32>
    %384 = arith.divf %382, %383 : vector<16x1xf32>
    %385 = vector.broadcast %377 : vector<16x1xf32> to vector<16x32xf32>
    %386 = arith.subf %373, %385 : vector<16x32xf32>
    %cst_109 = arith.constant 9.99999974E-6 : f32
    %387 = vector.broadcast %cst_109 : f32 to vector<16x1xf32>
    %388 = arith.addf %384, %387 : vector<16x1xf32>
    %389 = math.rsqrt %388 : vector<16x1xf32>
    %390 = vector.broadcast %389 : vector<16x1xf32> to vector<16x32xf32>
    %391 = arith.mulf %386, %390 : vector<16x32xf32>
    %392 = vector.extract_strided_slice %228 {offsets = [8, 0], sizes = [1, 32], strides = [1, 1]} : vector<10x160xf32> to vector<1x32xf32>
    %393 = vector.broadcast %392 : vector<1x32xf32> to vector<16x32xf32>
    %394 = arith.mulf %391, %393 : vector<16x32xf32>
    %395 = vector.extract_strided_slice %228 {offsets = [9, 0], sizes = [1, 32], strides = [1, 1]} : vector<10x160xf32> to vector<1x32xf32>
    %396 = vector.broadcast %395 : vector<1x32xf32> to vector<16x32xf32>
    %397 = arith.addf %394, %396 : vector<16x32xf32>
    %398 = vector.extract_strided_slice %224 {offsets = [0, 224], sizes = [32, 32], strides = [1, 1]} : vector<32x416xf32> to vector<32x32xf32>
    %cst_110 = arith.constant dense<0.000000e+00> : vector<16x32xf32>
    %399 = tpu.matmul %397, %398, %cst_110 {dimension_numbers = #tpu.dot_dimension_numbers<[1], [0], [0], [1], [0, 0, 1, 1], [], []>} : vector<16x32xf32>, vector<32x32xf32>, vector<16x32xf32> -> vector<16x32xf32>
    %400 = vector.extract_strided_slice %228 {offsets = [4, 0], sizes = [1, 32], strides = [1, 1]} : vector<10x160xf32> to vector<1x32xf32>
    %401 = vector.broadcast %400 : vector<1x32xf32> to vector<16x32xf32>
    %402 = arith.addf %399, %401 : vector<16x32xf32>
    %403 = arith.addf %397, %402 : vector<16x32xf32>
    %cst_111 = arith.constant dense<0.000000e+00> : vector<16xf32>
    %404 = vector.multi_reduction <add>, %403, %cst_111 [1] : vector<16x32xf32> to vector<16xf32>
    %405 = vector.shape_cast %404 : vector<16xf32> to vector<16x1xf32>
    %cst_112 = arith.constant 3.200000e+01 : f32
    %406 = vector.broadcast %cst_112 : f32 to vector<16x1xf32>
    %407 = arith.divf %405, %406 : vector<16x1xf32>
    %408 = vector.broadcast %407 : vector<16x1xf32> to vector<16x32xf32>
    %409 = arith.subf %403, %408 : vector<16x32xf32>
    %410 = arith.mulf %409, %409 : vector<16x32xf32>
    %cst_113 = arith.constant dense<0.000000e+00> : vector<16xf32>
    %411 = vector.multi_reduction <add>, %410, %cst_113 [1] : vector<16x32xf32> to vector<16xf32>
    %412 = vector.shape_cast %411 : vector<16xf32> to vector<16x1xf32>
    %cst_114 = arith.constant 3.200000e+01 : f32
    %413 = vector.broadcast %cst_114 : f32 to vector<16x1xf32>
    %414 = arith.divf %412, %413 : vector<16x1xf32>
    %415 = vector.broadcast %407 : vector<16x1xf32> to vector<16x32xf32>
    %416 = arith.subf %403, %415 : vector<16x32xf32>
    %cst_115 = arith.constant 9.99999974E-6 : f32
    %417 = vector.broadcast %cst_115 : f32 to vector<16x1xf32>
    %418 = arith.addf %414, %417 : vector<16x1xf32>
    %419 = math.rsqrt %418 : vector<16x1xf32>
    %420 = vector.broadcast %419 : vector<16x1xf32> to vector<16x32xf32>
    %421 = arith.mulf %416, %420 : vector<16x32xf32>
    %422 = vector.extract_strided_slice %224 {offsets = [0, 256], sizes = [32, 128], strides = [1, 1]} : vector<32x416xf32> to vector<32x128xf32>
    %cst_116 = arith.constant dense<0.000000e+00> : vector<16x128xf32>
    %423 = tpu.matmul %421, %422, %cst_116 {dimension_numbers = #tpu.dot_dimension_numbers<[1], [0], [0], [1], [0, 0, 1, 1], [], []>} : vector<16x32xf32>, vector<32x128xf32>, vector<16x128xf32> -> vector<16x128xf32>
    %424 = vector.extract_strided_slice %228 {offsets = [1, 0], sizes = [1, 128], strides = [1, 1]} : vector<10x160xf32> to vector<1x128xf32>
    %425 = vector.broadcast %424 : vector<1x128xf32> to vector<16x128xf32>
    %426 = arith.addf %423, %425 : vector<16x128xf32>
    %cst_117 = arith.constant 5.000000e-01 : f32
    %427 = vector.broadcast %cst_117 : f32 to vector<16x128xf32>
    %428 = arith.mulf %427, %426 : vector<16x128xf32>
    %cst_118 = arith.constant 0.707106769 : f32
    %429 = vector.broadcast %cst_118 : f32 to vector<16x128xf32>
    %430 = arith.mulf %426, %429 : vector<16x128xf32>
    %431 = math.erf %430 : vector<16x128xf32>
    %cst_119 = arith.constant 1.000000e+00 : f32
    %432 = vector.broadcast %cst_119 : f32 to vector<16x128xf32>
    %433 = arith.addf %432, %431 : vector<16x128xf32>
    %434 = arith.mulf %428, %433 : vector<16x128xf32>
    %435 = vector.extract_strided_slice %226 {offsets = [64, 0], sizes = [128, 32], strides = [1, 1]} : vector<192x32xf32> to vector<128x32xf32>
    %cst_120 = arith.constant dense<0.000000e+00> : vector<16x32xf32>
    %436 = tpu.matmul %434, %435, %cst_120 {dimension_numbers = #tpu.dot_dimension_numbers<[1], [0], [0], [1], [0, 0, 1, 1], [], []>} : vector<16x128xf32>, vector<128x32xf32>, vector<16x32xf32> -> vector<16x32xf32>
    %437 = vector.extract_strided_slice %228 {offsets = [5, 0], sizes = [1, 32], strides = [1, 1]} : vector<10x160xf32> to vector<1x32xf32>
    %438 = vector.broadcast %437 : vector<1x32xf32> to vector<16x32xf32>
    %439 = arith.addf %436, %438 : vector<16x32xf32>
    %440 = arith.addf %330, %439 : vector<16x32xf32>
    %cst_121 = arith.constant dense<0.000000e+00> : vector<16xf32>
    %441 = vector.multi_reduction <add>, %440, %cst_121 [1] : vector<16x32xf32> to vector<16xf32>
    %442 = vector.shape_cast %441 : vector<16xf32> to vector<16x1xf32>
    %cst_122 = arith.constant 3.200000e+01 : f32
    %443 = vector.broadcast %cst_122 : f32 to vector<16x1xf32>
    %444 = arith.divf %442, %443 : vector<16x1xf32>
    %445 = vector.broadcast %444 : vector<16x1xf32> to vector<16x32xf32>
    %446 = arith.subf %440, %445 : vector<16x32xf32>
    %447 = arith.mulf %446, %446 : vector<16x32xf32>
    %cst_123 = arith.constant dense<0.000000e+00> : vector<16xf32>
    %448 = vector.multi_reduction <add>, %447, %cst_123 [1] : vector<16x32xf32> to vector<16xf32>
    %449 = vector.shape_cast %448 : vector<16xf32> to vector<16x1xf32>
    %cst_124 = arith.constant 3.200000e+01 : f32
    %450 = vector.broadcast %cst_124 : f32 to vector<16x1xf32>
    %451 = arith.divf %449, %450 : vector<16x1xf32>
    %452 = vector.broadcast %444 : vector<16x1xf32> to vector<16x32xf32>
    %453 = arith.subf %440, %452 : vector<16x32xf32>
    %cst_125 = arith.constant 9.99999974E-6 : f32
    %454 = vector.broadcast %cst_125 : f32 to vector<16x1xf32>
    %455 = arith.addf %451, %454 : vector<16x1xf32>
    %456 = math.rsqrt %455 : vector<16x1xf32>
    %457 = vector.broadcast %456 : vector<16x1xf32> to vector<16x32xf32>
    %458 = arith.mulf %453, %457 : vector<16x32xf32>
    %c0_126 = arith.constant 0 : index
    %c0_127 = arith.constant 0 : index
    %459 = vector.load %arg5[%c0_126, %c0_127] : memref<32x64xf32, #tpu.memory_space<vmem>>, vector<32x64xf32>
    %cst_128 = arith.constant dense<0.000000e+00> : vector<16x64xf32>
    %460 = tpu.matmul %458, %459, %cst_128 {dimension_numbers = #tpu.dot_dimension_numbers<[1], [0], [0], [1], [0, 0, 1, 1], [], []>} : vector<16x32xf32>, vector<32x64xf32>, vector<16x64xf32> -> vector<16x64xf32>
    %c0_129 = arith.constant 0 : index
    %c0_130 = arith.constant 0 : index
    %461 = vector.load %arg6[%c0_129, %c0_130] : memref<1x64xf32, #tpu.memory_space<vmem>>, vector<1x64xf32>
    %462 = vector.broadcast %461 : vector<1x64xf32> to vector<16x64xf32>
    %463 = arith.addf %460, %462 : vector<16x64xf32>
    %c0_131 = arith.constant 0 : index
    %c0_132 = arith.constant 0 : index
    %464 = vector.load %arg7[%c0_131, %c0_132] : memref<16x64xf32, #tpu.memory_space<vmem>>, vector<16x64xf32>
    tpu.vector_store %arg7[%c0_131, %c0_132], %463 {strides = array<i32>} : memref<16x64xf32, #tpu.memory_space<vmem>>, vector<16x64xf32>,
    return
  }
}

</mosaic_0001>

<bundles_post_ra>
// kernel: tpu_custom_call.1
= control target key start
LH: loop header
LB: loop body
LE: loop exit
PB: predicated region body
PF: predicated region fallthrough
CT: control target
= control target key end

     0   :  { %vm77_vm0 = vcmask 261120   ;;  %s3927_s0 = inlined_call_operand.vmem [shape: f32[16,32], index: 0, kind: input, shape index: {}]   ;;  %s3928_s1 = inlined_call_operand.vmem [shape: f32[2,16,64], index: 1, kind: input, shape index: {}]   ;;  %s3929_s2 = inlined_call_operand.vmem [shape: f32[2,32,416], index: 2, kind: input, shape index: {}]   ;;  %s3930_s3 = inlined_call_operand.vmem [shape: f32[2,192,32], index: 3, kind: input, shape index: {}]   ;;  %s3931_s4 = inlined_call_operand.vmem [shape: f32[2,10,160], index: 4, kind: input, shape index: {}]   ;;  %s3932_s5 = inlined_call_operand.vmem [shape: f32[32,64], index: 5, kind: input, shape index: {}]   ;;  %s3933_s6 = inlined_call_operand.vmem [shape: f32[1,64], index: 6, kind: input, shape index: {}]   ;;  %s3934_s7 = inlined_call_operand.hbm [shape: f32[16,64], index: 7, kind: output, shape index: {}]  }
   0x1   :  { %v3054_v0 = vld [vmem:[%s3927_s0] sm:$0xff] }
   0x2   :  { %v78_v1 = vsel %vm77_vm0, %v3054_v0, 0.0 }
   0x3   :  { %12 = vsyncpa [#allocation3], 0  ;;  %79 = vadd.xlane.f32.xlu0 %v78_v1  ;;  %v3061_v2 = vld [vmem:[%s3927_s0 + $0x8] sm:$0xff]  ;;  %v2993_v4 = vmov 32.0   ;;  %v46_v21 = vld [vmem:[%s3929_s2 + $0x60] sm:$0xff]  ;;  %s2994_s22 = smov 96  }
   0x4   :  { %v81_v3 = vsel %vm77_vm0, %v3061_v2, 0.0  ;;  %2841 = vrcp.f32 %v2993_v4  ;;  %v3079_v22 = vld [vmem:[%s3929_s2 + $0x68] sm:$0xff]  ;;  %149 = vmatpush.msra.mxu0 %v46_v21  ;;  %v42_v23 = vld [vmem:[%s3929_s2 + $0x40] sm:$0xff]  ;;  %v2646_v31 = vld [vmem:[%s3928_s1 + $0x10] sm:$0xff]  ;;  %s2995_s28 = smov 32   ;;  %s2996_s10 = smov 80  }
   0x5   :  { %172 = vmatpush.msra.mxu1 %v3079_v22  ;;  %v3088_v24 = vld [vmem:[%s3929_s2 + $0x48] sm:$0xff]  ;;  %v38_v25 = vld [vmem:[%s3929_s2 + $0x20] sm:$0xff]  ;;  %187 = vrot.lane.b32.xlu2 %v2646_v31, %s2994_s22  ;;  %v2647_v33 = vld [vmem:[%s3928_s1 + $0x18] sm:$0xff]  ;;  %s2997_s11 = smov 120   ;;  %s2998_s12 = smov 104   ;;  %vm218_vm8 = vcmask 64512  }
   0x6   :  { %150 = vmatpush.msra.mxu0 %v42_v23  ;;  %v3097_v26 = vld [vmem:[%s3929_s2 + $0x28] sm:$0xff]  ;;  %v34_v27 = vld [vmem:[%s3929_s2] sm:$0xff]  ;;  %s2999_s13 = smov 72   ;;  %s3000_s14 = smov 88   ;;  %vm762_vm9 = vcmask 130048   ;;  %vm765_vm10 = vcmask 195584  }
   0x7   :  { %173 = vmatpush.msra.mxu1 %v3088_v24  ;;  %v3106_v28 = vld [vmem:[%s3929_s2 + $0x8] sm:$0xff]  ;;  %v3126_v53 = vld [vmem:[%s3931_s4] sm:$0xff]  ;;  %s3001_s15 = smov 64   ;;  %s3002_s16 = smov 112  }
   0x8   :  { %151 = vmatpush.msra.mxu0 %v38_v25  ;;  %v75_v54 = vld [vmem:[%s3931_s4 + $0x8] sm:$0xff]  ;;  %v129_v55 = vperm.slane %v3126_v53, 0  ;;  %s3003_s17 = smov 56   ;;  %s3004_s18 = smov 48  }
   0x9   :  { %174 = vmatpush.msra.mxu1 %v3097_v26  ;;  %v130_v56 = vperm.slane %v75_v54, 0  ;;  %s3005_s19 = smov 40   ;;  %s3006_s20 = smov 8  }
   0xa   :  { %v2842_v5 = vpop.eup %2841  ;;  %152 = vmatpush.msra.mxu0 %v34_v27  ;;  %s3007_s21 = smov 16   ;;  %s3008_s23 = smov 24  }
   0xb   :  { %82 = vadd.xlane.f32.xlu0 %v81_v3  ;;  %v85_v6 = vmul.f32 32.0, %v2842_v5  ;;  %vm89_vm1 = vweird.f32 %v2842_v5  ;;  %175 = vmatpush.msra.mxu1 %v3106_v28 }
   0xd   :  { %v86_v7 = vsub.f32 1.0, %v85_v6  ;;  %189 = vrot.lane.b32.xlu2 %v2647_v33, %s2994_s22 }
   0xf   :  { %v87_v8 = vmul.f32 %v2842_v5, %v86_v7 }
  0x11   :  { %v88_v9 = vadd.f32 %v2842_v5, %v87_v8 }
  0x13   :  { %v3065_v10 = vsel %vm89_vm1, %v2842_v5, %v88_v9 }
  0x5f   :  { %v3132_v57 = vpop.permute.xlu2 %187 }
  0x67   :  { %v3141_v3 = vpop.permute.xlu2 %189 }
  0x76   :  { %v80_v11 = vpop.xlane.xlu0 %79 }
  0x77   :  { %v91_v12 = vmul.f32 %v3065_v10, %v80_v11  ;;  %v30_v11 = vld [vmem:[%s3928_s1 + $0x8] sm:$0xff] }
  0x79   :  { %v93_v13 = vsub.f32 %v3054_v0, %v91_v12 }
  0x7b   :  { %v95_v14 = vmul.f32 %v93_v13, %v93_v13 }
  0x7d   :  { %v97_v15 = vsel %vm77_vm0, %v95_v14, 0.0 }
  0x7e   :  { %98 = vadd.xlane.f32.xlu1 %v97_v15  ;;  %v83_v16 = vpop.xlane.xlu0 %82 }
  0x7f   :  { %v92_v17 = vmul.f32 %v3065_v10, %v83_v16  ;;  %v29_v16 = vld [vmem:[%s3928_s1] sm:$0xff] }
  0x81   :  { %v94_v18 = vsub.f32 %v3061_v2, %v92_v17 }
  0x83   :  { %v96_v19 = vmul.f32 %v94_v18, %v94_v18 }
  0x85   :  { %v100_v20 = vsel %vm77_vm0, %v96_v19, 0.0 }
  0x86   :  { %101 = vadd.xlane.f32.xlu1 %v100_v20 }
  0xf1   :  { %v99_v29 = vpop.xlane.xlu1 %98 }
  0xf2   :  { %v103_v30 = vmul.f32 %v99_v29, %v3065_v10 }
  0xf4   :  { %v105_v32 = vadd.f32 1e-05, %v103_v30 }
  0xf6   :  { %2843 = vrsqrt.f32 %v105_v32  ;;  %vm113_vm3 = vweird.f32 %v105_v32 }
  0xf9   :  { %v102_v34 = vpop.xlane.xlu1 %101 }
  0xfa   :  { %v104_v35 = vmul.f32 %v102_v34, %v3065_v10 }
  0xfc   :  { %v2844_v36 = vpop.eup %2843  ;;  %v106_v37 = vadd.f32 1e-05, %v104_v35 }
  0xfd   :  { %v108_v38 = vmul.f32 %v2844_v36, %v105_v32  ;;  %vm114_vm2 = vweird.f32 %v2844_v36 }
  0xfe   :  { %2845 = vrsqrt.f32 %v106_v37  ;;  %vm115_vm4 = vmor %vm113_vm3, %vm114_vm2  ;;  %vm123_vm5 = vweird.f32 %v106_v37  ;;  %vm984_vm3 = vcmask 523264  }
  0xff   :  { %v109_v39 = vmul.f32 %v2844_v36, %v108_v38 }
 0x101   :  { %v110_v40 = vmul.f32 0.5, %v109_v39 }
 0x103   :  { %v111_v41 = vsub.f32 1.5, %v110_v40 }
 0x104   :  { %v2846_v42 = vpop.eup %2845 }
 0x105   :  { %v118_v43 = vmul.f32 %v2846_v42, %v106_v37  ;;  %v112_v44 = vmul.f32 %v2844_v36, %v111_v41  ;;  %vm124_vm6 = vweird.f32 %v2846_v42 }
 0x106   :  { %vm125_vm7 = vmor %vm123_vm5, %vm124_vm6 }
 0x107   :  { %v119_v45 = vmul.f32 %v2846_v42, %v118_v43  ;;  %v116_v46 = vsel %vm115_vm4, %v2844_v36, %v112_v44 }
 0x108   :  { %v127_v47 = vmul.f32 %v116_v46, %v93_v13 }
 0x109   :  { %v120_v48 = vmul.f32 0.5, %v119_v45 }
 0x10a   :  { %2648 = vmatmul.msk.f32.vlgmr.msra.gmra.mxu0 %vm77_vm0, %v127_v47  ;;  %2650 = vmatmul.msk.f32.vlgmr.msra.gmra.mxu1 %vm77_vm0, %v127_v47 }
 0x10b   :  { %v121_v49 = vsub.f32 1.5, %v120_v48 }
 0x10d   :  { %v122_v50 = vmul.f32 %v2846_v42, %v121_v49 }
 0x10f   :  { %v126_v51 = vsel %vm125_vm7, %v2846_v42, %v122_v50 }
 0x110   :  { %v128_v52 = vmul.f32 %v126_v51, %v94_v18 }
 0x112   :  { %2649 = vmatmul.msk.f32.gmra.mxu0 %vm77_vm0, %v128_v52  ;;  %2651 = vmatmul.msk.f32.gmra.mxu1 %vm77_vm0, %v128_v52 }
 0x187   :  { %v154_v58 = vpop.f32.mrf.mxu0  ;;  %v177_v59 = vpop.f32.mrf.mxu1 }
 0x188   :  { %v3134_v60 = vadd.f32 %v154_v58, %v129_v55  ;;  %v178_v61 = vadd.f32 %v177_v59, %v130_v56 }
 0x18a   :  { %v193_v62 = vmul.f32 %v3132_v57, %v3134_v60  ;;  %v194_v63 = vmul.f32 %v3132_v57, %v178_v61  ;;  %v183_v18 = vmul.f32 %v3134_v60, %v29_v16 }
 0x18c   :  { %201 = vrot.lane.b32.xlu0 %v193_v62, %s2995_s28  ;;  %203 = vrot.lane.b32.xlu1 %v194_v63, %s2995_s28 }
 0x18f   :  { %v157_v1 = vpop.f32.mrf.mxu0  ;;  %v180_v6 = vpop.f32.mrf.mxu1 }
 0x190   :  { %v3143_v4 = vadd.f32 %v157_v1, %v129_v55  ;;  %v181_v7 = vadd.f32 %v180_v6, %v130_v56 }
 0x192   :  { %v195_v5 = vmul.f32 %v3141_v3, %v3143_v4  ;;  %v196_v8 = vmul.f32 %v3141_v3, %v181_v7  ;;  %v184_v13 = vmul.f32 %v3143_v4, %v30_v11 }
 0x194   :  { %205 = vrot.lane.b32.xlu2 %v195_v5, %s2995_s28 }
 0x19c   :  { %207 = vrot.lane.b32.xlu2 %v196_v8, %s2995_s28 }
 0x1ee   :  { %v206_v9 = vpop.permute.xlu2 %205 }
 0x1f6   :  { %v208_v12 = vpop.permute.xlu2 %207 }
 0x1f7   :  { %v210_v14 = vsel %vm77_vm0, %v206_v9, %v208_v12 }
 0x1f8   :  { %v3155_v15 = vadd.f32 %v210_v14, %v184_v13 }
 0x1fa   :  { %244 = vrot.lane.b32.xlu0 %v3155_v15, %s2994_s22 }
 0x1fe   :  { %v204_v17 = vpop.permute.xlu1 %203  ;;  %v202_v19 = vpop.permute.xlu0 %201 }
 0x1ff   :  { %v209_v20 = vsel %vm77_vm0, %v202_v19, %v204_v17 }
 0x200   :  { %v213_v21 = vadd.f32 %v209_v20, %v183_v18 }
 0x202   :  { %478 = vrot.lane.b32.xlu0 %v213_v21, %s2996_s10  ;;  %346 = vrot.lane.b32.xlu1 %v213_v21, %s2997_s11 }
 0x203   :  { %216 = vrot.lane.b32.xlu2 %v213_v21, %s2994_s22 }
 0x20a   :  { %606 = vrot.lane.b32.xlu0 %v213_v21, %s2998_s12  ;;  %608 = vrot.lane.b32.xlu1 %v213_v21, %s2999_s13 }
 0x20b   :  { %348 = vrot.lane.b32.xlu2 %v213_v21, %s3000_s14 }
 0x212   :  { %320 = vrot.lane.b32.xlu0 %v3143_v4, %s3001_s15 }
 0x213   :  { %476 = vrot.lane.b32.xlu2 %v213_v21, %s3002_s16 }
 0x25d   :  { %v217_v23 = vpop.permute.xlu2 %216 }
 0x25e   :  { %2652 = vmatpush.xpose.msk.msra.mxu3 %vm218_vm8, %v217_v23 }
 0x261   :  { %2653 = vmatmul.msk.f32.vlgmr.msra.gmra.mxu3 %vm218_vm8, %v213_v21 }
 0x265   :  { %v349_v25 = vpop.permute.xlu2 %348 }
 0x266   :  { %2658 = vmatpush.xpose.msk.msra.mxu2 %vm218_vm8, %v349_v25 }
 0x26c   :  { %v245_v27 = vpop.permute.xlu0 %244 }
 0x26d   :  { %2654 = vmatpush.xpose.msk.msrb.mxu3 %vm218_vm8, %v245_v27  ;;  %v477_v31 = vpop.permute.xlu2 %476 }
 0x270   :  { %2655 = vmatmul.msk.f32.vlgmr.msrb.gmra.mxu3 %vm218_vm8, %v3155_v15 }
 0x274   :  { %v347_v29 = vpop.permute.xlu1 %346  ;;  %v479_v30 = vpop.permute.xlu0 %478 }
 0x275   :  { %2659 = vmatmul.msk.f32.vlgmr.msra.gmra.mxu2 %vm218_vm8, %v347_v29 }
 0x276   :  { %2664 = vmatpush.xpose.msk.msrb.mxu2 %vm218_vm8, %v479_v30 }
 0x27c   :  { %v609_v32 = vpop.permute.xlu1 %608  ;;  %v607_v33 = vpop.permute.xlu0 %606 }
 0x27d   :  { %2665 = vmatmul.msk.f32.vlgmr.msrb.gmra.mxu2 %vm218_vm8, %v477_v31 }
 0x27e   :  { %2670 = vmatpush.xpose.msk.msra.mxu2 %vm218_vm8, %v609_v32 }
 0x284   :  { %v321_v34 = vpop.permute.xlu0 %320 }
 0x285   :  { %341 = vmatpush.msra.mxu3 %v321_v34  ;;  %2671 = vmatmul.msk.f32.vlgmr.msra.gmra.mxu2 %vm218_vm8, %v607_v33 }
 0x2e4   :  { %v240_v35 = vpop.f32.mrf.mxu3 }
 0x2e5   :  { %v270_v41 = vsel %vm218_vm8, %v240_v35, -inf }
 0x2f3   :  { %v267_v36 = vpop.f32.mrf.mxu3 }
 0x2f4   :  { %v273_v37 = vsel %vm218_vm8, %v267_v36, -inf }
 0x2f5   :  { %274 = vmax.xlane.f32.xlu2 %v273_v37 }
 0x2f8   :  { %v371_v38 = vpop.f32.mrf.mxu2 }
 0x2f9   :  { %v402_v39 = vsel %vm218_vm8, %v371_v38, -inf }
 0x2fa   :  { %403 = vmax.xlane.f32.xlu1 %v402_v39 }
 0x300   :  { %v501_v40 = vpop.f32.mrf.mxu2 }
 0x301   :  { %v532_v42 = vsel %vm218_vm8, %v501_v40, -inf }
 0x302   :  { %271 = vmax.xlane.f32.xlu1 %v270_v41  ;;  %533 = vmax.xlane.f32.xlu0 %v532_v42 }
 0x308   :  { %v631_v43 = vpop.f32.mrf.mxu2 }
 0x309   :  { %v662_v44 = vsel %vm218_vm8, %v631_v43, -inf }
 0x30a   :  { %663 = vmax.xlane.f32.xlu2 %v662_v44 }
 0x316   :  { %374 = vrot.lane.b32.xlu0 %v3155_v15, %s2997_s11 }
 0x31e   :  { %424 = vrot.lane.b32.xlu0 %v3134_v60, %s3003_s17 }
 0x322   :  { %376 = vrot.lane.b32.xlu2 %v3155_v15, %s3000_s14 }
 0x326   :  { %504 = vrot.lane.b32.xlu0 %v3155_v15, %s3002_s16 }
 0x32e   :  { %636 = vrot.lane.b32.xlu0 %v3155_v15, %s2999_s13 }
 0x336   :  { %554 = vrot.lane.b32.xlu0 %v3134_v60, %s3004_s18 }
 0x33e   :  { %634 = vrot.lane.b32.xlu0 %v3155_v15, %s2998_s12 }
 0x346   :  { %684 = vrot.lane.b32.xlu0 %v3134_v60, %s3005_s19 }
 0x34e   :  { %293 = vrot.lane.b32.xlu0 %v3134_v60, %s3001_s15 }
 0x368   :  { %v275_v45 = vpop.xlane.xlu2 %274 }
 0x369   :  { %v277_v48 = vsub.f32 %v267_v36, %v275_v45 }
 0x36b   :  { %v280_v50 = vmul.f32 1.442695, %v277_v48 }
 0x36d   :  { %v404_v46 = vpop.xlane.xlu1 %403 }
 0x36e   :  { %v408_v47 = vsub.f32 %v371_v38, %v404_v46 }
 0x370   :  { %v410_v49 = vmul.f32 1.442695, %v408_v47 }
 0x372   :  { %2847 = vpow2.f32 %v410_v49 }
 0x373   :  { %2849 = vpow2.f32 %v280_v50 }
 0x375   :  { %v534_v51 = vpop.xlane.xlu0 %533  ;;  %v272_v52 = vpop.xlane.xlu1 %271 }
 0x376   :  { %v538_v54 = vsub.f32 %v501_v40, %v534_v51  ;;  %v276_v58 = vsub.f32 %v240_v35, %v272_v52  ;;  %v49_v52 = vld [vmem:[%s3929_s2 + $0x78] sm:$0xff] }
 0x377   :  { %786 = vmatpush.msrb.mxu2 %v49_v52 }
 0x378   :  { %v2848_v55 = vpop.eup %2847  ;;  %v540_v56 = vmul.f32 1.442695, %v538_v54  ;;  %v278_v61 = vmul.f32 1.442695, %v276_v58  ;;  %v45_v54 = vld [vmem:[%s3929_s2 + $0x58] sm:$0xff] }
 0x379   :  { %v414_v59 = vsel %vm218_vm8, %v2848_v55, 0.0  ;;  %v2850_v62 = vpop.eup %2849  ;;  %787 = vmatpush.msrb.mxu2 %v45_v54 }
 0x37a   :  { %415 = vadd.xlane.f32.xlu1 %v414_v59  ;;  %2851 = vpow2.f32 %v540_v56  ;;  %v285_v1 = vsel %vm218_vm8, %v2850_v62, 0.0 }
 0x37b   :  { %2853 = vpow2.f32 %v278_v61  ;;  %v37_v61 = vld [vmem:[%s3929_s2 + $0x18] sm:$0xff] }
 0x37d   :  { %v664_v60 = vpop.xlane.xlu2 %663 }
 0x37e   :  { %v668_v17 = vsub.f32 %v631_v43, %v664_v60 }
 0x380   :  { %v2852_v63 = vpop.eup %2851  ;;  %v670_v18 = vmul.f32 1.442695, %v668_v17 }
 0x381   :  { %v544_v5 = vsel %vm218_vm8, %v2852_v63, 0.0  ;;  %v2854_v7 = vpop.eup %2853 }
 0x382   :  { %286 = vadd.xlane.f32.xlu1 %v285_v1  ;;  %545 = vadd.xlane.f32.xlu2 %v544_v5  ;;  %v282_v9 = vsel %vm218_vm8, %v2854_v7, 0.0  ;;  %2855 = vpow2.f32 %v670_v18 }
 0x385   :  { %v377_v6 = vpop.permute.xlu2 %376 }
 0x386   :  { %2660 = vmatpush.xpose.msk.msrb.mxu3 %vm218_vm8, %v377_v6 }
 0x388   :  { %v375_v8 = vpop.permute.xlu0 %374  ;;  %v2856_v21 = vpop.eup %2855 }
 0x389   :  { %v674_v23 = vsel %vm218_vm8, %v2856_v21, 0.0 }
 0x38a   :  { %283 = vadd.xlane.f32.xlu2 %v282_v9 }
 0x390   :  { %v425_v11 = vpop.permute.xlu0 %424 }
 0x391   :  { %445 = vmatpush.msrb.mxu0 %v425_v11 }
 0x398   :  { %v505_v12 = vpop.permute.xlu0 %504 }
 0x39b   :  { %506 = vrot.lane.b32.xlu1 %v3155_v15, %s2996_s10 }
 0x3a0   :  { %v637_v13 = vpop.permute.xlu0 %636 }
 0x3a8   :  { %v555_v14 = vpop.permute.xlu0 %554 }
 0x3a9   :  { %575 = vmatpush.msra.mxu0 %v555_v14 }
 0x3b0   :  { %v635_v16 = vpop.permute.xlu0 %634 }
 0x3b8   :  { %v685_v19 = vpop.permute.xlu0 %684 }
 0x3c0   :  { %v294_v20 = vpop.permute.xlu0 %293 }
 0x3c1   :  { %314 = vmatpush.msrb.mxu1 %v294_v20 }
 0x3c5   :  { %675 = vadd.xlane.f32.xlu1 %v674_v23 }
 0x3ed   :  { %v416_v25 = vpop.xlane.xlu1 %415 }
 0x3ee   :  { %2857 = vrcp.f32 %v416_v25 }
 0x3f4   :  { %v2858_v27 = vpop.eup %2857 }
 0x3f5   :  { %v287_v29 = vpop.xlane.xlu1 %286  ;;  %v422_v30 = vmul.f32 %v2858_v27, %v2848_v55  ;;  %v546_v15 = vpop.xlane.xlu2 %545  ;;  %v41_v55 = vld [vmem:[%s3929_s2 + $0x38] sm:$0xff] }
 0x3f6   :  { %2859 = vrcp.f32 %v287_v29  ;;  %788 = vmatpush.msrb.mxu2 %v41_v55 }
 0x3f7   :  { %2861 = vrcp.f32 %v546_v15  ;;  %2662 = vmatmul.msk.f32.vlgmr.msrb.gmra.mxu0 %vm218_vm8, %v422_v30 }
 0x3f8   :  { %705 = vmatpush.msrb.mxu0 %v685_v19  ;;  %789 = vmatpush.msrb.mxu2 %v37_v61 }
 0x3fc   :  { %v2860_v31 = vpop.eup %2859 }
 0x3fd   :  { %v2862_v32 = vpop.eup %2861  ;;  %v291_v33 = vmul.f32 %v2860_v31, %v2850_v62  ;;  %v284_v35 = vpop.xlane.xlu2 %283 }
 0x3fe   :  { %v552_v34 = vmul.f32 %v2862_v32, %v2852_v63  ;;  %2863 = vrcp.f32 %v284_v35 }
 0x3ff   :  { %2657 = vmatmul.msk.f32.vlgmr.msra.gmra.mxu3 %vm218_vm8, %v291_v33 }
 0x400   :  { %2668 = vmatmul.msk.f32.vlgmr.msra.gmra.mxu0 %vm218_vm8, %v552_v34 }
 0x404   :  { %v2864_v36 = vpop.eup %2863 }
 0x405   :  { %v290_v37 = vmul.f32 %v2864_v36, %v2854_v7 }
 0x407   :  { %2661 = vmatmul.msk.f32.vlgmr.msrb.gmra.mxu3 %vm218_vm8, %v375_v8  ;;  %2656 = vmatmul.msk.f32.vlgmr.msrb.gmra.mxu1 %vm218_vm8, %v290_v37 }
 0x40d   :  { %v507_v38 = vpop.permute.xlu1 %506 }
 0x40e   :  { %2666 = vmatpush.xpose.msk.msra.mxu3 %vm218_vm8, %v507_v38 }
 0x411   :  { %2667 = vmatmul.msk.f32.vlgmr.msra.gmra.mxu3 %vm218_vm8, %v505_v12 }
 0x412   :  { %2672 = vmatpush.xpose.msk.msrb.mxu3 %vm218_vm8, %v637_v13 }
 0x419   :  { %2673 = vmatmul.msk.f32.vlgmr.msrb.gmra.mxu3 %vm218_vm8, %v635_v16 }
 0x438   :  { %v676_v39 = vpop.xlane.xlu1 %675 }
 0x439   :  { %2865 = vrcp.f32 %v676_v39 }
 0x43f   :  { %v2866_v40 = vpop.eup %2865 }
 0x440   :  { %v682_v41 = vmul.f32 %v2866_v40, %v2856_v21 }
 0x442   :  { %2674 = vmatmul.msk.f32.vlgmr.msrb.gmra.mxu0 %vm218_vm8, %v682_v41 }
 0x474   :  { %v447_v42 = vpop.f32.mrf.mxu0 }
 0x475   :  { %738 = vrot.lane.b32.xlu2 %v447_v42, %s3006_s20 }
 0x47d   :  { %v577_v50 = vpop.f32.mrf.mxu0 }
 0x482   :  { %v3226_v43 = vpop.f32.mrf.mxu3 }
 0x484   :  { %v316_v17 = vpop.f32.mrf.mxu1 }
 0x48a   :  { %v399_v44 = vpop.f32.mrf.mxu3 }
 0x48b   :  { %v405_v48 = vsel %vm218_vm8, %v399_v44, -inf }
 0x494   :  { %v529_v45 = vpop.f32.mrf.mxu3 }
 0x495   :  { %v535_v46 = vsel %vm218_vm8, %v529_v45, -inf }
 0x496   :  { %536 = vmax.xlane.f32.xlu0 %v535_v46 }
 0x49c   :  { %v659_v47 = vpop.f32.mrf.mxu3 }
 0x49d   :  { %v665_v49 = vsel %vm218_vm8, %v659_v47, -inf }
 0x49e   :  { %406 = vmax.xlane.f32.xlu2 %v405_v48  ;;  %666 = vmax.xlane.f32.xlu1 %v665_v49  ;;  %v3279_v48 = vpack.i.bf16 %v3106_v28, %v3097_v26 }
 0x4aa   :  { %450 = vrot.lane.b32.xlu0 %v3143_v4, %s3003_s17 }
 0x4b7   :  { %746 = vrot.lane.b32.xlu1 %v577_v50, %s3007_s21 }
 0x4bf   :  { %v707_v51 = vpop.f32.mrf.mxu0 }
 0x4c0   :  { %754 = vrot.lane.b32.xlu2 %v707_v51, %s3008_s23 }
 0x4cf   :  { %v739_v56 = vpop.permute.xlu2 %738 }
 0x4d0   :  { %v760_v18 = vsel %vm218_vm8, %v316_v17, %v739_v56 }
 0x509   :  { %v537_v58 = vpop.xlane.xlu0 %536 }
 0x50a   :  { %v539_v59 = vsub.f32 %v529_v45, %v537_v58 }
 0x50c   :  { %v542_v60 = vmul.f32 1.442695, %v539_v59 }
 0x50e   :  { %2867 = vpow2.f32 %v542_v60 }
 0x511   :  { %v407_v62 = vpop.xlane.xlu2 %406  ;;  %v667_v63 = vpop.xlane.xlu1 %666 }
 0x512   :  { %v409_v1 = vsub.f32 %v399_v44, %v407_v62  ;;  %v669_v5 = vsub.f32 %v659_v47, %v667_v63  ;;  %v3273_v47 = vpack.i.bf16 %v3088_v24, %v3079_v22 }
 0x514   :  { %v2868_v6 = vpop.eup %2867  ;;  %v412_v7 = vmul.f32 1.442695, %v409_v1  ;;  %v672_v8 = vmul.f32 1.442695, %v669_v5 }
 0x515   :  { %v547_v9 = vsel %vm218_vm8, %v2868_v6, 0.0 }
 0x516   :  { %2869 = vpow2.f32 %v412_v7  ;;  %548 = vadd.xlane.f32.xlu1 %v547_v9  ;;  %v843_v7 = vperm.slane %v3126_v53, 6 }
 0x517   :  { %2871 = vpow2.f32 %v672_v8 }
 0x51a   :  { %v755_v20 = vpop.permute.xlu2 %754 }
 0x51c   :  { %v2870_v11 = vpop.eup %2869  ;;  %v451_v12 = vpop.permute.xlu0 %450 }
 0x51d   :  { %v2872_v13 = vpop.eup %2871  ;;  %471 = vmatpush.msra.mxu1 %v451_v12  ;;  %v417_v14 = vsel %vm218_vm8, %v2870_v11, 0.0  ;;  %v846_v12 = vperm.slane %v3126_v53, 7 }
 0x51e   :  { %v677_v16 = vsel %vm218_vm8, %v2872_v13, 0.0  ;;  %418 = vadd.xlane.f32.xlu2 %v417_v14 }
 0x51f   :  { %678 = vadd.xlane.f32.xlu0 %v677_v16 }
 0x529   :  { %v747_v19 = vpop.permute.xlu1 %746 }
 0x52a   :  { %v763_v21 = vsel %vm762_vm9, %v760_v18, %v747_v19  ;;  %v849_v18 = vperm.slane %v3126_v53, 2 }
 0x52b   :  { %v766_v23 = vsel %vm765_vm10, %v763_v21, %v755_v20 }
 0x52c   :  { %2676 = vmatmul.msk.f32.vlgmr.msrb.gmra.mxu2 %vm77_vm0, %v766_v23 }
 0x52f   :  { %710 = vrot.lane.b32.xlu1 %v3143_v4, %s3005_s19 }
 0x536   :  { %580 = vrot.lane.b32.xlu2 %v3143_v4, %s3004_s18 }
 0x589   :  { %v549_v27 = vpop.xlane.xlu1 %548 }
 0x591   :  { %v419_v25 = vpop.xlane.xlu2 %418 }
 0x592   :  { %2873 = vrcp.f32 %v419_v25  ;;  %v679_v31 = vpop.xlane.xlu0 %678 }
 0x593   :  { %2875 = vrcp.f32 %v549_v27  ;;  %v57_v27 = vld [vmem:[%s3930_s3 + $0x38] sm:$0xff] }
 0x594   :  { %2877 = vrcp.f32 %v679_v31  ;;  %999 = vmatpush.msra.mxu0 %v57_v27 }
 0x598   :  { %v2874_v29 = vpop.eup %2873 }
 0x599   :  { %v423_v30 = vmul.f32 %v2874_v29, %v2870_v11  ;;  %v581_v15 = vpop.permute.xlu2 %580  ;;  %v2876_v32 = vpop.eup %2875 }
 0x59a   :  { %601 = vmatpush.msrb.mxu1 %v581_v15  ;;  %v553_v33 = vmul.f32 %v2876_v32, %v2868_v6  ;;  %v2878_v35 = vpop.eup %2877  ;;  %v55_v32 = vld [vmem:[%s3930_s3 + $0x28] sm:$0xff] }
 0x59b   :  { %2663 = vmatmul.msk.f32.vlgmr.msra.gmra.mxu1 %vm218_vm8, %v423_v30  ;;  %v683_v4 = vmul.f32 %v2878_v35, %v2872_v13  ;;  %v56_v30 = vld [vmem:[%s3930_s3 + $0x30] sm:$0xff]  ;;  %v54_v35 = vld [vmem:[%s3930_s3 + $0x20] sm:$0xff] }
 0x59c   :  { %1000 = vmatpush.msra.mxu0 %v56_v30 }
 0x59e   :  { %1001 = vmatpush.msra.mxu0 %v55_v32 }
 0x5a0   :  { %1002 = vmatpush.msra.mxu0 %v54_v35 }
 0x5a1   :  { %v711_v34 = vpop.permute.xlu1 %710 }
 0x5a2   :  { %731 = vmatpush.msra.mxu1 %v711_v34 }
 0x5a3   :  { %2669 = vmatmul.msk.f32.vlgmr.msrb.gmra.mxu1 %vm218_vm8, %v553_v33 }
 0x5ab   :  { %2675 = vmatmul.msk.f32.vlgmr.msra.gmra.mxu1 %vm218_vm8, %v683_v4 }
 0x5af   :  { %v791_v36 = vpop.f32.mrf.mxu2 }
 0x5b0   :  { %v3262_v37 = vadd.f32 %v791_v36, %v3054_v0  ;;  %v53_v36 = vld [vmem:[%s3930_s3 + $0x18] sm:$0xff] }
 0x5b1   :  { %1003 = vmatpush.msra.mxu0 %v53_v36 }
 0x5b2   :  { %v799_v38 = vsel %vm77_vm0, %v3262_v37, 0.0 }
 0x5b3   :  { %800 = vadd.xlane.f32.xlu2 %v799_v38 }
 0x618   :  { %v473_v39 = vpop.f32.mrf.mxu1 }
 0x619   :  { %740 = vrot.lane.b32.xlu1 %v473_v39, %s3006_s20 }
 0x620   :  { %v603_v40 = vpop.f32.mrf.mxu1 }
 0x626   :  { %v801_v41 = vpop.xlane.xlu2 %800 }
 0x627   :  { %v805_v42 = vmul.f32 %v801_v41, %v3065_v10 }
 0x628   :  { %v733_v44 = vpop.f32.mrf.mxu1 }
 0x629   :  { %v807_v45 = vsub.f32 %v3262_v37, %v805_v42  ;;  %756 = vrot.lane.b32.xlu1 %v733_v44, %s3008_s23  ;;  %v51_v42 = vld [vmem:[%s3930_s3 + $0x8] sm:$0xff] }
 0x62b   :  { %v809_v46 = vmul.f32 %v807_v45, %v807_v45 }
 0x62d   :  { %v811_v0 = vsel %vm77_vm0, %v809_v46, 0.0 }
 0x62e   :  { %812 = vadd.xlane.f32.xlu0 %v811_v0 }
 0x631   :  { %2796 = vrot.lane.b32.xlu1 %v3273_v47, %s2994_s22 }
 0x639   :  { %2801 = vrot.lane.b32.xlu1 %v3279_v48, %s2994_s22 }
 0x642   :  { %748 = vrot.lane.b32.xlu0 %v603_v40, %s3007_s21  ;;  %v52_v40 = vld [vmem:[%s3930_s3 + $0x10] sm:$0xff] }
 0x643   :  { %1004 = vmatpush.msra.mxu0 %v52_v40 }
 0x645   :  { %1005 = vmatpush.msra.mxu0 %v51_v42 }
 0x68b   :  { %v741_v49 = vpop.permute.xlu1 %740 }
 0x68c   :  { %v761_v63 = vsel %vm218_vm8, %v3226_v43, %v741_v49 }
 0x69b   :  { %v757_v50 = vpop.permute.xlu1 %756 }
 0x6a1   :  { %v813_v51 = vpop.xlane.xlu0 %812 }
 0x6a2   :  { %v817_v52 = vmul.f32 %v813_v51, %v3065_v10 }
 0x6a3   :  { %v2797_v22 = vpop.permute.xlu1 %2796 }
 0x6a4   :  { %v819_v24 = vadd.f32 1e-05, %v817_v52  ;;  %v2799_v54 = vunpack.i.h.bf16 %v2797_v22  ;;  %v2798_v55 = vunpack.i.l.bf16 %v2797_v22 }
 0x6a6   :  { %2879 = vrsqrt.f32 %v819_v24  ;;  %884 = vmatpush.msra.mxu3 %v2798_v55  ;;  %vm827_vm12 = vweird.f32 %v819_v24 }
 0x6a8   :  { %885 = vmatpush.msra.mxu3 %v2799_v54 }
 0x6ab   :  { %v2802_v56 = vpop.permute.xlu1 %2801 }
 0x6ac   :  { %v2880_v26 = vpop.eup %2879  ;;  %v2804_v28 = vunpack.i.h.bf16 %v2802_v56  ;;  %v2803_v58 = vunpack.i.l.bf16 %v2802_v56 }
 0x6ad   :  { %v822_v59 = vmul.f32 %v2880_v26, %v819_v24  ;;  %vm828_vm11 = vweird.f32 %v2880_v26 }
 0x6ae   :  { %886 = vmatpush.msra.mxu3 %v2803_v58  ;;  %vm829_vm13 = vmor %vm827_vm12, %vm828_vm11 }
 0x6af   :  { %v823_v61 = vmul.f32 %v2880_v26, %v822_v59 }
 0x6b0   :  { %887 = vmatpush.msra.mxu3 %v2804_v28 }
 0x6b1   :  { %v824_v60 = vmul.f32 0.5, %v823_v61 }
 0x6b3   :  { %v825_v62 = vsub.f32 1.5, %v824_v60 }
 0x6b4   :  { %v749_v1 = vpop.permute.xlu0 %748 }
 0x6b5   :  { %v826_v5 = vmul.f32 %v2880_v26, %v825_v62  ;;  %v764_v6 = vsel %vm762_vm9, %v761_v63, %v749_v1 }
 0x6b6   :  { %v767_v8 = vsel %vm765_vm10, %v764_v6, %v757_v50 }
 0x6b7   :  { %v830_v9 = vsel %vm829_vm13, %v2880_v26, %v826_v5  ;;  %2677 = vmatmul.msk.f32.gmra.mxu2 %vm77_vm0, %v767_v8 }
 0x6b8   :  { %v841_v11 = vmul.f32 %v830_v9, %v807_v45  ;;  %v50_v45 = vld [vmem:[%s3930_s3] sm:$0xff] }
 0x6b9   :  { %1006 = vmatpush.msra.mxu0 %v50_v45 }
 0x6ba   :  { %v844_v13 = vmul.f32 %v843_v7, %v841_v11 }
 0x6bc   :  { %v3296_v43 = vadd.f32 %v846_v12, %v844_v13 }
 0x6be   :  { %2678 = vmatmul.msk.f32.vlgmr.msra.gmra.mxu3 %vm77_vm0, %v3296_v43 }
 0x73a   :  { %v794_v14 = vpop.f32.mrf.mxu2 }
 0x73b   :  { %v3301_v16 = vadd.f32 %v794_v14, %v3061_v2 }
 0x73d   :  { %v802_v17 = vsel %vm77_vm0, %v3301_v16, 0.0 }
 0x73e   :  { %803 = vadd.xlane.f32.xlu0 %v802_v17 }
 0x741   :  { %v889_v19 = vpop.f32.mrf.mxu3 }
 0x742   :  { %v890_v20 = vadd.f32 %v889_v19, %v849_v18 }
 0x744   :  { %v897_v21 = vmul.f32 0.70710677, %v890_v20  ;;  %v895_v8 = vmul.f32 0.5, %v890_v20 }
 0x746   :  { %v899_v23 = vmul.f32 %v897_v21, %v897_v21 }
 0x748   :  { %v900_v25 = vmin.f32 %v899_v23, 16.0 }
 0x74a   :  { %v901_v2 = vmul.f32 2.1237322e-06, %v900_v25  ;;  %v912_v29 = vmul.f32 3.8918573e-05, %v900_v25 }
 0x74c   :  { %v902_v15 = vadd.f32 0.00028619796, %v901_v2  ;;  %v913_v31 = vadd.f32 0.001143296, %v912_v29 }
 0x74e   :  { %v903_v33 = vmul.f32 %v902_v15, %v900_v25  ;;  %v914_v34 = vmul.f32 %v913_v31, %v900_v25 }
 0x750   :  { %v915_v4 = vadd.f32 0.014752088, %v914_v34  ;;  %v904_v38 = vadd.f32 0.0036580483, %v903_v33 }
 0x752   :  { %v916_v39 = vmul.f32 %v915_v4, %v900_v25  ;;  %v905_v44 = vmul.f32 %v904_v38, %v900_v25  ;;  %2811 = vrot.lane.b32.xlu0 %v3279_v48, %s2995_s28 }
 0x754   :  { %v917_v41 = vadd.f32 0.112945676, %v916_v39  ;;  %v906_v49 = vadd.f32 0.05243302, %v905_v44 }
 0x756   :  { %v918_v46 = vmul.f32 %v917_v41, %v900_v25  ;;  %v907_v52 = vmul.f32 %v906_v49, %v900_v25 }
 0x758   :  { %v919_v0 = vadd.f32 0.4994258, %v918_v46  ;;  %v908_v22 = vadd.f32 0.18741608, %v907_v52 }
 0x75a   :  { %v920_v50 = vmul.f32 %v919_v0, %v900_v25  ;;  %v909_v54 = vmul.f32 %v908_v22, %v900_v25 }
 0x75c   :  { %v921_v51 = vadd.f32 1.0, %v920_v50  ;;  %v910_v28 = vadd.f32 1.1283791, %v909_v54 }
 0x75e   :  { %2881 = vrcp.f32 %v921_v51  ;;  %v933_v26 = vand.u32 2147483648, %v921_v51  ;;  %v931_v59 = vand.u32 2147483647, %v921_v51  ;;  %vm927_vm15 = vweird.f32 %v921_v51 }
 0x75f   :  { %v911_v62 = vmul.f32 %v910_v28, %v897_v21  ;;  %v983_v21 = vperm.slane %v3126_v53, 3 }
 0x760   :  { %v934_v60 = vor.u32 1.1754944e-38, %v933_v26  ;;  %vm932_vm2 = vcmp.eq.f32.partialorder %v931_v59, 8.507059e+37 }
 0x764   :  { %v2882_v24 = vpop.eup %2881 }
 0x765   :  { %v923_v55 = vmul.f32 %v2882_v24, %v921_v51  ;;  %vm928_vm14 = vweird.f32 %v2882_v24 }
 0x766   :  { %vm929_vm1 = vmor %vm927_vm15, %vm928_vm14 }
 0x767   :  { %v924_v56 = vsub.f32 1.0, %v923_v55 }
 0x769   :  { %v925_v58 = vmul.f32 %v2882_v24, %v924_v56 }
 0x76b   :  { %v926_v61 = vadd.f32 %v2882_v24, %v925_v58 }
 0x76d   :  { %v930_v63 = vsel %vm929_vm1, %v2882_v24, %v926_v61 }
 0x76e   :  { %v935_v1 = vsel %vm932_vm2, %v934_v60, %v930_v63 }
 0x76f   :  { %v936_v5 = vmul.f32 %v935_v1, %v911_v62 }
 0x771   :  { %v2680_v6 = vclamps-f32 %v936_v5, 1.0 }
 0x773   :  { %v979_v9 = vadd.f32 1.0, %v2680_v6 }
 0x775   :  { %v981_v11 = vmul.f32 %v979_v9, %v895_v8 }
 0x777   :  { %2682 = vmatmul.msk.f32.vlgmr.msra.gmra.mxu0 %vm984_vm3, %v981_v11 }
 0x7b1   :  { %v804_v13 = vpop.xlane.xlu0 %803 }
 0x7b2   :  { %v806_v14 = vmul.f32 %v804_v13, %v3065_v10 }
 0x7b4   :  { %v808_v17 = vsub.f32 %v3301_v16, %v806_v14 }
 0x7b6   :  { %v810_v19 = vmul.f32 %v808_v17, %v808_v17 }
 0x7b8   :  { %v814_v23 = vsel %vm77_vm0, %v810_v19, 0.0 }
 0x7b9   :  { %815 = vadd.xlane.f32.xlu1 %v814_v23 }
 0x7c4   :  { %v2812_v13 = vpop.permute.xlu0 %2811 }
 0x7f4   :  { %v1008_v25 = vpop.f32.mrf.mxu0 }
 0x7f5   :  { %v1009_v20 = vadd.f32 %v1008_v25, %v983_v21  ;;  %v2813_v25 = vunpack.i.l.bf16 %v2812_v13 }
 0x7f7   :  { %v1014_v27 = vadd.f32 %v1009_v20, %v3296_v43 }
 0x7f9   :  { %v1016_v2 = vsel %vm77_vm0, %v1014_v27, 0.0 }
 0x7fa   :  { %1017 = vadd.xlane.f32.xlu2 %v1016_v2 }
 0x82c   :  { %v816_v29 = vpop.xlane.xlu1 %815 }
 0x82d   :  { %v818_v30 = vmul.f32 %v816_v29, %v3065_v10 }
 0x82f   :  { %v820_v15 = vadd.f32 1e-05, %v818_v30 }
 0x831   :  { %2883 = vrsqrt.f32 %v820_v15  ;;  %vm837_vm5 = vweird.f32 %v820_v15 }
 0x837   :  { %v2884_v31 = vpop.eup %2883 }
 0x838   :  { %v832_v32 = vmul.f32 %v2884_v31, %v820_v15  ;;  %vm838_vm4 = vweird.f32 %v2884_v31  ;;  %v2814_v15 = vunpack.i.h.bf16 %v2812_v13 }
 0x839   :  { %vm839_vm6 = vmor %vm837_vm5, %vm838_vm4 }
 0x83a   :  { %v833_v33 = vmul.f32 %v2884_v31, %v832_v32 }
 0x83c   :  { %v834_v34 = vmul.f32 0.5, %v833_v33 }
 0x83e   :  { %v835_v35 = vsub.f32 1.5, %v834_v34 }
 0x840   :  { %v836_v4 = vmul.f32 %v2884_v31, %v835_v35 }
 0x842   :  { %v840_v36 = vsel %vm839_vm6, %v2884_v31, %v836_v4 }
 0x843   :  { %v842_v38 = vmul.f32 %v840_v36, %v808_v17 }
 0x845   :  { %v845_v43 = vmul.f32 %v843_v7, %v842_v38 }
 0x847   :  { %v3346_v39 = vadd.f32 %v846_v12, %v845_v43  ;;  %v3369_v43 = vld [vmem:[%s3931_s4 + $0x10] sm:$0x3] }
 0x849   :  { %2679 = vmatmul.msk.f32.gmra.mxu3 %vm77_vm0, %v3346_v39 }
 0x86d   :  { %v1018_v40 = vpop.xlane.xlu2 %1017 }
 0x86e   :  { %v1022_v41 = vmul.f32 %v1018_v40, %v3065_v10 }
 0x870   :  { %v3353_v42 = vsub.f32 %v1014_v27, %v1022_v41 }
 0x872   :  { %v1026_v44 = vmul.f32 %v3353_v42, %v3353_v42 }
 0x874   :  { %v1028_v7 = vsel %vm77_vm0, %v1026_v44, 0.0 }
 0x875   :  { %1029 = vadd.xlane.f32.xlu2 %v1028_v7 }
 0x88d   :  { %2806 = vrot.lane.b32.xlu2 %v3273_v47, %s2995_s28 }
 0x8cc   :  { %v892_v12 = vpop.f32.mrf.mxu3 }
 0x8cd   :  { %v3362_v45 = vadd.f32 %v892_v12, %v849_v18  ;;  %v1060_v12 = vperm.slane %v3369_v43, 0 }
 0x8cf   :  { %v898_v48 = vmul.f32 0.70710677, %v3362_v45  ;;  %v896_v7 = vmul.f32 0.5, %v3362_v45 }
 0x8d1   :  { %v939_v46 = vmul.f32 %v898_v48, %v898_v48 }
 0x8d3   :  { %v940_v0 = vmin.f32 %v939_v46, 16.0 }
 0x8d5   :  { %v941_v49 = vmul.f32 2.1237322e-06, %v940_v0  ;;  %v952_v50 = vmul.f32 3.8918573e-05, %v940_v0 }
 0x8d7   :  { %v942_v51 = vadd.f32 0.00028619796, %v941_v49  ;;  %v953_v52 = vadd.f32 0.001143296, %v952_v50  ;;  %v1063_v50 = vperm.slane %v3369_v43, 1  ;;  %v71_v43 = vld [vmem:[%s3930_s3 + $0xa8] sm:$0xff] }
 0x8d9   :  { %v943_v22 = vmul.f32 %v942_v51, %v940_v0  ;;  %v954_v24 = vmul.f32 %v953_v52, %v940_v0 }
 0x8db   :  { %v955_v54 = vadd.f32 0.014752088, %v954_v24  ;;  %v944_v55 = vadd.f32 0.0036580483, %v943_v22  ;;  %v1066_v24 = vperm.slane %v3126_v53, 4 }
 0x8dd   :  { %v956_v56 = vmul.f32 %v955_v54, %v940_v0  ;;  %v945_v47 = vmul.f32 %v944_v55, %v940_v0 }
 0x8df   :  { %v957_v26 = vadd.f32 0.112945676, %v956_v56  ;;  %v946_v59 = vadd.f32 0.05243302, %v945_v47 }
 0x8e1   :  { %v958_v28 = vmul.f32 %v957_v26, %v940_v0  ;;  %v947_v60 = vmul.f32 %v946_v59, %v940_v0 }
 0x8e3   :  { %v959_v58 = vadd.f32 0.4994258, %v958_v28  ;;  %v948_v1 = vadd.f32 0.18741608, %v947_v60 }
 0x8e5   :  { %v960_v18 = vmul.f32 %v959_v58, %v940_v0  ;;  %v949_v8 = vmul.f32 %v948_v1, %v940_v0  ;;  %v48_v1 = vld [vmem:[%s3929_s2 + $0x70] sm:$0xff] }
 0x8e6   :  { %1173 = vmatpush.msra.mxu2 %v48_v1 }
 0x8e7   :  { %v961_v61 = vadd.f32 1.0, %v960_v18  ;;  %v950_v27 = vadd.f32 1.1283791, %v949_v8  ;;  %v36_v8 = vld [vmem:[%s3929_s2 + $0x10] sm:$0xff] }
 0x8e8   :  { %v1030_v62 = vpop.xlane.xlu2 %1029 }
 0x8e9   :  { %2885 = vrcp.f32 %v961_v61  ;;  %v1034_v63 = vmul.f32 %v1030_v62, %v3065_v10  ;;  %v973_v23 = vand.u32 2147483648, %v961_v61  ;;  %v971_v29 = vand.u32 2147483647, %v961_v61 }
 0x8ea   :  { %vm967_vm11 = vweird.f32 %v961_v61  ;;  %v951_v34 = vmul.f32 %v950_v27, %v898_v48 }
 0x8eb   :  { %v1036_v5 = vadd.f32 1e-05, %v1034_v63  ;;  %v974_v32 = vor.u32 1.1754944e-38, %v973_v23  ;;  %vm972_vm13 = vcmp.eq.f32.partialorder %v971_v29, 8.507059e+37 }
 0x8ed   :  { %2887 = vrsqrt.f32 %v1036_v5  ;;  %vm1044_vm15 = vweird.f32 %v1036_v5 }
 0x8ef   :  { %v2886_v6 = vpop.eup %2885 }
 0x8f0   :  { %v963_v9 = vmul.f32 %v2886_v6, %v961_v61  ;;  %v2807_v11 = vpop.permute.xlu2 %2806  ;;  %vm968_vm7 = vweird.f32 %v2886_v6 }
 0x8f1   :  { %v2809_v14 = vunpack.i.h.bf16 %v2807_v11  ;;  %v2808_v17 = vunpack.i.l.bf16 %v2807_v11  ;;  %vm969_vm12 = vmor %vm967_vm11, %vm968_vm7 }
 0x8f2   :  { %v964_v19 = vsub.f32 1.0, %v963_v9 }
 0x8f3   :  { %1097 = vmatpush.msrb.mxu1 %v2808_v17  ;;  %v2888_v20 = vpop.eup %2887 }
 0x8f4   :  { %v965_v2 = vmul.f32 %v2886_v6, %v964_v19  ;;  %v1039_v30 = vmul.f32 %v2888_v20, %v1036_v5  ;;  %vm1045_vm14 = vweird.f32 %v2888_v20  ;;  %v44_v5 = vld [vmem:[%s3929_s2 + $0x50] sm:$0xff] }
 0x8f5   :  { %1098 = vmatpush.msrb.mxu1 %v2809_v14  ;;  %vm1046_vm1 = vmor %vm1044_vm15, %vm1045_vm14  ;;  %1174 = vmatpush.msra.mxu2 %v44_v5 }
 0x8f6   :  { %v966_v31 = vadd.f32 %v2886_v6, %v965_v2  ;;  %v1040_v33 = vmul.f32 %v2888_v20, %v1039_v30 }
 0x8f7   :  { %1099 = vmatpush.msrb.mxu1 %v2813_v25 }
 0x8f8   :  { %v970_v35 = vsel %vm969_vm12, %v2886_v6, %v966_v31  ;;  %v1041_v36 = vmul.f32 0.5, %v1040_v33  ;;  %v40_v6 = vld [vmem:[%s3929_s2 + $0x30] sm:$0xff] }
 0x8f9   :  { %v975_v4 = vsel %vm972_vm13, %v974_v32, %v970_v35  ;;  %1100 = vmatpush.msrb.mxu1 %v2814_v15  ;;  %1175 = vmatpush.msra.mxu2 %v40_v6  ;;  %v60_v6 = vld [vmem:[%s3930_s3 + $0x50] sm:$0xff] }
 0x8fa   :  { %v976_v38 = vmul.f32 %v975_v4, %v951_v34  ;;  %v1042_v40 = vsub.f32 1.5, %v1041_v36 }
 0x8fb   :  { %1176 = vmatpush.msra.mxu2 %v36_v8 }
 0x8fc   :  { %v2681_v41 = vclamps-f32 %v976_v38, 1.0  ;;  %v1043_v44 = vmul.f32 %v2888_v20, %v1042_v40 }
 0x8fe   :  { %v980_v48 = vadd.f32 1.0, %v2681_v41  ;;  %v1047_v46 = vsel %vm1046_vm1, %v2888_v20, %v1043_v44  ;;  %v73_v44 = vld [vmem:[%s3930_s3 + $0xb8] sm:$0xff] }
 0x8ff   :  { %v1058_v0 = vmul.f32 %v1047_v46, %v3353_v42  ;;  %1273 = vmatpush.msrb.mxu3 %v73_v44  ;;  %v3427_v46 = vld [vmem:[%s3931_s4] sm:$0xff] }
 0x900   :  { %v982_v49 = vmul.f32 %v980_v48, %v896_v7  ;;  %v72_v7 = vld [vmem:[%s3930_s3 + $0xb0] sm:$0xff] }
 0x901   :  { %v1061_v51 = vmul.f32 %v1060_v12, %v1058_v0  ;;  %1274 = vmatpush.msrb.mxu3 %v72_v7  ;;  %v1154_v0 = vperm.slane %v3427_v46, 1 }
 0x902   :  { %2683 = vmatmul.msk.f32.gmra.mxu0 %vm984_vm3, %v982_v49 }
 0x903   :  { %v1064_v52 = vadd.f32 %v1063_v50, %v1061_v51  ;;  %1275 = vmatpush.msrb.mxu3 %v71_v43  ;;  %v69_v51 = vld [vmem:[%s3930_s3 + $0x98] sm:$0xff] }
 0x905   :  { %2684 = vmatmul.msk.f32.vlgmr.msrb.gmra.mxu1 %vm77_vm0, %v1064_v52 }
 0x97f   :  { %v1011_v45 = vpop.f32.mrf.mxu0 }
 0x980   :  { %v1012_v22 = vadd.f32 %v1011_v45, %v983_v21 }
 0x982   :  { %v1015_v42 = vadd.f32 %v1012_v22, %v3346_v39  ;;  %v1102_v54 = vpop.f32.mrf.mxu1  ;;  %v68_v22 = vld [vmem:[%s3930_s3 + $0x90] sm:$0xff] }
 0x983   :  { %v1103_v55 = vadd.f32 %v1102_v54, %v1066_v24 }
 0x984   :  { %v1019_v56 = vsel %vm77_vm0, %v1015_v42, 0.0 }
 0x985   :  { %1020 = vadd.xlane.f32.xlu1 %v1019_v56  ;;  %v1108_v26 = vadd.f32 %v1103_v55, %v1064_v52  ;;  %v66_v55 = vld [vmem:[%s3930_s3 + $0x80] sm:$0xff] }
 0x987   :  { %v1110_v47 = vsel %vm77_vm0, %v1108_v26, 0.0 }
 0x988   :  { %1111 = vadd.xlane.f32.xlu2 %v1110_v47 }
 0x9f8   :  { %v1021_v28 = vpop.xlane.xlu1 %1020 }
 0x9f9   :  { %v1023_v58 = vmul.f32 %v1021_v28, %v3065_v10 }
 0x9fb   :  { %v1025_v59 = vsub.f32 %v1015_v42, %v1023_v58  ;;  %v1112_v21 = vpop.xlane.xlu2 %1111  ;;  %v67_v42 = vld [vmem:[%s3930_s3 + $0x88] sm:$0xff]  ;;  %v64_v58 = vld [vmem:[%s3930_s3 + $0x70] sm:$0xff] }
 0x9fc   :  { %v1116_v18 = vmul.f32 %v1112_v21, %v3065_v10 }
 0x9fd   :  { %v1027_v61 = vmul.f32 %v1025_v59, %v1025_v59 }
 0x9fe   :  { %v1118_v39 = vsub.f32 %v1108_v26, %v1116_v18  ;;  %v65_v26 = vld [vmem:[%s3930_s3 + $0x78] sm:$0xff]  ;;  %v63_v18 = vld [vmem:[%s3930_s3 + $0x68] sm:$0xff] }
 0x9ff   :  { %v1031_v60 = vsel %vm77_vm0, %v1027_v61, 0.0 }
 0xa00   :  { %1032 = vadd.xlane.f32.xlu1 %v1031_v60  ;;  %v1120_v62 = vmul.f32 %v1118_v39, %v1118_v39  ;;  %v62_v60 = vld [vmem:[%s3930_s3 + $0x60] sm:$0xff] }
 0xa02   :  { %v1122_v63 = vsel %vm77_vm0, %v1120_v62, 0.0 }
 0xa03   :  { %1123 = vadd.xlane.f32.xlu0 %v1122_v63  ;;  %v61_v63 = vld [vmem:[%s3930_s3 + $0x58] sm:$0xff] }
 0xa73   :  { %v1033_v9 = vpop.xlane.xlu1 %1032 }
 0xa74   :  { %v1035_v11 = vmul.f32 %v1033_v9, %v3065_v10  ;;  %v59_v9 = vld [vmem:[%s3930_s3 + $0x48] sm:$0xff] }
 0xa76   :  { %v1037_v13 = vadd.f32 1e-05, %v1035_v11  ;;  %v1124_v14 = vpop.xlane.xlu0 %1123 }
 0xa77   :  { %v1128_v17 = vmul.f32 %v1124_v14, %v3065_v10 }
 0xa78   :  { %2889 = vrsqrt.f32 %v1037_v13  ;;  %vm1054_vm4 = vweird.f32 %v1037_v13 }
 0xa79   :  { %v1130_v19 = vadd.f32 1e-05, %v1128_v17 }
 0xa7b   :  { %2891 = vrsqrt.f32 %v1130_v19  ;;  %vm1138_vm7 = vweird.f32 %v1130_v19 }
 0xa7e   :  { %v2890_v23 = vpop.eup %2889 }
 0xa7f   :  { %v1049_v25 = vmul.f32 %v2890_v23, %v1037_v13  ;;  %vm1055_vm2 = vweird.f32 %v2890_v23  ;;  %v58_v13 = vld [vmem:[%s3930_s3 + $0x40] sm:$0xff] }
 0xa80   :  { %vm1056_vm5 = vmor %vm1054_vm4, %vm1055_vm2 }
 0xa81   :  { %v1050_v20 = vmul.f32 %v2890_v23, %v1049_v25  ;;  %v2892_v27 = vpop.eup %2891 }
 0xa82   :  { %v1133_v29 = vmul.f32 %v2892_v27, %v1130_v19  ;;  %vm1139_vm6 = vweird.f32 %v2892_v27 }
 0xa83   :  { %v1051_v2 = vmul.f32 0.5, %v1050_v20  ;;  %vm1140_vm11 = vmor %vm1138_vm7, %vm1139_vm6 }
 0xa84   :  { %v1134_v15 = vmul.f32 %v2892_v27, %v1133_v29 }
 0xa85   :  { %v1052_v30 = vsub.f32 1.5, %v1051_v2 }
 0xa86   :  { %v1135_v32 = vmul.f32 0.5, %v1134_v15 }
 0xa87   :  { %v1053_v31 = vmul.f32 %v2890_v23, %v1052_v30 }
 0xa88   :  { %v1136_v34 = vsub.f32 1.5, %v1135_v32 }
 0xa89   :  { %v1057_v33 = vsel %vm1056_vm5, %v2890_v23, %v1053_v31 }
 0xa8a   :  { %v1059_v35 = vmul.f32 %v1057_v33, %v1025_v59  ;;  %v1137_v4 = vmul.f32 %v2892_v27, %v1136_v34 }
 0xa8c   :  { %v1062_v36 = vmul.f32 %v1060_v12, %v1059_v35  ;;  %v1141_v38 = vsel %vm1140_vm11, %v2892_v27, %v1137_v4 }
 0xa8d   :  { %v1152_v40 = vmul.f32 %v1141_v38, %v1118_v39 }
 0xa8e   :  { %v1065_v41 = vadd.f32 %v1063_v50, %v1062_v36  ;;  %v70_v50 = vld [vmem:[%s3930_s3 + $0xa0] sm:$0xff] }
 0xa8f   :  { %2686 = vmatmul.msk.f32.vlgmr.msra.gmra.mxu2 %vm77_vm0, %v1152_v40  ;;  %1276 = vmatpush.msrb.mxu3 %v70_v50 }
 0xa90   :  { %2685 = vmatmul.msk.f32.gmra.mxu1 %vm77_vm0, %v1065_v41 }
 0xa91   :  { %1277 = vmatpush.msrb.mxu3 %v69_v51 }
 0xa93   :  { %1278 = vmatpush.msrb.mxu3 %v68_v22  ;;  %v1272_v22 = vperm.slane %v3427_v46, 5 }
 0xa95   :  { %1279 = vmatpush.msrb.mxu3 %v67_v42 }
 0xa97   :  { %1280 = vmatpush.msrb.mxu3 %v66_v55 }
 0xa99   :  { %1281 = vmatpush.msrb.mxu3 %v65_v26 }
 0xa9b   :  { %1282 = vmatpush.msrb.mxu3 %v64_v58 }
 0xa9d   :  { %1283 = vmatpush.msrb.mxu3 %v63_v18 }
 0xa9f   :  { %1284 = vmatpush.msrb.mxu3 %v62_v60 }
 0xaa1   :  { %1285 = vmatpush.msrb.mxu3 %v61_v63 }
 0xaa3   :  { %1286 = vmatpush.msrb.mxu3 %v60_v6 }
 0xaa5   :  { %1287 = vmatpush.msrb.mxu3 %v59_v9 }
 0xaa7   :  { %1288 = vmatpush.msrb.mxu3 %v58_v13 }
 0xb0d   :  { %v1105_v48 = vpop.f32.mrf.mxu1 }
 0xb0e   :  { %v1106_v12 = vadd.f32 %v1105_v48, %v1066_v24 }
 0xb10   :  { %v3430_v49 = vadd.f32 %v1106_v12, %v1065_v41 }
 0xb12   :  { %v1113_v53 = vsel %vm77_vm0, %v3430_v49, 0.0  ;;  %v1178_v52 = vpop.f32.mrf.mxu2 }
 0xb13   :  { %1114 = vadd.xlane.f32.xlu1 %v1113_v53  ;;  %v3442_v45 = vadd.f32 %v1178_v52, %v1154_v0 }
 0xb15   :  { %v1186_v24 = vmul.f32 0.70710677, %v3442_v45  ;;  %v1184_v7 = vmul.f32 0.5, %v3442_v45 }
 0xb17   :  { %v1188_v54 = vmul.f32 %v1186_v24, %v1186_v24 }
 0xb19   :  { %v1189_v56 = vmin.f32 %v1188_v54, 16.0 }
 0xb1b   :  { %v1190_v47 = vmul.f32 2.1237322e-06, %v1189_v56  ;;  %v1201_v28 = vmul.f32 3.8918573e-05, %v1189_v56 }
 0xb1d   :  { %v1191_v59 = vadd.f32 0.00028619796, %v1190_v47  ;;  %v1202_v21 = vadd.f32 0.001143296, %v1201_v28 }
 0xb1f   :  { %v1192_v61 = vmul.f32 %v1191_v59, %v1189_v56  ;;  %v1203_v39 = vmul.f32 %v1202_v21, %v1189_v56 }
 0xb21   :  { %v1204_v62 = vadd.f32 0.014752088, %v1203_v39  ;;  %v1193_v1 = vadd.f32 0.0036580483, %v1192_v61 }
 0xb23   :  { %v1205_v5 = vmul.f32 %v1204_v62, %v1189_v56  ;;  %v1194_v11 = vmul.f32 %v1193_v1, %v1189_v56 }
 0xb25   :  { %v1206_v8 = vadd.f32 0.112945676, %v1205_v5  ;;  %v1195_v19 = vadd.f32 0.05243302, %v1194_v11 }
 0xb27   :  { %v1207_v14 = vmul.f32 %v1206_v8, %v1189_v56  ;;  %v1196_v20 = vmul.f32 %v1195_v19, %v1189_v56 }
 0xb29   :  { %v1208_v17 = vadd.f32 0.4994258, %v1207_v14  ;;  %v1197_v27 = vadd.f32 0.18741608, %v1196_v20 }
 0xb2b   :  { %v1209_v23 = vmul.f32 %v1208_v17, %v1189_v56  ;;  %v1198_v29 = vmul.f32 %v1197_v27, %v1189_v56 }
 0xb2d   :  { %v1210_v25 = vadd.f32 1.0, %v1209_v23  ;;  %v1199_v32 = vadd.f32 1.1283791, %v1198_v29 }
 0xb2f   :  { %2893 = vrcp.f32 %v1210_v25  ;;  %v1222_v31 = vand.u32 2147483648, %v1210_v25  ;;  %v1220_v34 = vand.u32 2147483647, %v1210_v25  ;;  %vm1216_vm13 = vweird.f32 %v1210_v25 }
 0xb30   :  { %v1200_v36 = vmul.f32 %v1199_v32, %v1186_v24 }
 0xb31   :  { %v1223_v4 = vor.u32 1.1754944e-38, %v1222_v31  ;;  %vm1221_vm15 = vcmp.eq.f32.partialorder %v1220_v34, 8.507059e+37  ;;  %v3519_v34 = vld [vmem:[%s3929_s2 + $0xc8] sm:$0xff] }
 0xb35   :  { %v2894_v2 = vpop.eup %2893 }
 0xb36   :  { %v1212_v30 = vmul.f32 %v2894_v2, %v1210_v25  ;;  %vm1217_vm12 = vweird.f32 %v2894_v2 }
 0xb37   :  { %vm1218_vm14 = vmor %vm1216_vm13, %vm1217_vm12 }
 0xb38   :  { %v1213_v15 = vsub.f32 1.0, %v1212_v30  ;;  %v3510_v30 = vld [vmem:[%s3929_s2 + $0xe8] sm:$0xff] }
 0xb39   :  { %1431 = vmatpush.msrb.mxu0 %v3510_v30 }
 0xb3a   :  { %v1214_v33 = vmul.f32 %v2894_v2, %v1213_v15 }
 0xb3b   :  { %1432 = vmatpush.msrb.mxu0 %v3519_v34 }
 0xb3c   :  { %v1215_v35 = vadd.f32 %v2894_v2, %v1214_v33  ;;  %v2698_v33 = vld [vmem:[%s3929_s2 + $0xc0] sm:$0xff] }
 0xb3e   :  { %v1219_v38 = vsel %vm1218_vm14, %v2894_v2, %v1215_v35 }
 0xb3f   :  { %v1224_v40 = vsel %vm1221_vm15, %v1223_v4, %v1219_v38  ;;  %v2694_v4 = vld [vmem:[%s3929_s2 + $0xa0] sm:$0xff] }
 0xb40   :  { %v1225_v41 = vmul.f32 %v1224_v40, %v1200_v36  ;;  %v3528_v36 = vld [vmem:[%s3929_s2 + $0xa8] sm:$0xff]  ;;  %v2690_v38 = vld [vmem:[%s3929_s2 + $0x80] sm:$0xff] }
 0xb41   :  { %1433 = vmatpush.msrb.mxu0 %v3528_v36  ;;  %v3537_v40 = vld [vmem:[%s3929_s2 + $0x88] sm:$0xff] }
 0xb42   :  { %v2688_v44 = vclamps-f32 %v1225_v41, 1.0 }
 0xb43   :  { %1434 = vmatpush.msrb.mxu0 %v3537_v40 }
 0xb44   :  { %v1268_v48 = vadd.f32 1.0, %v2688_v44 }
 0xb46   :  { %v1270_v12 = vmul.f32 %v1268_v48, %v1184_v7 }
 0xb48   :  { %1289 = vmatmul.f32.vlgmr.msrb.gmra.mxu3 %v1270_v12 }
 0xb86   :  { %v1115_v43 = vpop.xlane.xlu1 %1114 }
 0xb87   :  { %v1117_v50 = vmul.f32 %v1115_v43, %v3065_v10 }
 0xb89   :  { %v1119_v53 = vsub.f32 %v3430_v49, %v1117_v50 }
 0xb8b   :  { %v1121_v51 = vmul.f32 %v1119_v53, %v1119_v53 }
 0xb8d   :  { %v1125_v52 = vsel %vm77_vm0, %v1121_v51, 0.0 }
 0xb8e   :  { %1126 = vadd.xlane.f32.xlu1 %v1125_v52 }
 0xbcb   :  { %v1290_v24 = vpop.f32.mrf.mxu3 }
 0xbcc   :  { %v1291_v42 = vadd.f32 %v1290_v24, %v1272_v22 }
 0xbce   :  { %v3486_v45 = vadd.f32 %v1291_v42, %v3262_v37 }
 0xbd0   :  { %v1344_v54 = vsel %vm77_vm0, %v3486_v45, 0.0 }
 0xbd1   :  { %1345 = vadd.xlane.f32.xlu1 %v1344_v54 }
 0xc01   :  { %v1127_v55 = vpop.xlane.xlu1 %1126 }
 0xc02   :  { %v1129_v49 = vmul.f32 %v1127_v55, %v3065_v10 }
 0xc04   :  { %v1131_v56 = vadd.f32 1e-05, %v1129_v49 }
 0xc06   :  { %2895 = vrsqrt.f32 %v1131_v56  ;;  %vm1148_vm2 = vweird.f32 %v1131_v56 }
 0xc0c   :  { %v2896_v26 = vpop.eup %2895 }
 0xc0d   :  { %v1143_v47 = vmul.f32 %v2896_v26, %v1131_v56  ;;  %vm1149_vm1 = vweird.f32 %v2896_v26 }
 0xc0e   :  { %vm1150_vm4 = vmor %vm1148_vm2, %vm1149_vm1 }
 0xc0f   :  { %v1144_v28 = vmul.f32 %v2896_v26, %v1143_v47 }
 0xc11   :  { %v1145_v58 = vmul.f32 0.5, %v1144_v28 }
 0xc13   :  { %v1146_v59 = vsub.f32 1.5, %v1145_v58 }
 0xc15   :  { %v1147_v21 = vmul.f32 %v2896_v26, %v1146_v59 }
 0xc17   :  { %v1151_v37 = vsel %vm1150_vm4, %v2896_v26, %v1147_v21 }
 0xc18   :  { %v1153_v18 = vmul.f32 %v1151_v37, %v1119_v53 }
 0xc1a   :  { %2687 = vmatmul.msk.f32.gmra.mxu2 %vm77_vm0, %v1153_v18 }
 0xc44   :  { %v1346_v61 = vpop.xlane.xlu1 %1345 }
 0xc45   :  { %v1350_v39 = vmul.f32 %v1346_v61, %v3065_v10 }
 0xc47   :  { %v3494_v60 = vsub.f32 %v3486_v45, %v1350_v39 }
 0xc49   :  { %v1354_v62 = vmul.f32 %v3494_v60, %v3494_v60 }
 0xc4b   :  { %v1356_v63 = vsel %vm77_vm0, %v1354_v62, 0.0 }
 0xc4c   :  { %1357 = vadd.xlane.f32.xlu1 %v1356_v63 }
 0xc9d   :  { %v1181_v1 = vpop.f32.mrf.mxu2 }
 0xc9e   :  { %v3501_v5 = vadd.f32 %v1181_v1, %v1154_v0  ;;  %v2702_v0 = vld [vmem:[%s3929_s2 + $0xe0] sm:$0xff] }
 0xc9f   :  { %1408 = vmatpush.msra.mxu1 %v2702_v0 }
 0xca0   :  { %v1187_v6 = vmul.f32 0.70710677, %v3501_v5  ;;  %v1185_v61 = vmul.f32 0.5, %v3501_v5  ;;  %v3548_v5 = vld [vmem:[%s3931_s4 + $0x20] sm:$0xff] }
 0xca1   :  { %1409 = vmatpush.msra.mxu1 %v2698_v33 }
 0xca2   :  { %v1228_v8 = vmul.f32 %v1187_v6, %v1187_v6 }
 0xca3   :  { %1410 = vmatpush.msra.mxu1 %v2694_v4  ;;  %v2960_v4 = vld [vmem:[%s3928_s1] sm:$0xff] }
 0xca4   :  { %v1229_v9 = vmin.f32 %v1228_v8, 16.0 }
 0xca5   :  { %1411 = vmatpush.msra.mxu1 %v2690_v38 }
 0xca6   :  { %v1230_v11 = vmul.f32 2.1237322e-06, %v1229_v9  ;;  %v1241_v13 = vmul.f32 3.8918573e-05, %v1229_v9 }
 0xca8   :  { %v1231_v14 = vadd.f32 0.00028619796, %v1230_v11  ;;  %v1242_v17 = vadd.f32 0.001143296, %v1241_v13  ;;  %v1388_v11 = vperm.slane %v3548_v5, 0 }
 0xcaa   :  { %v1232_v19 = vmul.f32 %v1231_v14, %v1229_v9  ;;  %v1243_v23 = vmul.f32 %v1242_v17, %v1229_v9 }
 0xcac   :  { %v1233_v25 = vadd.f32 0.0036580483, %v1232_v19  ;;  %v1244_v20 = vadd.f32 0.014752088, %v1243_v23 }
 0xcae   :  { %v1245_v27 = vmul.f32 %v1244_v20, %v1229_v9  ;;  %v1234_v2 = vmul.f32 %v1233_v25, %v1229_v9  ;;  %v2731_v20 = vld [vmem:[%s3931_s4 + $0x28] sm:$0xff] }
 0xcb0   :  { %v1246_v29 = vadd.f32 0.112945676, %v1245_v27  ;;  %v1235_v31 = vadd.f32 0.05243302, %v1234_v2  ;;  %v1389_v27 = vperm.slane %v2731_v20, 0 }
 0xcb2   :  { %v1247_v15 = vmul.f32 %v1246_v29, %v1229_v9  ;;  %v1236_v41 = vmul.f32 %v1235_v31, %v1229_v9 }
 0xcb4   :  { %v1248_v32 = vadd.f32 0.4994258, %v1247_v15  ;;  %v1237_v7 = vadd.f32 0.18741608, %v1236_v41 }
 0xcb6   :  { %v1249_v35 = vmul.f32 %v1248_v32, %v1229_v9  ;;  %v1238_v12 = vmul.f32 %v1237_v7, %v1229_v9 }
 0xcb8   :  { %v1250_v44 = vadd.f32 1.0, %v1249_v35  ;;  %v1239_v24 = vadd.f32 1.1283791, %v1238_v12 }
 0xcba   :  { %2897 = vrcp.f32 %v1250_v44  ;;  %v1262_v42 = vand.u32 2147483648, %v1250_v44  ;;  %v1260_v55 = vand.u32 2147483647, %v1250_v44  ;;  %vm1256_vm6 = vweird.f32 %v1250_v44 }
 0xcbb   :  { %v1240_v26 = vmul.f32 %v1239_v24, %v1187_v6 }
 0xcbc   :  { %v1263_v56 = vor.u32 1.1754944e-38, %v1262_v42  ;;  %vm1261_vm11 = vcmp.eq.f32.partialorder %v1260_v55, 8.507059e+37 }
 0xcbf   :  { %v1358_v43 = vpop.xlane.xlu1 %1357 }
 0xcc0   :  { %v2898_v48 = vpop.eup %2897  ;;  %v1362_v50 = vmul.f32 %v1358_v43, %v3065_v10 }
 0xcc1   :  { %v1252_v53 = vmul.f32 %v2898_v48, %v1250_v44  ;;  %vm1257_vm5 = vweird.f32 %v2898_v48 }
 0xcc2   :  { %v1364_v51 = vadd.f32 1e-05, %v1362_v50  ;;  %vm1258_vm7 = vmor %vm1256_vm6, %vm1257_vm5 }
 0xcc3   :  { %v1253_v52 = vsub.f32 1.0, %v1252_v53 }
 0xcc4   :  { %2899 = vrsqrt.f32 %v1364_v51  ;;  %vm1372_vm13 = vweird.f32 %v1364_v51 }
 0xcc5   :  { %v1254_v54 = vmul.f32 %v2898_v48, %v1253_v52 }
 0xcc7   :  { %v1255_v49 = vadd.f32 %v2898_v48, %v1254_v54 }
 0xcc9   :  { %v1259_v47 = vsel %vm1258_vm7, %v2898_v48, %v1255_v49 }
 0xcca   :  { %v1264_v28 = vsel %vm1261_vm11, %v1263_v56, %v1259_v47  ;;  %v2900_v58 = vpop.eup %2899 }
 0xccb   :  { %v1265_v59 = vmul.f32 %v1264_v28, %v1240_v26  ;;  %v1367_v21 = vmul.f32 %v2900_v58, %v1364_v51  ;;  %vm1373_vm12 = vweird.f32 %v2900_v58 }
 0xccc   :  { %vm1374_vm14 = vmor %vm1372_vm13, %vm1373_vm12 }
 0xccd   :  { %v2689_v37 = vclamps-f32 %v1265_v59, 1.0  ;;  %v1368_v18 = vmul.f32 %v2900_v58, %v1367_v21 }
 0xccf   :  { %v1269_v39 = vadd.f32 1.0, %v2689_v37  ;;  %v1369_v62 = vmul.f32 0.5, %v1368_v18 }
 0xcd1   :  { %v1271_v63 = vmul.f32 %v1269_v39, %v1185_v61  ;;  %v1370_v1 = vsub.f32 1.5, %v1369_v62  ;;  %v2961_v61 = vld [vmem:[%s3928_s1 + $0x8] sm:$0xff] }
 0xcd3   :  { %1292 = vmatmul.f32.gmra.mxu3 %v1271_v63  ;;  %v1371_v8 = vmul.f32 %v2900_v58, %v1370_v1 }
 0xcd5   :  { %v1375_v6 = vsel %vm1374_vm14, %v2900_v58, %v1371_v8 }
 0xcd6   :  { %v1386_v9 = vmul.f32 %v1375_v6, %v3494_v60 }
 0xcd8   :  { %2733 = vmatmul.msk.f32.vlgmr.msra.gmra.mxu1 %vm77_vm0, %v1386_v9  ;;  %2735 = vmatmul.msk.f32.vlgmr.msrb.gmra.mxu0 %vm77_vm0, %v1386_v9 }
 0xd55   :  { %v1413_v13 = vpop.f32.mrf.mxu1  ;;  %v1436_v2 = vpop.f32.mrf.mxu0 }
 0xd56   :  { %v3551_v14 = vadd.f32 %v1413_v13, %v1388_v11  ;;  %v1293_v17 = vpop.f32.mrf.mxu3  ;;  %v1437_v46 = vadd.f32 %v1436_v2, %v1389_v27 }
 0xd57   :  { %v1294_v19 = vadd.f32 %v1293_v17, %v1272_v22 }
 0xd58   :  { %v1444_v60 = vmul.f32 %v3551_v14, %v3132_v57  ;;  %v1445_v22 = vmul.f32 %v1437_v46, %v3132_v57  ;;  %v1442_v57 = vmul.f32 %v2960_v4, %v3551_v14 }
 0xd59   :  { %v3558_v23 = vadd.f32 %v1294_v19, %v3301_v16 }
 0xd5a   :  { %1452 = vrot.lane.b32.xlu1 %v1444_v60, %s2995_s28 }
 0xd5b   :  { %v1347_v25 = vsel %vm77_vm0, %v3558_v23, 0.0 }
 0xd5c   :  { %1348 = vadd.xlane.f32.xlu2 %v1347_v25 }
 0xd74   :  { %1454 = vrot.lane.b32.xlu2 %v1445_v22, %s2995_s28 }
 0xdcc   :  { %v1453_v33 = vpop.permute.xlu1 %1452 }
 0xdcf   :  { %v1349_v29 = vpop.xlane.xlu2 %1348 }
 0xdd0   :  { %v1351_v16 = vmul.f32 %v1349_v29, %v3065_v10 }
 0xdd2   :  { %v1353_v0 = vsub.f32 %v3558_v23, %v1351_v16 }
 0xdd4   :  { %v1355_v15 = vmul.f32 %v1353_v0, %v1353_v0 }
 0xdd6   :  { %v1359_v31 = vsel %vm77_vm0, %v1355_v15, 0.0 }
 0xdd7   :  { %1360 = vadd.xlane.f32.xlu0 %v1359_v31  ;;  %v1455_v32 = vpop.permute.xlu2 %1454 }
 0xdd8   :  { %v1460_v35 = vsel %vm77_vm0, %v1453_v33, %v1455_v32 }
 0xdd9   :  { %v1464_v38 = vadd.f32 %v1460_v35, %v1442_v57 }
 0xdeb   :  { %1467 = vrot.lane.b32.xlu0 %v1464_v38, %s2994_s22 }
 0xdf3   :  { %1598 = vrot.lane.b32.xlu0 %v1464_v38, %s3000_s14 }
 0xdfb   :  { %1543 = vrot.lane.b32.xlu0 %v3551_v14, %s3001_s15 }
 0xe03   :  { %1596 = vrot.lane.b32.xlu0 %v1464_v38, %s2997_s11 }
 0xe0b   :  { %1728 = vrot.lane.b32.xlu0 %v1464_v38, %s2996_s10 }
 0xe4a   :  { %v1361_v41 = vpop.xlane.xlu0 %1360 }
 0xe4b   :  { %v1363_v44 = vmul.f32 %v1361_v41, %v3065_v10 }
 0xe4d   :  { %v1365_v7 = vadd.f32 1e-05, %v1363_v44 }
 0xe4f   :  { %2901 = vrsqrt.f32 %v1365_v7  ;;  %vm1382_vm1 = vweird.f32 %v1365_v7 }
 0xe55   :  { %v2902_v48 = vpop.eup %2901 }
 0xe56   :  { %v1377_v12 = vmul.f32 %v2902_v48, %v1365_v7  ;;  %vm1383_vm15 = vweird.f32 %v2902_v48 }
 0xe57   :  { %vm1384_vm2 = vmor %vm1382_vm1, %vm1383_vm15 }
 0xe58   :  { %v1378_v43 = vmul.f32 %v2902_v48, %v1377_v12 }
 0xe5a   :  { %v1379_v50 = vmul.f32 0.5, %v1378_v43 }
 0xe5c   :  { %v1380_v53 = vsub.f32 1.5, %v1379_v50 }
 0xe5d   :  { %v1468_v51 = vpop.permute.xlu0 %1467 }
 0xe5e   :  { %2737 = vmatpush.xpose.msk.msrb.mxu2 %vm218_vm8, %v1468_v51  ;;  %v1381_v52 = vmul.f32 %v2902_v48, %v1380_v53 }
 0xe60   :  { %v1385_v24 = vsel %vm1384_vm2, %v2902_v48, %v1381_v52 }
 0xe61   :  { %2738 = vmatmul.msk.f32.vlgmr.msrb.gmra.mxu2 %vm218_vm8, %v1464_v38  ;;  %v1387_v42 = vmul.f32 %v1385_v24, %v1353_v0 }
 0xe63   :  { %2734 = vmatmul.msk.f32.gmra.mxu1 %vm77_vm0, %v1387_v42  ;;  %2736 = vmatmul.msk.f32.gmra.mxu0 %vm77_vm0, %v1387_v42 }
 0xe65   :  { %v1599_v54 = vpop.permute.xlu0 %1598 }
 0xe6d   :  { %v1544_v55 = vpop.permute.xlu0 %1543 }
 0xe6e   :  { %1564 = vmatpush.msra.mxu2 %v1544_v55 }
 0xee0   :  { %v1416_v49 = vpop.f32.mrf.mxu1  ;;  %v1439_v47 = vpop.f32.mrf.mxu0 }
 0xee1   :  { %v3587_v56 = vadd.f32 %v1416_v49, %v1388_v11  ;;  %v1440_v59 = vadd.f32 %v1439_v47, %v1389_v27  ;;  %v1597_v11 = vpop.permute.xlu0 %1596 }
 0xee3   :  { %v1446_v26 = vmul.f32 %v3587_v56, %v3141_v3  ;;  %v1447_v21 = vmul.f32 %v1440_v59, %v3141_v3  ;;  %v1443_v39 = vmul.f32 %v2961_v61, %v3587_v56 }
 0xee4   :  { %v1490_v28 = vpop.f32.mrf.mxu2 }
 0xee5   :  { %1456 = vrot.lane.b32.xlu2 %v1446_v26, %s2995_s28  ;;  %v1520_v58 = vsel %vm218_vm8, %v1490_v28, -inf }
 0xee6   :  { %1521 = vmax.xlane.f32.xlu1 %v1520_v58 }
 0xee9   :  { %v1729_v13 = vpop.permute.xlu0 %1728 }
 0xeed   :  { %1458 = vrot.lane.b32.xlu2 %v1447_v21, %s2995_s28 }
 0xef5   :  { %1726 = vrot.lane.b32.xlu2 %v1464_v38, %s3002_s16 }
 0xf3f   :  { %v1457_v37 = vpop.permute.xlu2 %1456 }
 0xf47   :  { %v1459_v18 = vpop.permute.xlu2 %1458 }
 0xf48   :  { %v1461_v62 = vsel %vm77_vm0, %v1457_v37, %v1459_v18 }
 0xf49   :  { %v1465_v63 = vadd.f32 %v1461_v62, %v1443_v39 }
 0xf4b   :  { %1494 = vrot.lane.b32.xlu0 %v1465_v63, %s2994_s22  ;;  %1626 = vrot.lane.b32.xlu1 %v1465_v63, %s3000_s14 }
 0xf4f   :  { %v1727_v20 = vpop.permute.xlu2 %1726 }
 0xf53   :  { %1624 = vrot.lane.b32.xlu0 %v1465_v63, %s2997_s11  ;;  %1858 = vrot.lane.b32.xlu1 %v1464_v38, %s2999_s13 }
 0xf59   :  { %v1522_v3 = vpop.xlane.xlu1 %1521 }
 0xf5a   :  { %v1526_v1 = vsub.f32 %v1490_v28, %v1522_v3 }
 0xf5b   :  { %1756 = vrot.lane.b32.xlu0 %v1465_v63, %s2996_s10  ;;  %1856 = vrot.lane.b32.xlu1 %v1464_v38, %s2998_s12 }
 0xf5c   :  { %v1528_v8 = vmul.f32 1.442695, %v1526_v1 }
 0xf5e   :  { %2903 = vpow2.f32 %v1528_v8 }
 0xf63   :  { %1754 = vrot.lane.b32.xlu0 %v1465_v63, %s3002_s16 }
 0xf64   :  { %v2904_v6 = vpop.eup %2903 }
 0xf65   :  { %v1532_v9 = vsel %vm218_vm8, %v2904_v6, 0.0 }
 0xf66   :  { %1533 = vadd.xlane.f32.xlu2 %v1532_v9 }
 0xf6b   :  { %1886 = vrot.lane.b32.xlu0 %v1465_v63, %s2999_s13 }
 0xf7e   :  { %1884 = vrot.lane.b32.xlu2 %v1465_v63, %s2998_s12 }
 0xfbd   :  { %v1627_v17 = vpop.permute.xlu1 %1626  ;;  %v1495_v19 = vpop.permute.xlu0 %1494 }
 0xfbe   :  { %2739 = vmatpush.xpose.msk.msrb.mxu1 %vm218_vm8, %v1495_v19  ;;  %2745 = vmatpush.xpose.msk.msrb.mxu2 %vm218_vm8, %v1627_v17 }
 0xfc1   :  { %2740 = vmatmul.msk.f32.vlgmr.msrb.gmra.mxu1 %vm218_vm8, %v1465_v63 }
 0xfc2   :  { %2743 = vmatpush.xpose.msk.msra.mxu1 %vm218_vm8, %v1599_v54 }
 0xfc5   :  { %v1859_v60 = vpop.permute.xlu1 %1858  ;;  %v1625_v25 = vpop.permute.xlu0 %1624 }
 0xfc6   :  { %2749 = vmatpush.xpose.msk.msrb.mxu1 %vm218_vm8, %v1729_v13 }
 0xfc9   :  { %2744 = vmatmul.msk.f32.vlgmr.msra.gmra.mxu1 %vm218_vm8, %v1597_v11 }
 0xfca   :  { %2755 = vmatpush.xpose.msk.msra.mxu1 %vm218_vm8, %v1859_v60 }
 0xfcd   :  { %v1757_v27 = vpop.permute.xlu0 %1756  ;;  %v1857_v2 = vpop.permute.xlu1 %1856 }
 0xfd1   :  { %2750 = vmatmul.msk.f32.vlgmr.msrb.gmra.mxu1 %vm218_vm8, %v1727_v20 }
 0xfd5   :  { %v1755_v29 = vpop.permute.xlu0 %1754 }
 0xfd9   :  { %v1534_v46 = vpop.xlane.xlu2 %1533  ;;  %2756 = vmatmul.msk.f32.vlgmr.msra.gmra.mxu1 %vm218_vm8, %v1857_v2 }
 0xfda   :  { %2905 = vrcp.f32 %v1534_v46 }
 0xfdd   :  { %v1887_v0 = vpop.permute.xlu0 %1886 }
 0xfe0   :  { %v2906_v22 = vpop.eup %2905 }
 0xfe1   :  { %v1540_v16 = vmul.f32 %v2906_v22, %v2904_v6  ;;  %v1885_v15 = vpop.permute.xlu2 %1884  ;;  %v2815_v6 = vpack.i.bf16 %v3587_v56, %v3551_v14 }
 0xfe3   :  { %2741 = vmatmul.msk.f32.vlgmr.msra.gmra.mxu2 %vm218_vm8, %v1540_v16 }
 0xfe4   :  { %2751 = vmatpush.xpose.msk.msra.mxu2 %vm218_vm8, %v1757_v27 }
 0xfeb   :  { %2746 = vmatmul.msk.f32.vlgmr.msrb.gmra.mxu2 %vm218_vm8, %v1625_v25 }
 0xfec   :  { %2757 = vmatpush.xpose.msk.msrb.mxu2 %vm218_vm8, %v1887_v0 }
 0xff3   :  { %2752 = vmatmul.msk.f32.vlgmr.msra.gmra.mxu2 %vm218_vm8, %v1755_v29 }
 0xffb   :  { %2758 = vmatmul.msk.f32.vlgmr.msrb.gmra.mxu2 %vm218_vm8, %v1885_v15 }
0x103e   :  { %v1517_v31 = vpop.f32.mrf.mxu1 }
0x103f   :  { %v1523_v32 = vsel %vm218_vm8, %v1517_v31, -inf }
0x1040   :  { %1524 = vmax.xlane.f32.xlu0 %v1523_v32 }
0x1046   :  { %v1621_v33 = vpop.f32.mrf.mxu1 }
0x1047   :  { %v1652_v48 = vsel %vm218_vm8, %v1621_v33, -inf }
0x104e   :  { %v1751_v35 = vpop.f32.mrf.mxu1 }
0x104f   :  { %v1782_v50 = vsel %vm218_vm8, %v1751_v35, -inf }
0x1056   :  { %v1881_v4 = vpop.f32.mrf.mxu1 }
0x1057   :  { %v1912_v57 = vsel %vm218_vm8, %v1881_v4, -inf }
0x1058   :  { %1913 = vmax.xlane.f32.xlu0 %v1912_v57 }
0x1066   :  { %v3628_v38 = vpop.f32.mrf.mxu2 }
0x106e   :  { %v1649_v41 = vpop.f32.mrf.mxu2 }
0x106f   :  { %v1655_v44 = vsel %vm218_vm8, %v1649_v41, -inf }
0x1070   :  { %1656 = vmax.xlane.f32.xlu1 %v1655_v44 }
0x1076   :  { %v1779_v7 = vpop.f32.mrf.mxu2 }
0x1077   :  { %v1785_v12 = vsel %vm218_vm8, %v1779_v7, -inf }
0x1078   :  { %1653 = vmax.xlane.f32.xlu1 %v1652_v48  ;;  %1786 = vmax.xlane.f32.xlu2 %v1785_v12 }
0x107e   :  { %v1909_v43 = vpop.f32.mrf.mxu2 }
0x107f   :  { %v1915_v53 = vsel %vm218_vm8, %v1909_v43, -inf }
0x1080   :  { %1783 = vmax.xlane.f32.xlu2 %v1782_v50  ;;  %1916 = vmax.xlane.f32.xlu1 %v1915_v53 }
0x1099   :  { %1570 = vrot.lane.b32.xlu1 %v3587_v56, %s3001_s15 }
0x10b3   :  { %v1525_v51 = vpop.xlane.xlu0 %1524 }
0x10b4   :  { %v1527_v52 = vsub.f32 %v1517_v31, %v1525_v51 }
0x10b6   :  { %v1530_v24 = vmul.f32 1.442695, %v1527_v52 }
0x10b8   :  { %2907 = vpow2.f32 %v1530_v24 }
0x10be   :  { %v2908_v42 = vpop.eup %2907 }
0x10bf   :  { %v1535_v54 = vsel %vm218_vm8, %v2908_v42, 0.0 }
0x10c0   :  { %1536 = vadd.xlane.f32.xlu2 %v1535_v54 }
0x10cb   :  { %v1914_v11 = vpop.xlane.xlu0 %1913 }
0x10cc   :  { %v1918_v17 = vsub.f32 %v1881_v4, %v1914_v11 }
0x10ce   :  { %v1920_v60 = vmul.f32 1.442695, %v1918_v17 }
0x10e3   :  { %v1657_v55 = vpop.xlane.xlu1 %1656 }
0x10e4   :  { %v1659_v49 = vsub.f32 %v1649_v41, %v1657_v55 }
0x10e6   :  { %v1662_v26 = vmul.f32 1.442695, %v1659_v49 }
0x10e8   :  { %2909 = vpow2.f32 %v1662_v26 }
0x10eb   :  { %v1654_v47 = vpop.xlane.xlu1 %1653  ;;  %v1787_v28 = vpop.xlane.xlu2 %1786 }
0x10ec   :  { %v1658_v58 = vsub.f32 %v1621_v33, %v1654_v47  ;;  %v1789_v13 = vsub.f32 %v1779_v7, %v1787_v28 }
0x10ee   :  { %v2910_v59 = vpop.eup %2909  ;;  %v1660_v21 = vmul.f32 1.442695, %v1658_v58  ;;  %v1792_v19 = vmul.f32 1.442695, %v1789_v13 }
0x10ef   :  { %v1667_v37 = vsel %vm218_vm8, %v2910_v59, 0.0 }
0x10f0   :  { %2911 = vpow2.f32 %v1660_v21  ;;  %1668 = vadd.xlane.f32.xlu2 %v1667_v37 }
0x10f3   :  { %v1784_v18 = vpop.xlane.xlu2 %1783  ;;  %v1917_v8 = vpop.xlane.xlu1 %1916 }
0x10f4   :  { %v1788_v61 = vsub.f32 %v1751_v35, %v1784_v18  ;;  %v1919_v25 = vsub.f32 %v1909_v43, %v1917_v8 }
0x10f6   :  { %v2912_v39 = vpop.eup %2911  ;;  %v1790_v62 = vmul.f32 1.442695, %v1788_v61  ;;  %v1922_v46 = vmul.f32 1.442695, %v1919_v25 }
0x10f7   :  { %v1664_v63 = vsel %vm218_vm8, %v2912_v39, 0.0 }
0x10f8   :  { %2913 = vpow2.f32 %v1790_v62  ;;  %1665 = vadd.xlane.f32.xlu0 %v1664_v63  ;;  %v2705_v62 = vld [vmem:[%s3929_s2 + $0xf8] sm:$0xff] }
0x10f9   :  { %2915 = vpow2.f32 %v1792_v19  ;;  %v2701_v63 = vld [vmem:[%s3929_s2 + $0xd8] sm:$0xff]  ;;  %2034 = vmatpush.msrb.mxu1 %v2705_v62 }
0x10fa   :  { %2917 = vpow2.f32 %v1920_v60 }
0x10fb   :  { %2035 = vmatpush.msrb.mxu1 %v2701_v63 }
0x10fe   :  { %v2914_v3 = vpop.eup %2913 }
0x10ff   :  { %v1794_v1 = vsel %vm218_vm8, %v2914_v3, 0.0  ;;  %v2916_v20 = vpop.eup %2915 }
0x1100   :  { %1795 = vadd.xlane.f32.xlu1 %v1794_v1  ;;  %v2918_v2 = vpop.eup %2917  ;;  %v1797_v22 = vsel %vm218_vm8, %v2916_v20, 0.0  ;;  %v2693_v1 = vld [vmem:[%s3929_s2 + $0x98] sm:$0xff] }
0x1101   :  { %v1924_v29 = vsel %vm218_vm8, %v2918_v2, 0.0 }
0x1108   :  { %1804 = vrot.lane.b32.xlu2 %v3551_v14, %s3004_s18 }
0x110b   :  { %v1571_v9 = vpop.permute.xlu1 %1570 }
0x110c   :  { %2816 = vrot.lane.b32.xlu0 %v2815_v6, %s3003_s17  ;;  %1591 = vmatpush.msra.mxu0 %v1571_v9 }
0x1110   :  { %1830 = vrot.lane.b32.xlu2 %v3587_v56, %s3004_s18 }
0x1119   :  { %1934 = vrot.lane.b32.xlu1 %v3551_v14, %s3005_s19 }
0x1133   :  { %v1537_v27 = vpop.xlane.xlu2 %1536 }
0x1134   :  { %2919 = vrcp.f32 %v1537_v27 }
0x1135   :  { %2921 = vpow2.f32 %v1922_v46 }
0x1136   :  { %1798 = vadd.xlane.f32.xlu0 %v1797_v22 }
0x1139   :  { %1925 = vadd.xlane.f32.xlu2 %v1924_v29 }
0x113a   :  { %v2920_v14 = vpop.eup %2919 }
0x113b   :  { %v1541_v16 = vmul.f32 %v2920_v14, %v2908_v42  ;;  %v2922_v0 = vpop.eup %2921 }
0x113c   :  { %v1927_v15 = vsel %vm218_vm8, %v2922_v0, 0.0 }
0x113d   :  { %2742 = vmatmul.msk.f32.vlgmr.msra.gmra.mxu0 %vm218_vm8, %v1541_v16 }
0x1143   :  { %1928 = vadd.xlane.f32.xlu1 %v1927_v15 }
0x1151   :  { %1960 = vrot.lane.b32.xlu2 %v3587_v56, %s3005_s19 }
0x1163   :  { %v1669_v31 = vpop.xlane.xlu2 %1668 }
0x1164   :  { %2923 = vrcp.f32 %v1669_v31 }
0x116a   :  { %v2924_v35 = vpop.eup %2923 }
0x116b   :  { %v1666_v32 = vpop.xlane.xlu0 %1665  ;;  %v1805_v33 = vpop.permute.xlu2 %1804  ;;  %v1673_v48 = vmul.f32 %v2924_v35, %v2910_v59 }
0x116c   :  { %2925 = vrcp.f32 %v1666_v32 }
0x1172   :  { %v2926_v57 = vpop.eup %2925 }
0x1173   :  { %v1796_v4 = vpop.xlane.xlu1 %1795  ;;  %v1672_v12 = vmul.f32 %v2926_v57, %v2912_v39  ;;  %v1831_v43 = vpop.permute.xlu2 %1830 }
0x1174   :  { %2927 = vrcp.f32 %v1796_v4 }
0x117a   :  { %v2928_v56 = vpop.eup %2927 }
0x117b   :  { %v1802_v50 = vmul.f32 %v2928_v56, %v2914_v3  ;;  %v2697_v3 = vld [vmem:[%s3929_s2 + $0xb8] sm:$0xff] }
0x117c   :  { %2036 = vmatpush.msrb.mxu1 %v2697_v3 }
0x117e   :  { %v2817_v41 = vpop.permute.xlu0 %2816  ;;  %2037 = vmatpush.msrb.mxu1 %v2693_v1 }
0x117f   :  { %v2819_v44 = vunpack.i.h.bf16 %v2817_v41  ;;  %v2818_v7 = vunpack.i.l.bf16 %v2817_v41 }
0x1181   :  { %1695 = vmatpush.msra.mxu3 %v2818_v7  ;;  %1721 = vmatpush.msrb.mxu0 %v2819_v44  ;;  %v2825_v44 = vpack.i.bf16 %v3537_v40, %v3528_v36 }
0x1182   :  { %2747 = vmatmul.msk.f32.vlgmr.msra.gmra.mxu3 %vm218_vm8, %v1672_v12  ;;  %2748 = vmatmul.msk.f32.vlgmr.msrb.gmra.mxu0 %vm218_vm8, %v1673_v48 }
0x1183   :  { %1825 = vmatpush.msrb.mxu3 %v1805_v33  ;;  %1851 = vmatpush.msra.mxu0 %v1831_v43 }
0x118a   :  { %2753 = vmatmul.msk.f32.vlgmr.msrb.gmra.mxu3 %vm218_vm8, %v1802_v50 }
0x118b   :  { %v1935_v53 = vpop.permute.xlu1 %1934 }
0x118c   :  { %1955 = vmatpush.msra.mxu3 %v1935_v53 }
0x11a9   :  { %v1799_v51 = vpop.xlane.xlu0 %1798 }
0x11aa   :  { %2929 = vrcp.f32 %v1799_v51 }
0x11ac   :  { %v1926_v52 = vpop.xlane.xlu2 %1925 }
0x11ad   :  { %2931 = vrcp.f32 %v1926_v52 }
0x11b0   :  { %v2930_v24 = vpop.eup %2929 }
0x11b1   :  { %v1803_v42 = vmul.f32 %v2930_v24, %v2916_v20 }
0x11b3   :  { %v2932_v54 = vpop.eup %2931  ;;  %2754 = vmatmul.msk.f32.vlgmr.msra.gmra.mxu0 %vm218_vm8, %v1803_v42 }
0x11b4   :  { %v1932_v55 = vmul.f32 %v2932_v54, %v2918_v2  ;;  %v1961_v49 = vpop.permute.xlu2 %1960 }
0x11b5   :  { %1981 = vmatpush.msrb.mxu0 %v1961_v49 }
0x11b6   :  { %v1929_v26 = vpop.xlane.xlu1 %1928  ;;  %2759 = vmatmul.msk.f32.vlgmr.msra.gmra.mxu3 %vm218_vm8, %v1932_v55  ;;  %v2091_v55 = vperm.slane %v3548_v5, 6 }
0x11b7   :  { %2933 = vrcp.f32 %v1929_v26 }
0x11ba   :  { %v1593_v21 = vpop.f32.mrf.mxu0 }
0x11bd   :  { %v2934_v47 = vpop.eup %2933 }
0x11be   :  { %v1933_v28 = vmul.f32 %v2934_v47, %v2922_v0 }
0x11c0   :  { %2760 = vmatmul.msk.f32.vlgmr.msrb.gmra.mxu0 %vm218_vm8, %v1933_v28  ;;  %v2094_v28 = vperm.slane %v3548_v5, 7 }
0x11ff   :  { %v1723_v37 = vpop.f32.mrf.mxu0 }
0x1205   :  { %v1697_v58 = vpop.f32.mrf.mxu3 }
0x1206   :  { %1988 = vrot.lane.b32.xlu2 %v1697_v58, %s3006_s20 }
0x120d   :  { %v1827_v59 = vpop.f32.mrf.mxu3 }
0x120e   :  { %1996 = vrot.lane.b32.xlu0 %v1827_v59, %s3007_s21 }
0x1230   :  { %v1853_v18 = vpop.f32.mrf.mxu0 }
0x1231   :  { %1998 = vrot.lane.b32.xlu1 %v1853_v18, %s3007_s21  ;;  %s3010_s21 = smov 128  }
0x1239   :  { %v1957_v61 = vpop.f32.mrf.mxu3 }
0x123a   :  { %2004 = vrot.lane.b32.xlu2 %v1957_v61, %s3008_s23 }
0x123d   :  { %v1983_v39 = vpop.f32.mrf.mxu0 }
0x123e   :  { %2006 = vrot.lane.b32.xlu0 %v1983_v39, %s3008_s23 }
0x1242   :  { %1990 = vrot.lane.b32.xlu2 %v1723_v37, %s3006_s20 }
0x1260   :  { %v1989_v8 = vpop.permute.xlu2 %1988 }
0x1261   :  { %v2010_v9 = vsel %vm218_vm8, %v3628_v38, %v1989_v8 }
0x1280   :  { %v1997_v6 = vpop.permute.xlu0 %1996 }
0x1281   :  { %v2012_v11 = vsel %vm762_vm9, %v2010_v9, %v1997_v6  ;;  %v2097_v9 = vperm.slane %v3548_v5, 2 }
0x1294   :  { %v2005_v13 = vpop.permute.xlu2 %2004 }
0x1295   :  { %v2014_v17 = vsel %vm765_vm10, %v2012_v11, %v2005_v13 }
0x1296   :  { %2761 = vmatmul.msk.f32.vlgmr.msrb.gmra.mxu1 %vm77_vm0, %v2014_v17 }
0x129c   :  { %v1991_v19 = vpop.permute.xlu2 %1990 }
0x129d   :  { %v2011_v25 = vsel %vm218_vm8, %v1593_v21, %v1991_v19 }
0x12a3   :  { %v1999_v60 = vpop.permute.xlu1 %1998 }
0x12a4   :  { %v2013_v20 = vsel %vm762_vm9, %v2011_v25, %v1999_v60  ;;  %v2713_v25 = vld [vmem:[%s3930_s3 + $0xf8] sm:$0xff] }
0x12a5   :  { %2246 = vmatpush.msrb.mxu3 %v2713_v25 }
0x12b0   :  { %v2007_v27 = vpop.permute.xlu0 %2006 }
0x12b1   :  { %v2015_v2 = vsel %vm765_vm10, %v2013_v20, %v2007_v27 }
0x12b2   :  { %2762 = vmatmul.msk.f32.gmra.mxu1 %vm77_vm0, %v2015_v2  ;;  %v2712_v2 = vld [vmem:[%s3930_s3 + $0xf0] sm:$0xff] }
0x12b3   :  { %2247 = vmatpush.msrb.mxu3 %v2712_v2 }
0x1313   :  { %v2039_v46 = vpop.f32.mrf.mxu1 }
0x1314   :  { %v3690_v38 = vadd.f32 %v2039_v46, %v3486_v45  ;;  %v2820_v45 = vpack.i.bf16 %v3519_v34, %v3510_v30 }
0x1316   :  { %v2047_v22 = vsel %vm77_vm0, %v3690_v38, 0.0 }
0x1317   :  { %2048 = vadd.xlane.f32.xlu2 %v2047_v22 }
0x132f   :  { %v2042_v29 = vpop.f32.mrf.mxu1 }
0x1330   :  { %v3695_v14 = vadd.f32 %v2042_v29, %v3558_v23  ;;  %v2711_v29 = vld [vmem:[%s3930_s3 + $0xe8] sm:$0xff] }
0x1331   :  { %2248 = vmatpush.msrb.mxu3 %v2711_v29 }
0x1332   :  { %v2050_v16 = vsel %vm77_vm0, %v3695_v14, 0.0 }
0x1333   :  { %2051 = vadd.xlane.f32.xlu0 %v2050_v16 }
0x1347   :  { %2821 = vrot.lane.b32.xlu0 %v2820_v45, %s2994_s22 }
0x138a   :  { %v2049_v0 = vpop.xlane.xlu2 %2048 }
0x138b   :  { %v2053_v15 = vmul.f32 %v2049_v0, %v3065_v10 }
0x138d   :  { %v2055_v31 = vsub.f32 %v3690_v38, %v2053_v15  ;;  %v2710_v15 = vld [vmem:[%s3930_s3 + $0xe0] sm:$0xff] }
0x138e   :  { %2249 = vmatpush.msrb.mxu3 %v2710_v15 }
0x138f   :  { %v2057_v32 = vmul.f32 %v2055_v31, %v2055_v31 }
0x1391   :  { %v2059_v33 = vsel %vm77_vm0, %v2057_v32, 0.0 }
0x1392   :  { %2060 = vadd.xlane.f32.xlu1 %v2059_v33  ;;  %v2709_v33 = vld [vmem:[%s3930_s3 + $0xd8] sm:$0xff] }
0x1393   :  { %2250 = vmatpush.msrb.mxu3 %v2709_v33 }
0x13a6   :  { %v2052_v23 = vpop.xlane.xlu0 %2051 }
0x13a7   :  { %v2054_v35 = vmul.f32 %v2052_v23, %v3065_v10 }
0x13a9   :  { %v2056_v4 = vsub.f32 %v3695_v14, %v2054_v35 }
0x13ab   :  { %v2058_v57 = vmul.f32 %v2056_v4, %v2056_v4 }
0x13ad   :  { %v2062_v41 = vsel %vm77_vm0, %v2058_v57, 0.0 }
0x13ae   :  { %2063 = vadd.xlane.f32.xlu2 %v2062_v41 }
0x13b9   :  { %v2822_v30 = vpop.permute.xlu0 %2821 }
0x13ba   :  { %v2823_v7 = vunpack.i.l.bf16 %v2822_v30  ;;  %v2824_v12 = vunpack.i.h.bf16 %v2822_v30  ;;  %v2707_v30 = vld [vmem:[%s3930_s3 + $0xc8] sm:$0xff] }
0x13bc   :  { %2132 = vmatpush.msra.mxu2 %v2823_v7 }
0x13be   :  { %2133 = vmatpush.msra.mxu2 %v2824_v12 }
0x13c6   :  { %2826 = vrot.lane.b32.xlu2 %v2825_v44, %s2994_s22 }
0x1405   :  { %v2061_v34 = vpop.xlane.xlu1 %2060 }
0x1406   :  { %v2065_v48 = vmul.f32 %v2061_v34, %v3065_v10 }
0x1408   :  { %v2067_v43 = vadd.f32 1e-05, %v2065_v48  ;;  %v2706_v48 = vld [vmem:[%s3930_s3 + $0xc0] sm:$0xff] }
0x140a   :  { %2935 = vrsqrt.f32 %v2067_v43  ;;  %vm2075_vm9 = vweird.f32 %v2067_v43 }
0x1410   :  { %v2936_v56 = vpop.eup %2935 }
0x1411   :  { %v2070_v50 = vmul.f32 %v2936_v56, %v2067_v43  ;;  %vm2076_vm8 = vweird.f32 %v2936_v56 }
0x1412   :  { %vm2077_vm10 = vmor %vm2075_vm9, %vm2076_vm8 }
0x1413   :  { %v2071_v53 = vmul.f32 %v2936_v56, %v2070_v50 }
0x1415   :  { %v2072_v51 = vmul.f32 0.5, %v2071_v53 }
0x1417   :  { %v2073_v52 = vsub.f32 1.5, %v2072_v51 }
0x1419   :  { %v2074_v24 = vmul.f32 %v2936_v56, %v2073_v52 }
0x141b   :  { %v2078_v40 = vsel %vm2077_vm10, %v2936_v56, %v2074_v24 }
0x141c   :  { %v2089_v49 = vmul.f32 %v2078_v40, %v2055_v31 }
0x141e   :  { %v2092_v26 = vmul.f32 %v2091_v55, %v2089_v49 }
0x1420   :  { %v3715_v18 = vadd.f32 %v2094_v28, %v2092_v26 }
0x1421   :  { %v2064_v36 = vpop.xlane.xlu2 %2063 }
0x1422   :  { %v2066_v42 = vmul.f32 %v2064_v36, %v3065_v10 }
0x1424   :  { %v2068_v54 = vadd.f32 1e-05, %v2066_v42 }
0x1426   :  { %2937 = vrsqrt.f32 %v2068_v54  ;;  %vm2085_vm5 = vweird.f32 %v2068_v54 }
0x1429   :  { %v2827_v47 = vpop.permute.xlu2 %2826 }
0x142a   :  { %v2828_v58 = vunpack.i.l.bf16 %v2827_v47  ;;  %v2829_v21 = vunpack.i.h.bf16 %v2827_v47 }
0x142c   :  { %v2938_v59 = vpop.eup %2937  ;;  %2134 = vmatpush.msra.mxu2 %v2828_v58 }
0x142d   :  { %v2080_v37 = vmul.f32 %v2938_v59, %v2068_v54  ;;  %vm2086_vm4 = vweird.f32 %v2938_v59 }
0x142e   :  { %2135 = vmatpush.msra.mxu2 %v2829_v21  ;;  %vm2087_vm6 = vmor %vm2085_vm5, %vm2086_vm4 }
0x142f   :  { %v2081_v61 = vmul.f32 %v2938_v59, %v2080_v37  ;;  %2763 = vmatmul.msk.f32.vlgmr.msra.gmra.mxu2 %vm77_vm0, %v3715_v18 }
0x1431   :  { %v2082_v39 = vmul.f32 0.5, %v2081_v61 }
0x1433   :  { %v2083_v62 = vsub.f32 1.5, %v2082_v39 }
0x1435   :  { %v2084_v63 = vmul.f32 %v2938_v59, %v2083_v62 }
0x1437   :  { %v2088_v3 = vsel %vm2087_vm6, %v2938_v59, %v2084_v63 }
0x1438   :  { %v2090_v1 = vmul.f32 %v2088_v3, %v2056_v4  ;;  %v2708_v4 = vld [vmem:[%s3930_s3 + $0xd0] sm:$0xff] }
0x1439   :  { %2251 = vmatpush.msrb.mxu3 %v2708_v4 }
0x143a   :  { %v2093_v8 = vmul.f32 %v2091_v55, %v2090_v1 }
0x143b   :  { %2252 = vmatpush.msrb.mxu3 %v2707_v30 }
0x143c   :  { %v3719_v6 = vadd.f32 %v2094_v28, %v2093_v8 }
0x143d   :  { %2253 = vmatpush.msrb.mxu3 %v2706_v48 }
0x143e   :  { %2764 = vmatmul.msk.f32.gmra.mxu2 %vm77_vm0, %v3719_v6 }
0x14b2   :  { %v2137_v11 = vpop.f32.mrf.mxu2 }
0x14b3   :  { %v3724_v13 = vadd.f32 %v2137_v11, %v2097_v9 }
0x14b5   :  { %v3727_v17 = vmul.f32 0.70710677, %v3724_v13  ;;  %v2143_v15 = vmul.f32 0.5, %v3724_v13 }
0x14b7   :  { %v2147_v19 = vmul.f32 %v3727_v17, %v3727_v17 }
0x14b9   :  { %v2148_v60 = vmin.f32 %v2147_v19, 16.0 }
0x14bb   :  { %v2149_v20 = vmul.f32 2.1237322e-06, %v2148_v60  ;;  %v2160_v27 = vmul.f32 3.8918573e-05, %v2148_v60 }
0x14bd   :  { %v2150_v46 = vadd.f32 0.00028619796, %v2149_v20  ;;  %v2161_v22 = vadd.f32 0.001143296, %v2160_v27 }
0x14bf   :  { %v2151_v16 = vmul.f32 %v2150_v46, %v2148_v60  ;;  %v2162_v0 = vmul.f32 %v2161_v22, %v2148_v60 }
0x14c1   :  { %v2152_v31 = vadd.f32 0.0036580483, %v2151_v16  ;;  %v2163_v45 = vadd.f32 0.014752088, %v2162_v0  ;;  %v2140_v32 = vpop.f32.mrf.mxu2 }
0x14c2   :  { %v3746_v23 = vadd.f32 %v2140_v32, %v2097_v9 }
0x14c3   :  { %v2164_v35 = vmul.f32 %v2163_v45, %v2148_v60  ;;  %v2153_v41 = vmul.f32 %v2152_v31, %v2148_v60 }
0x14c4   :  { %v3752_v57 = vmul.f32 0.70710677, %v3746_v23 }
0x14c5   :  { %v2165_v44 = vadd.f32 0.112945676, %v2164_v35  ;;  %v2154_v43 = vadd.f32 0.05243302, %v2153_v41 }
0x14c6   :  { %v2187_v34 = vmul.f32 %v3752_v57, %v3752_v57 }
0x14c7   :  { %v2166_v7 = vmul.f32 %v2165_v44, %v2148_v60  ;;  %v2155_v36 = vmul.f32 %v2154_v43, %v2148_v60 }
0x14c8   :  { %v2188_v12 = vmin.f32 %v2187_v34, 16.0 }
0x14c9   :  { %v2167_v56 = vadd.f32 0.4994258, %v2166_v7  ;;  %v2156_v49 = vadd.f32 0.18741608, %v2155_v36 }
0x14ca   :  { %v2189_v50 = vmul.f32 2.1237322e-06, %v2188_v12  ;;  %v2200_v53 = vmul.f32 3.8918573e-05, %v2188_v12 }
0x14cb   :  { %v2168_v51 = vmul.f32 %v2167_v56, %v2148_v60  ;;  %v2157_v59 = vmul.f32 %v2156_v49, %v2148_v60  ;;  %v2144_v56 = vmul.f32 0.5, %v3746_v23 }
0x14cc   :  { %v2190_v52 = vadd.f32 0.00028619796, %v2189_v50  ;;  %v2201_v24 = vadd.f32 0.001143296, %v2200_v53 }
0x14cd   :  { %v2169_v40 = vadd.f32 1.0, %v2168_v51  ;;  %v2158_v63 = vadd.f32 1.1283791, %v2157_v59  ;;  %v2231_v51 = vperm.slane %v3548_v5, 3 }
0x14ce   :  { %v2191_v42 = vmul.f32 %v2190_v52, %v2188_v12  ;;  %v2202_v54 = vmul.f32 %v2201_v24, %v2188_v12 }
0x14cf   :  { %2939 = vrcp.f32 %v2169_v40  ;;  %v2181_v3 = vand.u32 2147483648, %v2169_v40  ;;  %v2179_v9 = vand.u32 2147483647, %v2169_v40  ;;  %vm2175_vm11 = vweird.f32 %v2169_v40 }
0x14d0   :  { %v2203_v55 = vadd.f32 0.014752088, %v2202_v54  ;;  %v2192_v26 = vadd.f32 0.0036580483, %v2191_v42  ;;  %v2159_v60 = vmul.f32 %v2158_v63, %v3727_v17 }
0x14d1   :  { %v2182_v20 = vor.u32 1.1754944e-38, %v2181_v3  ;;  %vm2180_vm13 = vcmp.eq.f32.partialorder %v2179_v9, 8.507059e+37 }
0x14d2   :  { %v2204_v47 = vmul.f32 %v2203_v55, %v2188_v12  ;;  %v2193_v21 = vmul.f32 %v2192_v26, %v2188_v12 }
0x14d4   :  { %v2205_v28 = vadd.f32 0.112945676, %v2204_v47  ;;  %v2194_v1 = vadd.f32 0.05243302, %v2193_v21 }
0x14d5   :  { %v2940_v58 = vpop.eup %2939 }
0x14d6   :  { %v2171_v37 = vmul.f32 %v2940_v58, %v2169_v40  ;;  %v2206_v61 = vmul.f32 %v2205_v28, %v2188_v12  ;;  %vm2176_vm7 = vweird.f32 %v2940_v58  ;;  %v2195_v27 = vmul.f32 %v2194_v1, %v2188_v12 }
0x14d7   :  { %vm2177_vm12 = vmor %vm2175_vm11, %vm2176_vm7 }
0x14d8   :  { %v2172_v39 = vsub.f32 1.0, %v2171_v37  ;;  %v2207_v62 = vadd.f32 0.4994258, %v2206_v61  ;;  %v2196_v29 = vadd.f32 0.18741608, %v2195_v27  ;;  %v2963_v37 = vld [vmem:[%s3929_s2 + $0xc8] sm:$0xff] }
0x14da   :  { %v2173_v8 = vmul.f32 %v2940_v58, %v2172_v39  ;;  %v2208_v11 = vmul.f32 %v2207_v62, %v2188_v12  ;;  %v2197_v45 = vmul.f32 %v2196_v29, %v2188_v12  ;;  %v2964_v39 = vld [vmem:[%s3929_s2 + $0xa8] sm:$0xff]  ;;  %v2732_v29 = vld [vmem:[%s3931_s4 + $0x30] sm:$0x3] }
0x14db   :  { %v2965_v62 = vld [vmem:[%s3929_s2 + $0x88] sm:$0xff] }
0x14dc   :  { %v2174_v19 = vadd.f32 %v2940_v58, %v2173_v8  ;;  %v2209_v25 = vadd.f32 1.0, %v2208_v11  ;;  %v2198_v41 = vadd.f32 1.1283791, %v2197_v45  ;;  %v2835_v63 = vpack.i.bf16 %v2965_v62, %v2964_v39  ;;  %v2692_v39 = vld [vmem:[%s3929_s2 + $0x90] sm:$0xff] }
0x14de   :  { %v2178_v2 = vsel %vm2177_vm12, %v2940_v58, %v2174_v19  ;;  %2941 = vrcp.f32 %v2209_v25  ;;  %v2221_v4 = vand.u32 2147483648, %v2209_v25  ;;  %v2219_v44 = vand.u32 2147483647, %v2209_v25 }
0x14df   :  { %v2183_v46 = vsel %vm2180_vm13, %v2182_v20, %v2178_v2  ;;  %vm2215_vm15 = vweird.f32 %v2209_v25  ;;  %v2199_v7 = vmul.f32 %v2198_v41, %v3752_v57 }
0x14e0   :  { %v2184_v22 = vmul.f32 %v2183_v46, %v2159_v60  ;;  %v2222_v34 = vor.u32 1.1754944e-38, %v2221_v4  ;;  %vm2220_vm2 = vcmp.eq.f32.partialorder %v2219_v44, 8.507059e+37  ;;  %v2310_v44 = vperm.slane %v2732_v29, 1 }
0x14e2   :  { %v2765_v16 = vclamps-f32 %v2184_v22, 1.0 }
0x14e4   :  { %v2942_v0 = vpop.eup %2941  ;;  %v2227_v31 = vadd.f32 1.0, %v2765_v16 }
0x14e5   :  { %v2211_v32 = vmul.f32 %v2942_v0, %v2209_v25  ;;  %vm2216_vm14 = vweird.f32 %v2942_v0 }
0x14e6   :  { %v2229_v33 = vmul.f32 %v2227_v31, %v2143_v15  ;;  %vm2217_vm1 = vmor %vm2215_vm15, %vm2216_vm14 }
0x14e7   :  { %v2212_v35 = vsub.f32 1.0, %v2211_v32  ;;  %v2307_v32 = vperm.slane %v2732_v29, 0 }
0x14e8   :  { %2767 = vmatmul.msk.f32.vlgmr.msrb.gmra.mxu3 %vm984_vm3, %v2229_v33 }
0x14e9   :  { %v2213_v17 = vmul.f32 %v2942_v0, %v2212_v35 }
0x14eb   :  { %v2214_v30 = vadd.f32 %v2942_v0, %v2213_v17 }
0x14ed   :  { %v2218_v48 = vsel %vm2217_vm1, %v2942_v0, %v2214_v30 }
0x14ee   :  { %v2223_v13 = vsel %vm2220_vm2, %v2222_v34, %v2218_v48 }
0x14ef   :  { %v2224_v12 = vmul.f32 %v2223_v13, %v2199_v7 }
0x14f1   :  { %v2766_v43 = vclamps-f32 %v2224_v12, 1.0 }
0x14f3   :  { %v2228_v50 = vadd.f32 1.0, %v2766_v43 }
0x14f5   :  { %v2230_v53 = vmul.f32 %v2228_v50, %v2144_v56 }
0x14f7   :  { %2768 = vmatmul.msk.f32.gmra.mxu3 %vm984_vm3, %v2230_v53  ;;  %v3801_v53 = vld [vmem:[%s3931_s4 + $0x20] sm:$0xff]  ;;  %s2634_s4 = sshll.u32 %s3934_s7, 4  ;;  %s2635_s4 = int_to_ptr.hbm [resolvable:$true] %s2634_s4 }
0x156b   :  { %v2255_v52 = vpop.f32.mrf.mxu3 }
0x156c   :  { %v2256_v24 = vadd.f32 %v2255_v52, %v2231_v51 }
0x156e   :  { %v2261_v36 = vadd.f32 %v2256_v24, %v3715_v18 }
0x1570   :  { %v2263_v40 = vsel %vm77_vm0, %v2261_v36, 0.0 }
0x1571   :  { %2264 = vadd.xlane.f32.xlu1 %v2263_v40 }
0x157a   :  { %v2258_v57 = vpop.f32.mrf.mxu3 }
0x157b   :  { %v2259_v42 = vadd.f32 %v2258_v57, %v2231_v51  ;;  %v2313_v51 = vperm.slane %v3801_v53, 4 }
0x157d   :  { %v2262_v54 = vadd.f32 %v2259_v42, %v3719_v6  ;;  %v2962_v6 = vld [vmem:[%s3929_s2 + $0xe8] sm:$0xff] }
0x157e   :  { %v2830_v61 = vpack.i.bf16 %v2963_v37, %v2962_v6  ;;  %v2704_v6 = vld [vmem:[%s3929_s2 + $0xf0] sm:$0xff] }
0x157f   :  { %v2266_v55 = vsel %vm77_vm0, %v2262_v54, 0.0  ;;  %2420 = vmatpush.msra.mxu1 %v2704_v6  ;;  %v2700_v37 = vld [vmem:[%s3929_s2 + $0xd0] sm:$0xff] }
0x1580   :  { %2267 = vadd.xlane.f32.xlu0 %v2266_v55 }
0x1581   :  { %2421 = vmatpush.msra.mxu1 %v2700_v37 }
0x15e4   :  { %v2265_v23 = vpop.xlane.xlu1 %2264 }
0x15e5   :  { %v2269_v49 = vmul.f32 %v2265_v23, %v3065_v10 }
0x15e7   :  { %v2271_v26 = vsub.f32 %v2261_v36, %v2269_v49 }
0x15e9   :  { %v2273_v47 = vmul.f32 %v2271_v26, %v2271_v26 }
0x15eb   :  { %v2275_v5 = vsel %vm77_vm0, %v2273_v47, 0.0 }
0x15ec   :  { %2276 = vadd.xlane.f32.xlu1 %v2275_v5 }
0x15f3   :  { %v2268_v28 = vpop.xlane.xlu0 %2267 }
0x15f4   :  { %v2270_v18 = vmul.f32 %v2268_v28, %v3065_v10 }
0x15f6   :  { %v2272_v58 = vsub.f32 %v2262_v54, %v2270_v18 }
0x15f8   :  { %v2274_v59 = vmul.f32 %v2272_v58, %v2272_v58 }
0x15fa   :  { %v2278_v21 = vsel %vm77_vm0, %v2274_v59, 0.0 }
0x15fb   :  { %2279 = vadd.xlane.f32.xlu2 %v2278_v21 }
0x1605   :  { %2831 = vrot.lane.b32.xlu1 %v2830_v61, %s2995_s28  ;;  %v2696_v61 = vld [vmem:[%s3929_s2 + $0xb0] sm:$0xff] }
0x1606   :  { %2422 = vmatpush.msra.mxu1 %v2696_v61 }
0x1608   :  { %2423 = vmatpush.msra.mxu1 %v2692_v39  ;;  %v2715_v39 = vld [vmem:[%s3930_s3 + $0x108] sm:$0xff] }
0x160d   :  { %2836 = vrot.lane.b32.xlu1 %v2835_v63, %s2995_s28  ;;  %s3009_s28 = smov [#allocation2]  }
0x160e   :  { %s2632_s17 = sshll.u32 %s3009_s28, 4  ;;  %s2633_s17 = int_to_ptr.vmem [resolvable:$true] %s2632_s17 }
0x165f   :  { %v2277_v3 = vpop.xlane.xlu1 %2276 }
0x1660   :  { %v2281_v1 = vmul.f32 %v2277_v3, %v3065_v10 }
0x1662   :  { %v2283_v8 = vadd.f32 1e-05, %v2281_v1 }
0x1664   :  { %2943 = vrsqrt.f32 %v2283_v8  ;;  %vm2291_vm9 = vweird.f32 %v2283_v8 }
0x166a   :  { %v2944_v9 = vpop.eup %2943 }
0x166b   :  { %v2286_v11 = vmul.f32 %v2944_v9, %v2283_v8  ;;  %vm2292_vm8 = vweird.f32 %v2944_v9 }
0x166c   :  { %vm2293_vm10 = vmor %vm2291_vm9, %vm2292_vm8 }
0x166d   :  { %v2287_v19 = vmul.f32 %v2944_v9, %v2286_v11 }
0x166e   :  { %v2280_v25 = vpop.xlane.xlu2 %2279 }
0x166f   :  { %v2288_v20 = vmul.f32 0.5, %v2287_v19  ;;  %v2282_v27 = vmul.f32 %v2280_v25, %v3065_v10 }
0x1671   :  { %v2289_v60 = vsub.f32 1.5, %v2288_v20  ;;  %v2284_v2 = vadd.f32 1e-05, %v2282_v27 }
0x1673   :  { %2945 = vrsqrt.f32 %v2284_v2  ;;  %v2290_v46 = vmul.f32 %v2944_v9, %v2289_v60  ;;  %vm2301_vm5 = vweird.f32 %v2284_v2 }
0x1675   :  { %v2294_v16 = vsel %vm2293_vm10, %v2944_v9, %v2290_v46 }
0x1676   :  { %v2305_v33 = vmul.f32 %v2294_v16, %v2271_v26 }
0x1677   :  { %v2832_v22 = vpop.permute.xlu1 %2831 }
0x1678   :  { %v2833_v0 = vunpack.i.l.bf16 %v2832_v22  ;;  %v2834_v45 = vunpack.i.h.bf16 %v2832_v22  ;;  %v2308_v41 = vmul.f32 %v2307_v32, %v2305_v33  ;;  %v2729_v33 = vld [vmem:[%s3930_s3 + $0x178] sm:$0xff] }
0x1679   :  { %v2946_v15 = vpop.eup %2945  ;;  %2520 = vmatpush.msrb.mxu2 %v2729_v33 }
0x167a   :  { %v2296_v31 = vmul.f32 %v2946_v15, %v2284_v2  ;;  %2344 = vmatpush.msra.mxu0 %v2833_v0  ;;  %vm2302_vm4 = vweird.f32 %v2946_v15  ;;  %v2311_v13 = vadd.f32 %v2310_v44, %v2308_v41  ;;  %v2401_v41 = vperm.slane %v3801_v53, 1 }
0x167b   :  { %vm2303_vm6 = vmor %vm2301_vm5, %vm2302_vm4 }
0x167c   :  { %v2297_v35 = vmul.f32 %v2946_v15, %v2296_v31  ;;  %2345 = vmatpush.msra.mxu0 %v2834_v45 }
0x167e   :  { %v2298_v4 = vmul.f32 0.5, %v2297_v35  ;;  %v2728_v35 = vld [vmem:[%s3930_s3 + $0x170] sm:$0xff] }
0x167f   :  { %v2837_v17 = vpop.permute.xlu1 %2836  ;;  %2521 = vmatpush.msrb.mxu2 %v2728_v35 }
0x1680   :  { %v2299_v30 = vsub.f32 1.5, %v2298_v4  ;;  %v2838_v34 = vunpack.i.l.bf16 %v2837_v17  ;;  %v2839_v48 = vunpack.i.h.bf16 %v2837_v17  ;;  %v2727_v4 = vld [vmem:[%s3930_s3 + $0x168] sm:$0xff]  ;;  %v2726_v17 = vld [vmem:[%s3930_s3 + $0x160] sm:$0xff] }
0x1681   :  { %2522 = vmatpush.msrb.mxu2 %v2727_v4 }
0x1682   :  { %v2300_v7 = vmul.f32 %v2946_v15, %v2299_v30  ;;  %2346 = vmatpush.msra.mxu0 %v2838_v34 }
0x1683   :  { %2523 = vmatpush.msrb.mxu2 %v2726_v17 }
0x1684   :  { %v2304_v12 = vsel %vm2303_vm6, %v2946_v15, %v2300_v7  ;;  %2347 = vmatpush.msra.mxu0 %v2839_v48  ;;  %v2724_v7 = vld [vmem:[%s3930_s3 + $0x150] sm:$0xff] }
0x1685   :  { %2769 = vmatmul.msk.f32.vlgmr.msra.gmra.mxu0 %vm77_vm0, %v2311_v13  ;;  %v2306_v43 = vmul.f32 %v2304_v12, %v2272_v58 }
0x1687   :  { %v2309_v56 = vmul.f32 %v2307_v32, %v2306_v43  ;;  %v2722_v43 = vld [vmem:[%s3930_s3 + $0x140] sm:$0xff] }
0x1689   :  { %v2312_v50 = vadd.f32 %v2310_v44, %v2309_v56  ;;  %v2725_v44 = vld [vmem:[%s3930_s3 + $0x158] sm:$0xff] }
0x168a   :  { %2524 = vmatpush.msrb.mxu2 %v2725_v44 }
0x168c   :  { %2525 = vmatpush.msrb.mxu2 %v2724_v7 }
0x168d   :  { %2770 = vmatmul.msk.f32.gmra.mxu0 %vm77_vm0, %v2312_v50 }
0x1702   :  { %v2349_v52 = vpop.f32.mrf.mxu0 }
0x1703   :  { %v2350_v24 = vadd.f32 %v2349_v52, %v2313_v51 }
0x1705   :  { %v2355_v36 = vadd.f32 %v2350_v24, %v2311_v13  ;;  %v2723_v13 = vld [vmem:[%s3930_s3 + $0x148] sm:$0xff] }
0x1706   :  { %2526 = vmatpush.msrb.mxu2 %v2723_v13 }
0x1707   :  { %v2357_v40 = vsel %vm77_vm0, %v2355_v36, 0.0 }
0x1708   :  { %2358 = vadd.xlane.f32.xlu0 %v2357_v40  ;;  %2527 = vmatpush.msrb.mxu2 %v2722_v43  ;;  %v2720_v40 = vld [vmem:[%s3930_s3 + $0x130] sm:$0xff] }
0x170a   :  { %v2352_v57 = vpop.f32.mrf.mxu0 }
0x170b   :  { %v2353_v42 = vadd.f32 %v2352_v57, %v2313_v51 }
0x170d   :  { %v2356_v54 = vadd.f32 %v2353_v42, %v2312_v50  ;;  %v2721_v50 = vld [vmem:[%s3930_s3 + $0x138] sm:$0xff] }
0x170e   :  { %2528 = vmatpush.msrb.mxu2 %v2721_v50 }
0x170f   :  { %v2360_v55 = vsel %vm77_vm0, %v2356_v54, 0.0 }
0x1710   :  { %2361 = vadd.xlane.f32.xlu1 %v2360_v55  ;;  %2529 = vmatpush.msrb.mxu2 %v2720_v40 }
0x177b   :  { %v2359_v23 = vpop.xlane.xlu0 %2358 }
0x177c   :  { %v2363_v49 = vmul.f32 %v2359_v23, %v3065_v10 }
0x177e   :  { %v2365_v26 = vsub.f32 %v2355_v36, %v2363_v49 }
0x1780   :  { %v2367_v47 = vmul.f32 %v2365_v26, %v2365_v26 }
0x1782   :  { %v2369_v5 = vsel %vm77_vm0, %v2367_v47, 0.0 }
0x1783   :  { %v2362_v28 = vpop.xlane.xlu1 %2361  ;;  %2370 = vadd.xlane.f32.xlu2 %v2369_v5 }
0x1784   :  { %v2364_v18 = vmul.f32 %v2362_v28, %v3065_v10  ;;  %v2717_v28 = vld [vmem:[%s3930_s3 + $0x118] sm:$0xff] }
0x1786   :  { %v2366_v58 = vsub.f32 %v2356_v54, %v2364_v18  ;;  %v2719_v54 = vld [vmem:[%s3930_s3 + $0x128] sm:$0xff] }
0x1787   :  { %2530 = vmatpush.msrb.mxu2 %v2719_v54 }
0x1788   :  { %v2368_v59 = vmul.f32 %v2366_v58, %v2366_v58 }
0x178a   :  { %v2372_v21 = vsel %vm77_vm0, %v2368_v59, 0.0 }
0x178b   :  { %2373 = vadd.xlane.f32.xlu0 %v2372_v21  ;;  %v2716_v21 = vld [vmem:[%s3930_s3 + $0x110] sm:$0xff] }
0x17f6   :  { %v2371_v62 = vpop.xlane.xlu2 %2370 }
0x17f7   :  { %v2375_v63 = vmul.f32 %v2371_v62, %v3065_v10 }
0x17f9   :  { %v2377_v3 = vadd.f32 1e-05, %v2375_v63 }
0x17fb   :  { %2947 = vrsqrt.f32 %v2377_v3  ;;  %vm2385_vm11 = vweird.f32 %v2377_v3 }
0x17fe   :  { %v2374_v1 = vpop.xlane.xlu0 %2373 }
0x17ff   :  { %v2376_v8 = vmul.f32 %v2374_v1, %v3065_v10 }
0x1801   :  { %v2948_v9 = vpop.eup %2947  ;;  %v2378_v11 = vadd.f32 1e-05, %v2376_v8 }
0x1802   :  { %v2380_v19 = vmul.f32 %v2948_v9, %v2377_v3  ;;  %vm2386_vm7 = vweird.f32 %v2948_v9  ;;  %v2714_v3 = vld [vmem:[%s3930_s3 + $0x100] sm:$0xff] }
0x1803   :  { %2949 = vrsqrt.f32 %v2378_v11  ;;  %vm2387_vm12 = vmor %vm2385_vm11, %vm2386_vm7  ;;  %vm2395_vm14 = vweird.f32 %v2378_v11 }
0x1804   :  { %v2381_v25 = vmul.f32 %v2948_v9, %v2380_v19 }
0x1806   :  { %v2382_v20 = vmul.f32 0.5, %v2381_v25 }
0x1808   :  { %v2383_v27 = vsub.f32 1.5, %v2382_v20 }
0x1809   :  { %v2950_v60 = vpop.eup %2949 }
0x180a   :  { %v2384_v2 = vmul.f32 %v2948_v9, %v2383_v27  ;;  %v2390_v46 = vmul.f32 %v2950_v60, %v2378_v11  ;;  %vm2396_vm13 = vweird.f32 %v2950_v60 }
0x180b   :  { %vm2397_vm15 = vmor %vm2395_vm14, %vm2396_vm13 }
0x180c   :  { %v2388_v22 = vsel %vm2387_vm12, %v2948_v9, %v2384_v2  ;;  %v2391_v29 = vmul.f32 %v2950_v60, %v2390_v46 }
0x180d   :  { %v2399_v16 = vmul.f32 %v2388_v22, %v2365_v26  ;;  %v2718_v26 = vld [vmem:[%s3930_s3 + $0x120] sm:$0xff] }
0x180e   :  { %v2392_v0 = vmul.f32 0.5, %v2391_v29  ;;  %2531 = vmatpush.msrb.mxu2 %v2718_v26 }
0x180f   :  { %2771 = vmatmul.msk.f32.vlgmr.msra.gmra.mxu1 %vm77_vm0, %v2399_v16 }
0x1810   :  { %v2393_v15 = vsub.f32 1.5, %v2392_v0  ;;  %2532 = vmatpush.msrb.mxu2 %v2717_v28 }
0x1812   :  { %v2394_v31 = vmul.f32 %v2950_v60, %v2393_v15  ;;  %2533 = vmatpush.msrb.mxu2 %v2716_v21 }
0x1814   :  { %v2398_v45 = vsel %vm2397_vm15, %v2950_v60, %v2394_v31  ;;  %2534 = vmatpush.msrb.mxu2 %v2715_v39 }
0x1815   :  { %v2400_v32 = vmul.f32 %v2398_v45, %v2366_v58 }
0x1816   :  { %2535 = vmatpush.msrb.mxu2 %v2714_v3 }
0x1817   :  { %2772 = vmatmul.msk.f32.gmra.mxu1 %vm77_vm0, %v2400_v32 }
0x188c   :  { %v2425_v30 = vpop.f32.mrf.mxu1 }
0x188d   :  { %v3842_v34 = vadd.f32 %v2425_v30, %v2401_v41 }
0x188f   :  { %v3848_v48 = vmul.f32 0.70710677, %v3842_v34 }
0x1891   :  { %v2435_v12 = vmul.f32 %v3848_v48, %v3848_v48 }
0x1893   :  { %v2436_v56 = vmin.f32 %v2435_v12, 16.0 }
0x1894   :  { %v2428_v51 = vpop.f32.mrf.mxu1 }
0x1895   :  { %v2437_v52 = vmul.f32 2.1237322e-06, %v2436_v56  ;;  %v2448_v24 = vmul.f32 3.8918573e-05, %v2436_v56  ;;  %v3861_v36 = vadd.f32 %v2428_v51, %v2401_v41 }
0x1897   :  { %v2438_v57 = vadd.f32 0.00028619796, %v2437_v52  ;;  %v2449_v42 = vadd.f32 0.001143296, %v2448_v24  ;;  %v3870_v55 = vmul.f32 0.70710677, %v3861_v36 }
0x1899   :  { %v2439_v23 = vmul.f32 %v2438_v57, %v2436_v56  ;;  %v2450_v49 = vmul.f32 %v2449_v42, %v2436_v56  ;;  %v2475_v47 = vmul.f32 %v3870_v55, %v3870_v55 }
0x189b   :  { %v2451_v5 = vadd.f32 0.014752088, %v2450_v49  ;;  %v2440_v18 = vadd.f32 0.0036580483, %v2439_v23  ;;  %v2476_v58 = vmin.f32 %v2475_v47, 16.0 }
0x189d   :  { %v2452_v59 = vmul.f32 %v2451_v5, %v2436_v56  ;;  %v2477_v6 = vmul.f32 2.1237322e-06, %v2476_v58  ;;  %v2488_v37 = vmul.f32 3.8918573e-05, %v2476_v58  ;;  %v2441_v62 = vmul.f32 %v2440_v18, %v2436_v56 }
0x189e   :  { %v2431_v18 = vmul.f32 0.5, %v3842_v34  ;;  %v2519_v34 = vperm.slane %v3801_v53, 5 }
0x189f   :  { %v2453_v61 = vadd.f32 0.112945676, %v2452_v59  ;;  %v2478_v63 = vadd.f32 0.00028619796, %v2477_v6  ;;  %v2489_v1 = vadd.f32 0.001143296, %v2488_v37 }
0x18a0   :  { %v2442_v25 = vadd.f32 0.05243302, %v2441_v62 }
0x18a1   :  { %v2454_v8 = vmul.f32 %v2453_v61, %v2436_v56  ;;  %v2479_v9 = vmul.f32 %v2478_v63, %v2476_v58  ;;  %v2490_v11 = vmul.f32 %v2489_v1, %v2476_v58  ;;  %v2432_v63 = vmul.f32 0.5, %v3861_v36 }
0x18a2   :  { %v2443_v22 = vmul.f32 %v2442_v25, %v2436_v56 }
0x18a3   :  { %v2455_v19 = vadd.f32 0.4994258, %v2454_v8  ;;  %v2491_v20 = vadd.f32 0.014752088, %v2490_v11  ;;  %v2480_v60 = vadd.f32 0.0036580483, %v2479_v9 }
0x18a4   :  { %v2444_v15 = vadd.f32 0.18741608, %v2443_v22 }
0x18a5   :  { %v2456_v27 = vmul.f32 %v2455_v19, %v2436_v56  ;;  %v2492_v2 = vmul.f32 %v2491_v20, %v2476_v58  ;;  %v2481_v16 = vmul.f32 %v2480_v60, %v2476_v58 }
0x18a6   :  { %v2445_v35 = vmul.f32 %v2444_v15, %v2436_v56  ;;  %v2591_v15 = vld [vmem:[%s3932_s5 + $0x10] sm:$0xff] }
0x18a7   :  { %v2457_v46 = vadd.f32 1.0, %v2456_v27  ;;  %v2493_v29 = vadd.f32 0.112945676, %v2492_v2  ;;  %v2482_v45 = vadd.f32 0.05243302, %v2481_v16 }
0x18a8   :  { %v2446_v7 = vadd.f32 1.1283791, %v2445_v35 }
0x18a9   :  { %2951 = vrcp.f32 %v2457_v46  ;;  %v2494_v0 = vmul.f32 %v2493_v29, %v2476_v58  ;;  %v2483_v17 = vmul.f32 %v2482_v45, %v2476_v58  ;;  %v2469_v30 = vand.u32 2147483648, %v2457_v46  ;;  %v2589_v45 = vld [vmem:[%s3932_s5] sm:$0xff] }
0x18aa   :  { %v2467_v12 = vand.u32 2147483647, %v2457_v46  ;;  %vm2463_vm2 = vweird.f32 %v2457_v46  ;;  %v2447_v24 = vmul.f32 %v2446_v7, %v3848_v48 }
0x18ab   :  { %v2495_v31 = vadd.f32 0.4994258, %v2494_v0  ;;  %v2484_v43 = vadd.f32 0.18741608, %v2483_v17  ;;  %v2470_v51 = vor.u32 1.1754944e-38, %v2469_v30 }
0x18ac   :  { %vm2468_vm9 = vcmp.eq.f32.partialorder %v2467_v12, 8.507059e+37 }
0x18ad   :  { %v2496_v32 = vmul.f32 %v2495_v31, %v2476_v58  ;;  %v2485_v57 = vmul.f32 %v2484_v43, %v2476_v58  ;;  %v2590_v31 = vld [vmem:[%s3932_s5 + $0x8] sm:$0xff] }
0x18af   :  { %v2952_v33 = vpop.eup %2951  ;;  %v2497_v41 = vadd.f32 1.0, %v2496_v32  ;;  %v2486_v47 = vadd.f32 1.1283791, %v2485_v57 }
0x18b0   :  { %v2459_v4 = vmul.f32 %v2952_v33, %v2457_v46  ;;  %vm2464_vm1 = vweird.f32 %v2952_v33 }
0x18b1   :  { %2953 = vrcp.f32 %v2497_v41  ;;  %vm2465_vm8 = vmor %vm2463_vm2, %vm2464_vm1  ;;  %v2509_v26 = vand.u32 2147483648, %v2497_v41  ;;  %v2507_v28 = vand.u32 2147483647, %v2497_v41  ;;  %vm2503_vm4 = vweird.f32 %v2497_v41 }
0x18b2   :  { %v2460_v44 = vsub.f32 1.0, %v2459_v4  ;;  %v2487_v37 = vmul.f32 %v2486_v47, %v3870_v55 }
0x18b3   :  { %v2510_v48 = vor.u32 1.1754944e-38, %v2509_v26  ;;  %vm2508_vm6 = vcmp.eq.f32.partialorder %v2507_v28, 8.507059e+37 }
0x18b4   :  { %v2461_v13 = vmul.f32 %v2952_v33, %v2460_v44 }
0x18b6   :  { %v2462_v50 = vadd.f32 %v2952_v33, %v2461_v13 }
0x18b7   :  { %v2954_v52 = vpop.eup %2953 }
0x18b8   :  { %v2466_v40 = vsel %vm2465_vm8, %v2952_v33, %v2462_v50  ;;  %v2499_v42 = vmul.f32 %v2954_v52, %v2497_v41  ;;  %vm2504_vm10 = vweird.f32 %v2954_v52 }
0x18b9   :  { %v2471_v56 = vsel %vm2468_vm9, %v2470_v51, %v2466_v40  ;;  %vm2505_vm5 = vmor %vm2503_vm4, %vm2504_vm10 }
0x18ba   :  { %v2472_v54 = vmul.f32 %v2471_v56, %v2447_v24  ;;  %v2500_v23 = vsub.f32 1.0, %v2499_v42 }
0x18bc   :  { %v2773_v49 = vclamps-f32 %v2472_v54, 1.0  ;;  %v2501_v5 = vmul.f32 %v2954_v52, %v2500_v23  ;;  %v2840_v23 = vld [vmem:[%s3933_s6] ss:$0 sm:$0xff] }
0x18be   :  { %v2515_v59 = vadd.f32 1.0, %v2773_v49  ;;  %v2502_v21 = vadd.f32 %v2954_v52, %v2501_v5 }
0x18c0   :  { %v2517_v6 = vmul.f32 %v2515_v59, %v2431_v18  ;;  %v2506_v58 = vsel %vm2505_vm5, %v2954_v52, %v2502_v21 }
0x18c1   :  { %v2511_v61 = vsel %vm2508_vm6, %v2510_v48, %v2506_v58 }
0x18c2   :  { %2536 = vmatmul.f32.vlgmr.msrb.gmra.mxu2 %v2517_v6  ;;  %v2512_v39 = vmul.f32 %v2511_v61, %v2487_v37 }
0x18c4   :  { %v2774_v62 = vclamps-f32 %v2512_v39, 1.0 }
0x18c6   :  { %v2516_v3 = vadd.f32 1.0, %v2774_v62 }
0x18c8   :  { %v2518_v1 = vmul.f32 %v2516_v3, %v2432_v63 }
0x18ca   :  { %2539 = vmatmul.f32.gmra.mxu2 %v2518_v1 }
0x1945   :  { %v2537_v8 = vpop.f32.mrf.mxu2 }
0x1946   :  { %v2538_v9 = vadd.f32 %v2537_v8, %v2519_v34 }
0x1948   :  { %v2543_v11 = vadd.f32 %v2538_v9, %v3690_v38 }
0x194a   :  { %v2545_v19 = vsel %vm77_vm0, %v2543_v11, 0.0 }
0x194b   :  { %2546 = vadd.xlane.f32.xlu2 %v2545_v19 }
0x194d   :  { %v2540_v55 = vpop.f32.mrf.mxu2 }
0x194e   :  { %v2541_v25 = vadd.f32 %v2540_v55, %v2519_v34 }
0x1950   :  { %v2544_v20 = vadd.f32 %v2541_v25, %v3695_v14  ;;  %v2592_v14 = vld [vmem:[%s3932_s5 + $0x18] sm:$0xff] }
0x1951   :  { %2615 = vmatpush.msrb.mxu0 %v2592_v14 }
0x1952   :  { %v2548_v27 = vsel %vm77_vm0, %v2544_v20, 0.0 }
0x1953   :  { %2549 = vadd.xlane.f32.xlu0 %v2548_v27  ;;  %2616 = vmatpush.msrb.mxu0 %v2591_v15 }
0x1955   :  { %2617 = vmatpush.msrb.mxu0 %v2590_v31 }
0x1957   :  { %2618 = vmatpush.msrb.mxu0 %v2589_v45 }
0x19be   :  { %v2547_v36 = vpop.xlane.xlu2 %2546 }
0x19bf   :  { %v2551_v60 = vmul.f32 %v2547_v36, %v3065_v10 }
0x19c1   :  { %v2553_v2 = vsub.f32 %v2543_v11, %v2551_v60 }
0x19c3   :  { %v2555_v46 = vmul.f32 %v2553_v2, %v2553_v2 }
0x19c5   :  { %v2557_v53 = vsel %vm77_vm0, %v2555_v46, 0.0 }
0x19c6   :  { %2558 = vadd.xlane.f32.xlu2 %v2557_v53  ;;  %v2550_v22 = vpop.xlane.xlu0 %2549 }
0x19c7   :  { %v2552_v38 = vmul.f32 %v2550_v22, %v3065_v10 }
0x19c9   :  { %v2554_v29 = vsub.f32 %v2544_v20, %v2552_v38 }
0x19cb   :  { %v2556_v16 = vmul.f32 %v2554_v29, %v2554_v29 }
0x19cd   :  { %v2560_v0 = vsel %vm77_vm0, %v2556_v16, 0.0 }
0x19ce   :  { %2561 = vadd.xlane.f32.xlu0 %v2560_v0 }
0x1a39   :  { %v2559_v32 = vpop.xlane.xlu2 %2558 }
0x1a3a   :  { %v2563_v33 = vmul.f32 %v2559_v32, %v3065_v10 }
0x1a3c   :  { %v2565_v35 = vadd.f32 1e-05, %v2563_v33 }
0x1a3e   :  { %2955 = vrsqrt.f32 %v2565_v35  ;;  %vm2573_vm11 = vweird.f32 %v2565_v35 }
0x1a41   :  { %v2562_v4 = vpop.xlane.xlu0 %2561 }
0x1a42   :  { %v2564_v41 = vmul.f32 %v2562_v4, %v3065_v10 }
0x1a44   :  { %v2956_v17 = vpop.eup %2955  ;;  %v2566_v30 = vadd.f32 1e-05, %v2564_v41 }
0x1a45   :  { %v2568_v44 = vmul.f32 %v2956_v17, %v2565_v35  ;;  %vm2574_vm7 = vweird.f32 %v2956_v17 }
0x1a46   :  { %2957 = vrsqrt.f32 %v2566_v30  ;;  %vm2575_vm12 = vmor %vm2573_vm11, %vm2574_vm7  ;;  %vm2583_vm14 = vweird.f32 %v2566_v30 }
0x1a47   :  { %v2569_v7 = vmul.f32 %v2956_v17, %v2568_v44 }
0x1a49   :  { %v2570_v13 = vmul.f32 0.5, %v2569_v7 }
0x1a4b   :  { %v2571_v12 = vsub.f32 1.5, %v2570_v13 }
0x1a4c   :  { %v2958_v43 = vpop.eup %2957 }
0x1a4d   :  { %v2572_v50 = vmul.f32 %v2956_v17, %v2571_v12  ;;  %v2578_v51 = vmul.f32 %v2958_v43, %v2566_v30  ;;  %vm2584_vm13 = vweird.f32 %v2958_v43 }
0x1a4e   :  { %vm2585_vm15 = vmor %vm2583_vm14, %vm2584_vm13 }
0x1a4f   :  { %v2576_v52 = vsel %vm2575_vm12, %v2956_v17, %v2572_v50  ;;  %v2579_v40 = vmul.f32 %v2958_v43, %v2578_v51 }
0x1a50   :  { %v2587_v24 = vmul.f32 %v2576_v52, %v2553_v2 }
0x1a51   :  { %v2580_v56 = vmul.f32 0.5, %v2579_v40 }
0x1a52   :  { %2775 = vmatmul.msk.f32.vlgmr.msrb.gmra.mxu0 %vm77_vm0, %v2587_v24 }
0x1a53   :  { %v2581_v10 = vsub.f32 1.5, %v2580_v56 }
0x1a55   :  { %v2582_v57 = vmul.f32 %v2958_v43, %v2581_v10 }
0x1a57   :  { %v2586_v42 = vsel %vm2585_vm15, %v2958_v43, %v2582_v57 }
0x1a58   :  { %v2588_v54 = vmul.f32 %v2586_v42, %v2554_v29 }
0x1a5a   :  { %2776 = vmatmul.msk.f32.gmra.mxu0 %vm77_vm0, %v2588_v54 }
0x1acf   :  { %v2620_v49 = vpop.f32.mrf.mxu0 }
0x1ad0   :  { %v2621_v26 = vadd.f32 %v2840_v23, %v2620_v49 }
0x1ad2   :  { %2626 = vst.msk [vmem:[#allocation2] sm:$0xff] %vm984_vm3, %v2621_v26 }
0x1ad7   :  { %v2623_v47 = vpop.f32.mrf.mxu0 }
0x1ad8   :  { %v2624_v5 = vadd.f32 %v2840_v23, %v2623_v47 }
0x1ada   :  { %2627 = vst.msk [vmem:[#allocation2 + $0x8] sm:$0xff] %vm984_vm3, %v2624_v5 }
0x1adb   :  { %2640 = dma.vmem_to_hbm [thread:$0]  %s2633_s17, 256, %s2635_s4, [#allocation3], %s3010_s21, %s3010_s21, %s3006_s20  }
0x1adc   :  { %2991 = dma.done.wait [#allocation3], 256  }
0x1add   :  { %2992 = vsyncadd [#allocation3], 4294967040 }
0x1ade   :  { %2645 = vsyncpa [#allocation3], 1 }

</bundles_post_ra>
